<compile_context>
chip_gen: v5e
topology: v5e:2x2
jax: 0.10.0
libtpu: 0.0.40
codegen_flags: <defaults>
</compile_context>

<pallas_src>
import jax
import jax.numpy as jnp
from jax.experimental import pallas as pl
from jax.experimental.pallas import tpu as pltpu

# ----------------------- scaled-down BERT config -----------------------------
VOCAB = 128
MAX_POS = 16
TYPE_VOCAB = 2
HIDDEN = 32
HEADS = 4
HEAD_DIM = HIDDEN // HEADS
INTERMEDIATE = 64
LAYERS = 2
LN_EPS = 1e-12


def _layernorm(h, g, b):
    mu = jnp.mean(h, axis=-1, keepdims=True)
    var = jnp.mean((h - mu) * (h - mu), axis=-1, keepdims=True)
    return (h - mu) * jax.lax.rsqrt(var + LN_EPS) * g + b


# ------------------------- fused BERT encoder kernel --------------------------
def _bert_encoder_kernel(emb_ref, mask_ref,
                         emb_ln_g_ref, emb_ln_b_ref,
                         qkv_w_ref, qkv_b_ref,
                         o_w_ref, o_b_ref,
                         attn_ln_g_ref, attn_ln_b_ref,
                         i_w_ref, i_b_ref,
                         f_w_ref, f_b_ref,
                         ffn_ln_g_ref, ffn_ln_b_ref,
                         pool_w_ref, pool_b_ref,
                         last_ref, pooled_ref,
                         qkv_ref, ctx_ref):
    """Whole BERT encoder forward for one (B, S) batch; everything stays in VMEM."""
    B, S = mask_ref.shape
    scale = 1.0 / (HEAD_DIM ** 0.5)

    # Embedding LayerNorm (no residual / no zeros input).
    x = _layernorm(emb_ref[...].astype(jnp.float32),
                   emb_ln_g_ref[...], emb_ln_b_ref[...])            # (B*S, HIDDEN)

    for l in range(LAYERS):                                         # static unroll
        # ---- fused Q/K/V projection: one lane-dense (HIDDEN, 3*HIDDEN) matmul.
        qkv_ref[...] = (jnp.dot(x, qkv_w_ref[l],
                                preferred_element_type=jnp.float32)
                        + qkv_b_ref[l])

        # ---- multi-head self-attention, unrolled in-kernel; head outputs are
        # written straight into (B*S, HEADS*HEAD_DIM) layout (no transpose later).
        for b in range(B):
            m_b = mask_ref[b:b + 1, :].astype(jnp.float32)          # (1, S) additive
            r0 = b * S
            for h in range(HEADS):
                c0 = h * HEAD_DIM
                q_bh = qkv_ref[r0:r0 + S, c0:c0 + HEAD_DIM]
                k_bh = qkv_ref[r0:r0 + S, HIDDEN + c0:HIDDEN + c0 + HEAD_DIM]
                v_bh = qkv_ref[r0:r0 + S, 2 * HIDDEN + c0:2 * HIDDEN + c0 + HEAD_DIM]
                s = jnp.dot(q_bh, k_bh.T,
                            preferred_element_type=jnp.float32) * scale + m_b
                s = s - jnp.max(s, axis=-1, keepdims=True)
                p = jnp.exp(s)
                p = p * pl.reciprocal(jnp.sum(p, axis=-1, keepdims=True), approx=True)
                ctx_ref[r0:r0 + S, c0:c0 + HEAD_DIM] = jnp.dot(
                    p, v_bh, preferred_element_type=jnp.float32)

        # ---- attention output projection + add & LayerNorm
        attn_out = (jnp.dot(ctx_ref[...], o_w_ref[l],
                            preferred_element_type=jnp.float32) + o_b_ref[l])
        x = _layernorm(attn_out + x, attn_ln_g_ref[l], attn_ln_b_ref[l])

        # ---- feed-forward (exact erf GELU) + add & LayerNorm
        inter = (jnp.dot(x, i_w_ref[l], preferred_element_type=jnp.float32)
                 + i_b_ref[l])
        inter = 0.5 * inter * (1.0 + jax.lax.erf(inter * 0.7071067811865475))
        ffn = (jnp.dot(inter, f_w_ref[l], preferred_element_type=jnp.float32)
               + f_b_ref[l])
        x = _layernorm(ffn + x, ffn_ln_g_ref[l], ffn_ln_b_ref[l])

    last_ref[...] = x.astype(last_ref.dtype)

    # ---- pooler: tanh(cls @ W + b).  Computing on the full (B*S, HIDDEN) slab is
    # sub-vreg-cheap; CLS rows are then picked out via the spare ctx scratch.
    ctx_ref[...] = jnp.tanh(jnp.dot(x, pool_w_ref[...],
                                    preferred_element_type=jnp.float32)
                            + pool_b_ref[...])
    for b in range(B):
        pooled_ref[b:b + 1, :] = ctx_ref[b * S:b * S + 1, :]


# ------------------------------- BERT wrapper ---------------------------------
@jax.jit
def bert_forward(params, input_ids, attention_mask):
    """Mirrors BertModel(input_ids, attention_mask) -> (last_hidden, pooled)."""
    B, S = input_ids.shape

    # Embedding-table gathers stay in plain JAX (glue); everything else is fused.
    pos_ids = jnp.arange(S, dtype=jnp.int32)
    emb = (jnp.take(params["word_emb"], input_ids, axis=0)
           + jnp.take(params["pos_emb"], pos_ids, axis=0)[None, :, :]
           + params["type_emb"][0][None, None, :])                  # token_type_ids = 0
    emb = emb.reshape(B * S, HIDDEN).astype(jnp.float32)

    # BERT extended additive mask (1 - mask) * -10000, kept at (B, S) — no
    # per-head broadcast is materialized.
    mask_add = (1.0 - attention_mask.astype(jnp.float32)) * -10000.0

    vmem = pl.BlockSpec(memory_space=pltpu.MemorySpace.VMEM)
    last, pooled = pl.pallas_call(
        _bert_encoder_kernel,
        out_shape=(jax.ShapeDtypeStruct((B * S, HIDDEN), jnp.float32),
                   jax.ShapeDtypeStruct((B, HIDDEN), jnp.float32)),
        in_specs=[vmem] * 18,
        out_specs=(vmem, vmem),
        scratch_shapes=[pltpu.VMEM((B * S, 3 * HIDDEN), jnp.float32),   # qkv
                        pltpu.VMEM((B * S, HIDDEN), jnp.float32)],      # ctx / pooler tmp
    )(emb, mask_add,
      params["emb_ln_g"], params["emb_ln_b"],
      params["qkv_w"], params["qkv_b"],
      params["o_w"], params["o_b"],
      params["attn_ln_g"], params["attn_ln_b"],
      params["i_w"], params["i_b"],
      params["f_w"], params["f_b"],
      params["ffn_ln_g"], params["ffn_ln_b"],
      params["pool_w"], params["pool_b"])
    return last.reshape(B, S, HIDDEN), pooled


# ------------------------- parameter initialization --------------------------
def init_params(key):
    # TODO(synk): real checkpoint load (BertModel.from_pretrained) has no Pallas
    # equivalent; weights here are synthetic, deterministic, scaled-down.
    keys = iter(jax.random.split(key, 4 + 6 * LAYERS))

    def w(shape):
        return (0.02 * jax.random.normal(next(keys), shape)).astype(jnp.float32)

    def zeros(shape):
        return jnp.zeros(shape, jnp.float32)

    def ones(shape):
        return jnp.ones(shape, jnp.float32)

    word_emb = w((VOCAB, HIDDEN))
    pos_emb = w((MAX_POS, HIDDEN))
    type_emb = w((TYPE_VOCAB, HIDDEN))
    pool_w = w((HIDDEN, HIDDEN))

    qkv_w, qkv_b, o_w, o_b = [], [], [], []
    attn_ln_g, attn_ln_b = [], []
    i_w, i_b, f_w, f_b = [], [], [], []
    ffn_ln_g, ffn_ln_b = [], []
    for _ in range(LAYERS):
        qw, kw, vw = w((HIDDEN, HIDDEN)), w((HIDDEN, HIDDEN)), w((HIDDEN, HIDDEN))
        qkv_w.append(jnp.concatenate([qw, kw, vw], axis=1))          # (HIDDEN, 3*HIDDEN)
        qkv_b.append(zeros((1, 3 * HIDDEN)))
        o_w.append(w((HIDDEN, HIDDEN)))
        o_b.append(zeros((1, HIDDEN)))
        attn_ln_g.append(ones((1, HIDDEN)))
        attn_ln_b.append(zeros((1, HIDDEN)))
        i_w.append(w((HIDDEN, INTERMEDIATE)))
        i_b.append(zeros((1, INTERMEDIATE)))
        f_w.append(w((INTERMEDIATE, HIDDEN)))
        f_b.append(zeros((1, HIDDEN)))
        ffn_ln_g.append(ones((1, HIDDEN)))
        ffn_ln_b.append(zeros((1, HIDDEN)))

    return {
        "word_emb": word_emb, "pos_emb": pos_emb, "type_emb": type_emb,
        "emb_ln_g": ones((1, HIDDEN)), "emb_ln_b": zeros((1, HIDDEN)),
        "qkv_w": jnp.stack(qkv_w), "qkv_b": jnp.stack(qkv_b),
        "o_w": jnp.stack(o_w), "o_b": jnp.stack(o_b),
        "attn_ln_g": jnp.stack(attn_ln_g), "attn_ln_b": jnp.stack(attn_ln_b),
        "i_w": jnp.stack(i_w), "i_b": jnp.stack(i_b),
        "f_w": jnp.stack(f_w), "f_b": jnp.stack(f_b),
        "ffn_ln_g": jnp.stack(ffn_ln_g), "ffn_ln_b": jnp.stack(ffn_ln_b),
        "pool_w": pool_w, "pool_b": zeros((1, HIDDEN)),
    }


# ---------------------------- EnsembleTokens forward ---------------------------
def ensemble_tokens_forward(question_params, context_params, encoding, mode="train"):
    """Mirrors EnsembleTokens.forward: two BERT encoders (question + context)."""
    # NOTE: the context model's requires_grad=False is a training-time property
    # with no effect on the forward pass.
    if mode == "train":
        question_encoded = bert_forward(question_params,
                                        encoding["input_ids_questions"],
                                        encoding["attention_mask_questions"])
        context_encoded = bert_forward(context_params,
                                       encoding["input_ids_context"],
                                       encoding["attention_mask_context"])
        return question_encoded, context_encoded
    if mode == "inference":
        return bert_forward(question_params,
                            encoding["input_ids_questions"],
                            encoding["attention_mask_questions"])
    raise ValueError(f"unknown mode: {mode}")


# ----------------------------------- main -------------------------------------
if __name__ == "__main__":
    key = jax.random.PRNGKey(0)
    k_qparam, k_cparam, k_qids, k_cids = jax.random.split(key, 4)

    question_params = init_params(k_qparam)
    context_params = init_params(k_cparam)

    B, S = 2, 8
    encoding = {
        "input_ids_questions": jax.random.randint(k_qids, (B, S), 0, VOCAB, dtype=jnp.int32),
        "attention_mask_questions": jnp.array(
            [[1, 1, 1, 1, 1, 1, 1, 1],
             [1, 1, 1, 1, 1, 1, 0, 0]], dtype=jnp.int32),
        "input_ids_context": jax.random.randint(k_cids, (B, S), 0, VOCAB, dtype=jnp.int32),
        "attention_mask_context": jnp.array(
            [[1, 1, 1, 1, 1, 1, 1, 1],
             [1, 1, 1, 1, 1, 1, 1, 0]], dtype=jnp.int32),
    }

    (q_last, q_pool), (c_last, c_pool) = ensemble_tokens_forward(
        question_params, context_params, encoding, mode="train")
    jax.block_until_ready((q_last, q_pool, c_last, c_pool))

    assert q_last.shape == (B, S, HIDDEN) and q_pool.shape == (B, HIDDEN)
    assert c_last.shape == (B, S, HIDDEN) and c_pool.shape == (B, HIDDEN)
    for t in (q_last, q_pool, c_last, c_pool):
        assert bool(jnp.all(jnp.isfinite(t)))
    print("KERNEL_OK")
</pallas_src>

<mosaic_0001>
module attributes {stable_mosaic.version = 11 : i64} {
  func.func @_bert_encoder_kernel(%arg0: memref<16x32xf32, #tpu.memory_space<vmem>>, %arg1: memref<2x8xf32, #tpu.memory_space<vmem>>, %arg2: memref<1x32xf32, #tpu.memory_space<vmem>>, %arg3: memref<1x32xf32, #tpu.memory_space<vmem>>, %arg4: memref<2x32x96xf32, #tpu.memory_space<vmem>>, %arg5: memref<2x1x96xf32, #tpu.memory_space<vmem>>, %arg6: memref<2x32x32xf32, #tpu.memory_space<vmem>>, %arg7: memref<2x1x32xf32, #tpu.memory_space<vmem>>, %arg8: memref<2x1x32xf32, #tpu.memory_space<vmem>>, %arg9: memref<2x1x32xf32, #tpu.memory_space<vmem>>, %arg10: memref<2x32x64xf32, #tpu.memory_space<vmem>>, %arg11: memref<2x1x64xf32, #tpu.memory_space<vmem>>, %arg12: memref<2x64x32xf32, #tpu.memory_space<vmem>>, %arg13: memref<2x1x32xf32, #tpu.memory_space<vmem>>, %arg14: memref<2x1x32xf32, #tpu.memory_space<vmem>>, %arg15: memref<2x1x32xf32, #tpu.memory_space<vmem>>, %arg16: memref<32x32xf32, #tpu.memory_space<vmem>>, %arg17: memref<1x32xf32, #tpu.memory_space<vmem>>, %arg18: memref<16x32xf32, #tpu.memory_space<vmem>>, %arg19: memref<2x32xf32, #tpu.memory_space<vmem>>, %arg20: memref<16x96xf32, #tpu.memory_space<vmem>>, %arg21: memref<16x32xf32, #tpu.memory_space<vmem>>) attributes {dimension_semantics = [], scalar_prefetch = 0 : i64, scratch_operands = 2 : i64, tpu.core_type = #tpu.core_type<tc>} {
    %c0 = arith.constant 0 : index
    %c0_0 = arith.constant 0 : index
    %0 = vector.load %arg0[%c0, %c0_0] : memref<16x32xf32, #tpu.memory_space<vmem>>, vector<16x32xf32>
    %c0_1 = arith.constant 0 : index
    %c0_2 = arith.constant 0 : index
    %1 = vector.load %arg2[%c0_1, %c0_2] : memref<1x32xf32, #tpu.memory_space<vmem>>, vector<1x32xf32>
    %c0_3 = arith.constant 0 : index
    %c0_4 = arith.constant 0 : index
    %2 = vector.load %arg3[%c0_3, %c0_4] : memref<1x32xf32, #tpu.memory_space<vmem>>, vector<1x32xf32>
    %cst = arith.constant dense<0.000000e+00> : vector<16xf32>
    %3 = vector.multi_reduction <add>, %0, %cst [1] : vector<16x32xf32> to vector<16xf32>
    %4 = vector.shape_cast %3 : vector<16xf32> to vector<16x1xf32>
    %cst_5 = arith.constant 3.200000e+01 : f32
    %5 = vector.broadcast %cst_5 : f32 to vector<16x1xf32>
    %6 = arith.divf %4, %5 : vector<16x1xf32>
    %7 = vector.broadcast %6 : vector<16x1xf32> to vector<16x32xf32>
    %8 = arith.subf %0, %7 : vector<16x32xf32>
    %9 = vector.broadcast %6 : vector<16x1xf32> to vector<16x32xf32>
    %10 = arith.subf %0, %9 : vector<16x32xf32>
    %11 = arith.mulf %8, %10 : vector<16x32xf32>
    %cst_6 = arith.constant dense<0.000000e+00> : vector<16xf32>
    %12 = vector.multi_reduction <add>, %11, %cst_6 [1] : vector<16x32xf32> to vector<16xf32>
    %13 = vector.shape_cast %12 : vector<16xf32> to vector<16x1xf32>
    %cst_7 = arith.constant 3.200000e+01 : f32
    %14 = vector.broadcast %cst_7 : f32 to vector<16x1xf32>
    %15 = arith.divf %13, %14 : vector<16x1xf32>
    %16 = vector.broadcast %6 : vector<16x1xf32> to vector<16x32xf32>
    %17 = arith.subf %0, %16 : vector<16x32xf32>
    %cst_8 = arith.constant 9.99999996E-13 : f32
    %18 = vector.broadcast %cst_8 : f32 to vector<16x1xf32>
    %19 = arith.addf %15, %18 : vector<16x1xf32>
    %20 = math.rsqrt %19 : vector<16x1xf32>
    %21 = vector.broadcast %20 : vector<16x1xf32> to vector<16x32xf32>
    %22 = arith.mulf %17, %21 : vector<16x32xf32>
    %23 = vector.broadcast %1 : vector<1x32xf32> to vector<16x32xf32>
    %24 = arith.mulf %22, %23 : vector<16x32xf32>
    %25 = vector.broadcast %2 : vector<1x32xf32> to vector<16x32xf32>
    %26 = arith.addf %24, %25 : vector<16x32xf32>
    %c0_9 = arith.constant 0 : index
    %c0_10 = arith.constant 0 : index
    %c0_11 = arith.constant 0 : index
    %27 = vector.load %arg4[%c0_9, %c0_10, %c0_11] : memref<2x32x96xf32, #tpu.memory_space<vmem>>, vector<1x32x96xf32>
    %28 = vector.shape_cast %27 : vector<1x32x96xf32> to vector<32x96xf32>
    %cst_12 = arith.constant dense<0.000000e+00> : vector<16x96xf32>
    %29 = tpu.matmul %26, %28, %cst_12 {dimension_numbers = #tpu.dot_dimension_numbers<[1], [0], [0], [1], [0, 0, 1, 1], [], []>} : vector<16x32xf32>, vector<32x96xf32>, vector<16x96xf32> -> vector<16x96xf32>
    %c0_13 = arith.constant 0 : index
    %c0_14 = arith.constant 0 : index
    %c0_15 = arith.constant 0 : index
    %30 = vector.load %arg5[%c0_13, %c0_14, %c0_15] : memref<2x1x96xf32, #tpu.memory_space<vmem>>, vector<1x1x96xf32>
    %31 = vector.shape_cast %30 : vector<1x1x96xf32> to vector<1x96xf32>
    %32 = vector.broadcast %31 : vector<1x96xf32> to vector<16x96xf32>
    %33 = arith.addf %29, %32 : vector<16x96xf32>
    %c0_16 = arith.constant 0 : index
    %c0_17 = arith.constant 0 : index
    %34 = vector.load %arg20[%c0_16, %c0_17] : memref<16x96xf32, #tpu.memory_space<vmem>>, vector<16x96xf32>
    tpu.vector_store %arg20[%c0_16, %c0_17], %33 {strides = array<i32>} : memref<16x96xf32, #tpu.memory_space<vmem>>, vector<16x96xf32>,
    %c0_18 = arith.constant 0 : index
    %c0_19 = arith.constant 0 : index
    %35 = vector.load %arg1[%c0_18, %c0_19] : memref<2x8xf32, #tpu.memory_space<vmem>>, vector<1x8xf32>
    %c0_20 = arith.constant 0 : index
    %c0_21 = arith.constant 0 : index
    %36 = vector.load %arg20[%c0_20, %c0_21] : memref<16x96xf32, #tpu.memory_space<vmem>>, vector<8x8xf32>
    %c0_22 = arith.constant 0 : index
    %c32 = arith.constant 32 : index
    %37 = vector.load %arg20[%c0_22, %c32] : memref<16x96xf32, #tpu.memory_space<vmem>>, vector<8x8xf32>
    %c0_23 = arith.constant 0 : index
    %c64 = arith.constant 64 : index
    %38 = vector.load %arg20[%c0_23, %c64] : memref<16x96xf32, #tpu.memory_space<vmem>>, vector<8x8xf32>
    %39 = tpu.transpose %37, [1, 0] : vector<8x8xf32> -> vector<8x8xf32>
    %cst_24 = arith.constant dense<0.000000e+00> : vector<8x8xf32>
    %40 = tpu.matmul %36, %39, %cst_24 {dimension_numbers = #tpu.dot_dimension_numbers<[1], [0], [0], [1], [0, 0, 1, 1], [], []>} : vector<8x8xf32>, vector<8x8xf32>, vector<8x8xf32> -> vector<8x8xf32>
    %cst_25 = arith.constant 0.353553385 : f32
    %41 = vector.broadcast %cst_25 : f32 to vector<8x8xf32>
    %42 = arith.mulf %40, %41 : vector<8x8xf32>
    %43 = vector.broadcast %35 : vector<1x8xf32> to vector<8x8xf32>
    %44 = arith.addf %42, %43 : vector<8x8xf32>
    %cst_26 = arith.constant dense<0xFF800000> : vector<8xf32>
    %45 = vector.multi_reduction <maximumf>, %44, %cst_26 [1] : vector<8x8xf32> to vector<8xf32>
    %46 = vector.shape_cast %45 : vector<8xf32> to vector<8x1xf32>
    %47 = vector.broadcast %46 : vector<8x1xf32> to vector<8x8xf32>
    %48 = arith.subf %44, %47 : vector<8x8xf32>
    %49 = math.exp %48 : vector<8x8xf32>
    %cst_27 = arith.constant dense<0.000000e+00> : vector<8xf32>
    %50 = vector.multi_reduction <add>, %49, %cst_27 [1] : vector<8x8xf32> to vector<8xf32>
    %51 = vector.shape_cast %50 : vector<8xf32> to vector<8x1xf32>
    %52 = tpu.reciprocal %51 {approx = true} : vector<8x1xf32> -> vector<8x1xf32>
    %53 = vector.broadcast %52 : vector<8x1xf32> to vector<8x8xf32>
    %54 = arith.mulf %49, %53 : vector<8x8xf32>
    %cst_28 = arith.constant dense<0.000000e+00> : vector<8x8xf32>
    %55 = tpu.matmul %54, %38, %cst_28 {dimension_numbers = #tpu.dot_dimension_numbers<[1], [0], [0], [1], [0, 0, 1, 1], [], []>} : vector<8x8xf32>, vector<8x8xf32>, vector<8x8xf32> -> vector<8x8xf32>
    %c0_29 = arith.constant 0 : index
    %c0_30 = arith.constant 0 : index
    %56 = vector.load %arg21[%c0_29, %c0_30] : memref<16x32xf32, #tpu.memory_space<vmem>>, vector<8x8xf32>
    tpu.vector_store %arg21[%c0_29, %c0_30], %55 {strides = array<i32>} : memref<16x32xf32, #tpu.memory_space<vmem>>, vector<8x8xf32>,
    %c0_31 = arith.constant 0 : index
    %c8 = arith.constant 8 : index
    %57 = vector.load %arg20[%c0_31, %c8] : memref<16x96xf32, #tpu.memory_space<vmem>>, vector<8x8xf32>
    %c0_32 = arith.constant 0 : index
    %c40 = arith.constant 40 : index
    %58 = vector.load %arg20[%c0_32, %c40] : memref<16x96xf32, #tpu.memory_space<vmem>>, vector<8x8xf32>
    %c0_33 = arith.constant 0 : index
    %c72 = arith.constant 72 : index
    %59 = vector.load %arg20[%c0_33, %c72] : memref<16x96xf32, #tpu.memory_space<vmem>>, vector<8x8xf32>
    %60 = tpu.transpose %58, [1, 0] : vector<8x8xf32> -> vector<8x8xf32>
    %cst_34 = arith.constant dense<0.000000e+00> : vector<8x8xf32>
    %61 = tpu.matmul %57, %60, %cst_34 {dimension_numbers = #tpu.dot_dimension_numbers<[1], [0], [0], [1], [0, 0, 1, 1], [], []>} : vector<8x8xf32>, vector<8x8xf32>, vector<8x8xf32> -> vector<8x8xf32>
    %cst_35 = arith.constant 0.353553385 : f32
    %62 = vector.broadcast %cst_35 : f32 to vector<8x8xf32>
    %63 = arith.mulf %61, %62 : vector<8x8xf32>
    %64 = vector.broadcast %35 : vector<1x8xf32> to vector<8x8xf32>
    %65 = arith.addf %63, %64 : vector<8x8xf32>
    %cst_36 = arith.constant dense<0xFF800000> : vector<8xf32>
    %66 = vector.multi_reduction <maximumf>, %65, %cst_36 [1] : vector<8x8xf32> to vector<8xf32>
    %67 = vector.shape_cast %66 : vector<8xf32> to vector<8x1xf32>
    %68 = vector.broadcast %67 : vector<8x1xf32> to vector<8x8xf32>
    %69 = arith.subf %65, %68 : vector<8x8xf32>
    %70 = math.exp %69 : vector<8x8xf32>
    %cst_37 = arith.constant dense<0.000000e+00> : vector<8xf32>
    %71 = vector.multi_reduction <add>, %70, %cst_37 [1] : vector<8x8xf32> to vector<8xf32>
    %72 = vector.shape_cast %71 : vector<8xf32> to vector<8x1xf32>
    %73 = tpu.reciprocal %72 {approx = true} : vector<8x1xf32> -> vector<8x1xf32>
    %74 = vector.broadcast %73 : vector<8x1xf32> to vector<8x8xf32>
    %75 = arith.mulf %70, %74 : vector<8x8xf32>
    %cst_38 = arith.constant dense<0.000000e+00> : vector<8x8xf32>
    %76 = tpu.matmul %75, %59, %cst_38 {dimension_numbers = #tpu.dot_dimension_numbers<[1], [0], [0], [1], [0, 0, 1, 1], [], []>} : vector<8x8xf32>, vector<8x8xf32>, vector<8x8xf32> -> vector<8x8xf32>
    %c0_39 = arith.constant 0 : index
    %c8_40 = arith.constant 8 : index
    %77 = vector.load %arg21[%c0_39, %c8_40] : memref<16x32xf32, #tpu.memory_space<vmem>>, vector<8x8xf32>
    tpu.vector_store %arg21[%c0_39, %c8_40], %76 {strides = array<i32>} : memref<16x32xf32, #tpu.memory_space<vmem>>, vector<8x8xf32>,
    %c0_41 = arith.constant 0 : index
    %c16 = arith.constant 16 : index
    %78 = vector.load %arg20[%c0_41, %c16] : memref<16x96xf32, #tpu.memory_space<vmem>>, vector<8x8xf32>
    %c0_42 = arith.constant 0 : index
    %c48 = arith.constant 48 : index
    %79 = vector.load %arg20[%c0_42, %c48] : memref<16x96xf32, #tpu.memory_space<vmem>>, vector<8x8xf32>
    %c0_43 = arith.constant 0 : index
    %c80 = arith.constant 80 : index
    %80 = vector.load %arg20[%c0_43, %c80] : memref<16x96xf32, #tpu.memory_space<vmem>>, vector<8x8xf32>
    %81 = tpu.transpose %79, [1, 0] : vector<8x8xf32> -> vector<8x8xf32>
    %cst_44 = arith.constant dense<0.000000e+00> : vector<8x8xf32>
    %82 = tpu.matmul %78, %81, %cst_44 {dimension_numbers = #tpu.dot_dimension_numbers<[1], [0], [0], [1], [0, 0, 1, 1], [], []>} : vector<8x8xf32>, vector<8x8xf32>, vector<8x8xf32> -> vector<8x8xf32>
    %cst_45 = arith.constant 0.353553385 : f32
    %83 = vector.broadcast %cst_45 : f32 to vector<8x8xf32>
    %84 = arith.mulf %82, %83 : vector<8x8xf32>
    %85 = vector.broadcast %35 : vector<1x8xf32> to vector<8x8xf32>
    %86 = arith.addf %84, %85 : vector<8x8xf32>
    %cst_46 = arith.constant dense<0xFF800000> : vector<8xf32>
    %87 = vector.multi_reduction <maximumf>, %86, %cst_46 [1] : vector<8x8xf32> to vector<8xf32>
    %88 = vector.shape_cast %87 : vector<8xf32> to vector<8x1xf32>
    %89 = vector.broadcast %88 : vector<8x1xf32> to vector<8x8xf32>
    %90 = arith.subf %86, %89 : vector<8x8xf32>
    %91 = math.exp %90 : vector<8x8xf32>
    %cst_47 = arith.constant dense<0.000000e+00> : vector<8xf32>
    %92 = vector.multi_reduction <add>, %91, %cst_47 [1] : vector<8x8xf32> to vector<8xf32>
    %93 = vector.shape_cast %92 : vector<8xf32> to vector<8x1xf32>
    %94 = tpu.reciprocal %93 {approx = true} : vector<8x1xf32> -> vector<8x1xf32>
    %95 = vector.broadcast %94 : vector<8x1xf32> to vector<8x8xf32>
    %96 = arith.mulf %91, %95 : vector<8x8xf32>
    %cst_48 = arith.constant dense<0.000000e+00> : vector<8x8xf32>
    %97 = tpu.matmul %96, %80, %cst_48 {dimension_numbers = #tpu.dot_dimension_numbers<[1], [0], [0], [1], [0, 0, 1, 1], [], []>} : vector<8x8xf32>, vector<8x8xf32>, vector<8x8xf32> -> vector<8x8xf32>
    %c0_49 = arith.constant 0 : index
    %c16_50 = arith.constant 16 : index
    %98 = vector.load %arg21[%c0_49, %c16_50] : memref<16x32xf32, #tpu.memory_space<vmem>>, vector<8x8xf32>
    tpu.vector_store %arg21[%c0_49, %c16_50], %97 {strides = array<i32>} : memref<16x32xf32, #tpu.memory_space<vmem>>, vector<8x8xf32>,
    %c0_51 = arith.constant 0 : index
    %c24 = arith.constant 24 : index
    %99 = vector.load %arg20[%c0_51, %c24] : memref<16x96xf32, #tpu.memory_space<vmem>>, vector<8x8xf32>
    %c0_52 = arith.constant 0 : index
    %c56 = arith.constant 56 : index
    %100 = vector.load %arg20[%c0_52, %c56] : memref<16x96xf32, #tpu.memory_space<vmem>>, vector<8x8xf32>
    %c0_53 = arith.constant 0 : index
    %c88 = arith.constant 88 : index
    %101 = vector.load %arg20[%c0_53, %c88] : memref<16x96xf32, #tpu.memory_space<vmem>>, vector<8x8xf32>
    %102 = tpu.transpose %100, [1, 0] : vector<8x8xf32> -> vector<8x8xf32>
    %cst_54 = arith.constant dense<0.000000e+00> : vector<8x8xf32>
    %103 = tpu.matmul %99, %102, %cst_54 {dimension_numbers = #tpu.dot_dimension_numbers<[1], [0], [0], [1], [0, 0, 1, 1], [], []>} : vector<8x8xf32>, vector<8x8xf32>, vector<8x8xf32> -> vector<8x8xf32>
    %cst_55 = arith.constant 0.353553385 : f32
    %104 = vector.broadcast %cst_55 : f32 to vector<8x8xf32>
    %105 = arith.mulf %103, %104 : vector<8x8xf32>
    %106 = vector.broadcast %35 : vector<1x8xf32> to vector<8x8xf32>
    %107 = arith.addf %105, %106 : vector<8x8xf32>
    %cst_56 = arith.constant dense<0xFF800000> : vector<8xf32>
    %108 = vector.multi_reduction <maximumf>, %107, %cst_56 [1] : vector<8x8xf32> to vector<8xf32>
    %109 = vector.shape_cast %108 : vector<8xf32> to vector<8x1xf32>
    %110 = vector.broadcast %109 : vector<8x1xf32> to vector<8x8xf32>
    %111 = arith.subf %107, %110 : vector<8x8xf32>
    %112 = math.exp %111 : vector<8x8xf32>
    %cst_57 = arith.constant dense<0.000000e+00> : vector<8xf32>
    %113 = vector.multi_reduction <add>, %112, %cst_57 [1] : vector<8x8xf32> to vector<8xf32>
    %114 = vector.shape_cast %113 : vector<8xf32> to vector<8x1xf32>
    %115 = tpu.reciprocal %114 {approx = true} : vector<8x1xf32> -> vector<8x1xf32>
    %116 = vector.broadcast %115 : vector<8x1xf32> to vector<8x8xf32>
    %117 = arith.mulf %112, %116 : vector<8x8xf32>
    %cst_58 = arith.constant dense<0.000000e+00> : vector<8x8xf32>
    %118 = tpu.matmul %117, %101, %cst_58 {dimension_numbers = #tpu.dot_dimension_numbers<[1], [0], [0], [1], [0, 0, 1, 1], [], []>} : vector<8x8xf32>, vector<8x8xf32>, vector<8x8xf32> -> vector<8x8xf32>
    %c0_59 = arith.constant 0 : index
    %c24_60 = arith.constant 24 : index
    %119 = vector.load %arg21[%c0_59, %c24_60] : memref<16x32xf32, #tpu.memory_space<vmem>>, vector<8x8xf32>
    tpu.vector_store %arg21[%c0_59, %c24_60], %118 {strides = array<i32>} : memref<16x32xf32, #tpu.memory_space<vmem>>, vector<8x8xf32>,
    %c1 = arith.constant 1 : index
    %c0_61 = arith.constant 0 : index
    %120 = vector.load %arg1[%c1, %c0_61] : memref<2x8xf32, #tpu.memory_space<vmem>>, vector<1x8xf32>
    %c8_62 = arith.constant 8 : index
    %c0_63 = arith.constant 0 : index
    %121 = vector.load %arg20[%c8_62, %c0_63] : memref<16x96xf32, #tpu.memory_space<vmem>>, vector<8x8xf32>
    %c8_64 = arith.constant 8 : index
    %c32_65 = arith.constant 32 : index
    %122 = vector.load %arg20[%c8_64, %c32_65] : memref<16x96xf32, #tpu.memory_space<vmem>>, vector<8x8xf32>
    %c8_66 = arith.constant 8 : index
    %c64_67 = arith.constant 64 : index
    %123 = vector.load %arg20[%c8_66, %c64_67] : memref<16x96xf32, #tpu.memory_space<vmem>>, vector<8x8xf32>
    %124 = tpu.transpose %122, [1, 0] : vector<8x8xf32> -> vector<8x8xf32>
    %cst_68 = arith.constant dense<0.000000e+00> : vector<8x8xf32>
    %125 = tpu.matmul %121, %124, %cst_68 {dimension_numbers = #tpu.dot_dimension_numbers<[1], [0], [0], [1], [0, 0, 1, 1], [], []>} : vector<8x8xf32>, vector<8x8xf32>, vector<8x8xf32> -> vector<8x8xf32>
    %cst_69 = arith.constant 0.353553385 : f32
    %126 = vector.broadcast %cst_69 : f32 to vector<8x8xf32>
    %127 = arith.mulf %125, %126 : vector<8x8xf32>
    %128 = vector.broadcast %120 : vector<1x8xf32> to vector<8x8xf32>
    %129 = arith.addf %127, %128 : vector<8x8xf32>
    %cst_70 = arith.constant dense<0xFF800000> : vector<8xf32>
    %130 = vector.multi_reduction <maximumf>, %129, %cst_70 [1] : vector<8x8xf32> to vector<8xf32>
    %131 = vector.shape_cast %130 : vector<8xf32> to vector<8x1xf32>
    %132 = vector.broadcast %131 : vector<8x1xf32> to vector<8x8xf32>
    %133 = arith.subf %129, %132 : vector<8x8xf32>
    %134 = math.exp %133 : vector<8x8xf32>
    %cst_71 = arith.constant dense<0.000000e+00> : vector<8xf32>
    %135 = vector.multi_reduction <add>, %134, %cst_71 [1] : vector<8x8xf32> to vector<8xf32>
    %136 = vector.shape_cast %135 : vector<8xf32> to vector<8x1xf32>
    %137 = tpu.reciprocal %136 {approx = true} : vector<8x1xf32> -> vector<8x1xf32>
    %138 = vector.broadcast %137 : vector<8x1xf32> to vector<8x8xf32>
    %139 = arith.mulf %134, %138 : vector<8x8xf32>
    %cst_72 = arith.constant dense<0.000000e+00> : vector<8x8xf32>
    %140 = tpu.matmul %139, %123, %cst_72 {dimension_numbers = #tpu.dot_dimension_numbers<[1], [0], [0], [1], [0, 0, 1, 1], [], []>} : vector<8x8xf32>, vector<8x8xf32>, vector<8x8xf32> -> vector<8x8xf32>
    %c8_73 = arith.constant 8 : index
    %c0_74 = arith.constant 0 : index
    %141 = vector.load %arg21[%c8_73, %c0_74] : memref<16x32xf32, #tpu.memory_space<vmem>>, vector<8x8xf32>
    tpu.vector_store %arg21[%c8_73, %c0_74], %140 {strides = array<i32>} : memref<16x32xf32, #tpu.memory_space<vmem>>, vector<8x8xf32>,
    %c8_75 = arith.constant 8 : index
    %c8_76 = arith.constant 8 : index
    %142 = vector.load %arg20[%c8_75, %c8_76] : memref<16x96xf32, #tpu.memory_space<vmem>>, vector<8x8xf32>
    %c8_77 = arith.constant 8 : index
    %c40_78 = arith.constant 40 : index
    %143 = vector.load %arg20[%c8_77, %c40_78] : memref<16x96xf32, #tpu.memory_space<vmem>>, vector<8x8xf32>
    %c8_79 = arith.constant 8 : index
    %c72_80 = arith.constant 72 : index
    %144 = vector.load %arg20[%c8_79, %c72_80] : memref<16x96xf32, #tpu.memory_space<vmem>>, vector<8x8xf32>
    %145 = tpu.transpose %143, [1, 0] : vector<8x8xf32> -> vector<8x8xf32>
    %cst_81 = arith.constant dense<0.000000e+00> : vector<8x8xf32>
    %146 = tpu.matmul %142, %145, %cst_81 {dimension_numbers = #tpu.dot_dimension_numbers<[1], [0], [0], [1], [0, 0, 1, 1], [], []>} : vector<8x8xf32>, vector<8x8xf32>, vector<8x8xf32> -> vector<8x8xf32>
    %cst_82 = arith.constant 0.353553385 : f32
    %147 = vector.broadcast %cst_82 : f32 to vector<8x8xf32>
    %148 = arith.mulf %146, %147 : vector<8x8xf32>
    %149 = vector.broadcast %120 : vector<1x8xf32> to vector<8x8xf32>
    %150 = arith.addf %148, %149 : vector<8x8xf32>
    %cst_83 = arith.constant dense<0xFF800000> : vector<8xf32>
    %151 = vector.multi_reduction <maximumf>, %150, %cst_83 [1] : vector<8x8xf32> to vector<8xf32>
    %152 = vector.shape_cast %151 : vector<8xf32> to vector<8x1xf32>
    %153 = vector.broadcast %152 : vector<8x1xf32> to vector<8x8xf32>
    %154 = arith.subf %150, %153 : vector<8x8xf32>
    %155 = math.exp %154 : vector<8x8xf32>
    %cst_84 = arith.constant dense<0.000000e+00> : vector<8xf32>
    %156 = vector.multi_reduction <add>, %155, %cst_84 [1] : vector<8x8xf32> to vector<8xf32>
    %157 = vector.shape_cast %156 : vector<8xf32> to vector<8x1xf32>
    %158 = tpu.reciprocal %157 {approx = true} : vector<8x1xf32> -> vector<8x1xf32>
    %159 = vector.broadcast %158 : vector<8x1xf32> to vector<8x8xf32>
    %160 = arith.mulf %155, %159 : vector<8x8xf32>
    %cst_85 = arith.constant dense<0.000000e+00> : vector<8x8xf32>
    %161 = tpu.matmul %160, %144, %cst_85 {dimension_numbers = #tpu.dot_dimension_numbers<[1], [0], [0], [1], [0, 0, 1, 1], [], []>} : vector<8x8xf32>, vector<8x8xf32>, vector<8x8xf32> -> vector<8x8xf32>
    %c8_86 = arith.constant 8 : index
    %c8_87 = arith.constant 8 : index
    %162 = vector.load %arg21[%c8_86, %c8_87] : memref<16x32xf32, #tpu.memory_space<vmem>>, vector<8x8xf32>
    tpu.vector_store %arg21[%c8_86, %c8_87], %161 {strides = array<i32>} : memref<16x32xf32, #tpu.memory_space<vmem>>, vector<8x8xf32>,
    %c8_88 = arith.constant 8 : index
    %c16_89 = arith.constant 16 : index
    %163 = vector.load %arg20[%c8_88, %c16_89] : memref<16x96xf32, #tpu.memory_space<vmem>>, vector<8x8xf32>
    %c8_90 = arith.constant 8 : index
    %c48_91 = arith.constant 48 : index
    %164 = vector.load %arg20[%c8_90, %c48_91] : memref<16x96xf32, #tpu.memory_space<vmem>>, vector<8x8xf32>
    %c8_92 = arith.constant 8 : index
    %c80_93 = arith.constant 80 : index
    %165 = vector.load %arg20[%c8_92, %c80_93] : memref<16x96xf32, #tpu.memory_space<vmem>>, vector<8x8xf32>
    %166 = tpu.transpose %164, [1, 0] : vector<8x8xf32> -> vector<8x8xf32>
    %cst_94 = arith.constant dense<0.000000e+00> : vector<8x8xf32>
    %167 = tpu.matmul %163, %166, %cst_94 {dimension_numbers = #tpu.dot_dimension_numbers<[1], [0], [0], [1], [0, 0, 1, 1], [], []>} : vector<8x8xf32>, vector<8x8xf32>, vector<8x8xf32> -> vector<8x8xf32>
    %cst_95 = arith.constant 0.353553385 : f32
    %168 = vector.broadcast %cst_95 : f32 to vector<8x8xf32>
    %169 = arith.mulf %167, %168 : vector<8x8xf32>
    %170 = vector.broadcast %120 : vector<1x8xf32> to vector<8x8xf32>
    %171 = arith.addf %169, %170 : vector<8x8xf32>
    %cst_96 = arith.constant dense<0xFF800000> : vector<8xf32>
    %172 = vector.multi_reduction <maximumf>, %171, %cst_96 [1] : vector<8x8xf32> to vector<8xf32>
    %173 = vector.shape_cast %172 : vector<8xf32> to vector<8x1xf32>
    %174 = vector.broadcast %173 : vector<8x1xf32> to vector<8x8xf32>
    %175 = arith.subf %171, %174 : vector<8x8xf32>
    %176 = math.exp %175 : vector<8x8xf32>
    %cst_97 = arith.constant dense<0.000000e+00> : vector<8xf32>
    %177 = vector.multi_reduction <add>, %176, %cst_97 [1] : vector<8x8xf32> to vector<8xf32>
    %178 = vector.shape_cast %177 : vector<8xf32> to vector<8x1xf32>
    %179 = tpu.reciprocal %178 {approx = true} : vector<8x1xf32> -> vector<8x1xf32>
    %180 = vector.broadcast %179 : vector<8x1xf32> to vector<8x8xf32>
    %181 = arith.mulf %176, %180 : vector<8x8xf32>
    %cst_98 = arith.constant dense<0.000000e+00> : vector<8x8xf32>
    %182 = tpu.matmul %181, %165, %cst_98 {dimension_numbers = #tpu.dot_dimension_numbers<[1], [0], [0], [1], [0, 0, 1, 1], [], []>} : vector<8x8xf32>, vector<8x8xf32>, vector<8x8xf32> -> vector<8x8xf32>
    %c8_99 = arith.constant 8 : index
    %c16_100 = arith.constant 16 : index
    %183 = vector.load %arg21[%c8_99, %c16_100] : memref<16x32xf32, #tpu.memory_space<vmem>>, vector<8x8xf32>
    tpu.vector_store %arg21[%c8_99, %c16_100], %182 {strides = array<i32>} : memref<16x32xf32, #tpu.memory_space<vmem>>, vector<8x8xf32>,
    %c8_101 = arith.constant 8 : index
    %c24_102 = arith.constant 24 : index
    %184 = vector.load %arg20[%c8_101, %c24_102] : memref<16x96xf32, #tpu.memory_space<vmem>>, vector<8x8xf32>
    %c8_103 = arith.constant 8 : index
    %c56_104 = arith.constant 56 : index
    %185 = vector.load %arg20[%c8_103, %c56_104] : memref<16x96xf32, #tpu.memory_space<vmem>>, vector<8x8xf32>
    %c8_105 = arith.constant 8 : index
    %c88_106 = arith.constant 88 : index
    %186 = vector.load %arg20[%c8_105, %c88_106] : memref<16x96xf32, #tpu.memory_space<vmem>>, vector<8x8xf32>
    %187 = tpu.transpose %185, [1, 0] : vector<8x8xf32> -> vector<8x8xf32>
    %cst_107 = arith.constant dense<0.000000e+00> : vector<8x8xf32>
    %188 = tpu.matmul %184, %187, %cst_107 {dimension_numbers = #tpu.dot_dimension_numbers<[1], [0], [0], [1], [0, 0, 1, 1], [], []>} : vector<8x8xf32>, vector<8x8xf32>, vector<8x8xf32> -> vector<8x8xf32>
    %cst_108 = arith.constant 0.353553385 : f32
    %189 = vector.broadcast %cst_108 : f32 to vector<8x8xf32>
    %190 = arith.mulf %188, %189 : vector<8x8xf32>
    %191 = vector.broadcast %120 : vector<1x8xf32> to vector<8x8xf32>
    %192 = arith.addf %190, %191 : vector<8x8xf32>
    %cst_109 = arith.constant dense<0xFF800000> : vector<8xf32>
    %193 = vector.multi_reduction <maximumf>, %192, %cst_109 [1] : vector<8x8xf32> to vector<8xf32>
    %194 = vector.shape_cast %193 : vector<8xf32> to vector<8x1xf32>
    %195 = vector.broadcast %194 : vector<8x1xf32> to vector<8x8xf32>
    %196 = arith.subf %192, %195 : vector<8x8xf32>
    %197 = math.exp %196 : vector<8x8xf32>
    %cst_110 = arith.constant dense<0.000000e+00> : vector<8xf32>
    %198 = vector.multi_reduction <add>, %197, %cst_110 [1] : vector<8x8xf32> to vector<8xf32>
    %199 = vector.shape_cast %198 : vector<8xf32> to vector<8x1xf32>
    %200 = tpu.reciprocal %199 {approx = true} : vector<8x1xf32> -> vector<8x1xf32>
    %201 = vector.broadcast %200 : vector<8x1xf32> to vector<8x8xf32>
    %202 = arith.mulf %197, %201 : vector<8x8xf32>
    %cst_111 = arith.constant dense<0.000000e+00> : vector<8x8xf32>
    %203 = tpu.matmul %202, %186, %cst_111 {dimension_numbers = #tpu.dot_dimension_numbers<[1], [0], [0], [1], [0, 0, 1, 1], [], []>} : vector<8x8xf32>, vector<8x8xf32>, vector<8x8xf32> -> vector<8x8xf32>
    %c8_112 = arith.constant 8 : index
    %c24_113 = arith.constant 24 : index
    %204 = vector.load %arg21[%c8_112, %c24_113] : memref<16x32xf32, #tpu.memory_space<vmem>>, vector<8x8xf32>
    tpu.vector_store %arg21[%c8_112, %c24_113], %203 {strides = array<i32>} : memref<16x32xf32, #tpu.memory_space<vmem>>, vector<8x8xf32>,
    %c0_114 = arith.constant 0 : index
    %c0_115 = arith.constant 0 : index
    %205 = vector.load %arg21[%c0_114, %c0_115] : memref<16x32xf32, #tpu.memory_space<vmem>>, vector<16x32xf32>
    %c0_116 = arith.constant 0 : index
    %c0_117 = arith.constant 0 : index
    %c0_118 = arith.constant 0 : index
    %206 = vector.load %arg6[%c0_116, %c0_117, %c0_118] : memref<2x32x32xf32, #tpu.memory_space<vmem>>, vector<1x32x32xf32>
    %207 = vector.shape_cast %206 : vector<1x32x32xf32> to vector<32x32xf32>
    %cst_119 = arith.constant dense<0.000000e+00> : vector<16x32xf32>
    %208 = tpu.matmul %205, %207, %cst_119 {dimension_numbers = #tpu.dot_dimension_numbers<[1], [0], [0], [1], [0, 0, 1, 1], [], []>} : vector<16x32xf32>, vector<32x32xf32>, vector<16x32xf32> -> vector<16x32xf32>
    %c0_120 = arith.constant 0 : index
    %c0_121 = arith.constant 0 : index
    %c0_122 = arith.constant 0 : index
    %209 = vector.load %arg7[%c0_120, %c0_121, %c0_122] : memref<2x1x32xf32, #tpu.memory_space<vmem>>, vector<1x1x32xf32>
    %210 = vector.shape_cast %209 : vector<1x1x32xf32> to vector<1x32xf32>
    %211 = vector.broadcast %210 : vector<1x32xf32> to vector<16x32xf32>
    %212 = arith.addf %208, %211 : vector<16x32xf32>
    %213 = arith.addf %212, %26 : vector<16x32xf32>
    %c0_123 = arith.constant 0 : index
    %c0_124 = arith.constant 0 : index
    %c0_125 = arith.constant 0 : index
    %214 = vector.load %arg8[%c0_123, %c0_124, %c0_125] : memref<2x1x32xf32, #tpu.memory_space<vmem>>, vector<1x1x32xf32>
    %215 = vector.shape_cast %214 : vector<1x1x32xf32> to vector<1x32xf32>
    %c0_126 = arith.constant 0 : index
    %c0_127 = arith.constant 0 : index
    %c0_128 = arith.constant 0 : index
    %216 = vector.load %arg9[%c0_126, %c0_127, %c0_128] : memref<2x1x32xf32, #tpu.memory_space<vmem>>, vector<1x1x32xf32>
    %217 = vector.shape_cast %216 : vector<1x1x32xf32> to vector<1x32xf32>
    %cst_129 = arith.constant dense<0.000000e+00> : vector<16xf32>
    %218 = vector.multi_reduction <add>, %213, %cst_129 [1] : vector<16x32xf32> to vector<16xf32>
    %219 = vector.shape_cast %218 : vector<16xf32> to vector<16x1xf32>
    %cst_130 = arith.constant 3.200000e+01 : f32
    %220 = vector.broadcast %cst_130 : f32 to vector<16x1xf32>
    %221 = arith.divf %219, %220 : vector<16x1xf32>
    %222 = vector.broadcast %221 : vector<16x1xf32> to vector<16x32xf32>
    %223 = arith.subf %213, %222 : vector<16x32xf32>
    %224 = vector.broadcast %221 : vector<16x1xf32> to vector<16x32xf32>
    %225 = arith.subf %213, %224 : vector<16x32xf32>
    %226 = arith.mulf %223, %225 : vector<16x32xf32>
    %cst_131 = arith.constant dense<0.000000e+00> : vector<16xf32>
    %227 = vector.multi_reduction <add>, %226, %cst_131 [1] : vector<16x32xf32> to vector<16xf32>
    %228 = vector.shape_cast %227 : vector<16xf32> to vector<16x1xf32>
    %cst_132 = arith.constant 3.200000e+01 : f32
    %229 = vector.broadcast %cst_132 : f32 to vector<16x1xf32>
    %230 = arith.divf %228, %229 : vector<16x1xf32>
    %231 = vector.broadcast %221 : vector<16x1xf32> to vector<16x32xf32>
    %232 = arith.subf %213, %231 : vector<16x32xf32>
    %cst_133 = arith.constant 9.99999996E-13 : f32
    %233 = vector.broadcast %cst_133 : f32 to vector<16x1xf32>
    %234 = arith.addf %230, %233 : vector<16x1xf32>
    %235 = math.rsqrt %234 : vector<16x1xf32>
    %236 = vector.broadcast %235 : vector<16x1xf32> to vector<16x32xf32>
    %237 = arith.mulf %232, %236 : vector<16x32xf32>
    %238 = vector.broadcast %215 : vector<1x32xf32> to vector<16x32xf32>
    %239 = arith.mulf %237, %238 : vector<16x32xf32>
    %240 = vector.broadcast %217 : vector<1x32xf32> to vector<16x32xf32>
    %241 = arith.addf %239, %240 : vector<16x32xf32>
    %c0_134 = arith.constant 0 : index
    %c0_135 = arith.constant 0 : index
    %c0_136 = arith.constant 0 : index
    %242 = vector.load %arg10[%c0_134, %c0_135, %c0_136] : memref<2x32x64xf32, #tpu.memory_space<vmem>>, vector<1x32x64xf32>
    %243 = vector.shape_cast %242 : vector<1x32x64xf32> to vector<32x64xf32>
    %cst_137 = arith.constant dense<0.000000e+00> : vector<16x64xf32>
    %244 = tpu.matmul %241, %243, %cst_137 {dimension_numbers = #tpu.dot_dimension_numbers<[1], [0], [0], [1], [0, 0, 1, 1], [], []>} : vector<16x32xf32>, vector<32x64xf32>, vector<16x64xf32> -> vector<16x64xf32>
    %c0_138 = arith.constant 0 : index
    %c0_139 = arith.constant 0 : index
    %c0_140 = arith.constant 0 : index
    %245 = vector.load %arg11[%c0_138, %c0_139, %c0_140] : memref<2x1x64xf32, #tpu.memory_space<vmem>>, vector<1x1x64xf32>
    %246 = vector.shape_cast %245 : vector<1x1x64xf32> to vector<1x64xf32>
    %247 = vector.broadcast %246 : vector<1x64xf32> to vector<16x64xf32>
    %248 = arith.addf %244, %247 : vector<16x64xf32>
    %cst_141 = arith.constant 5.000000e-01 : f32
    %249 = vector.broadcast %cst_141 : f32 to vector<16x64xf32>
    %250 = arith.mulf %249, %248 : vector<16x64xf32>
    %cst_142 = arith.constant 0.707106769 : f32
    %251 = vector.broadcast %cst_142 : f32 to vector<16x64xf32>
    %252 = arith.mulf %248, %251 : vector<16x64xf32>
    %253 = math.erf %252 : vector<16x64xf32>
    %cst_143 = arith.constant 1.000000e+00 : f32
    %254 = vector.broadcast %cst_143 : f32 to vector<16x64xf32>
    %255 = arith.addf %254, %253 : vector<16x64xf32>
    %256 = arith.mulf %250, %255 : vector<16x64xf32>
    %c0_144 = arith.constant 0 : index
    %c0_145 = arith.constant 0 : index
    %c0_146 = arith.constant 0 : index
    %257 = vector.load %arg12[%c0_144, %c0_145, %c0_146] : memref<2x64x32xf32, #tpu.memory_space<vmem>>, vector<1x64x32xf32>
    %258 = vector.shape_cast %257 : vector<1x64x32xf32> to vector<64x32xf32>
    %cst_147 = arith.constant dense<0.000000e+00> : vector<16x32xf32>
    %259 = tpu.matmul %256, %258, %cst_147 {dimension_numbers = #tpu.dot_dimension_numbers<[1], [0], [0], [1], [0, 0, 1, 1], [], []>} : vector<16x64xf32>, vector<64x32xf32>, vector<16x32xf32> -> vector<16x32xf32>
    %c0_148 = arith.constant 0 : index
    %c0_149 = arith.constant 0 : index
    %c0_150 = arith.constant 0 : index
    %260 = vector.load %arg13[%c0_148, %c0_149, %c0_150] : memref<2x1x32xf32, #tpu.memory_space<vmem>>, vector<1x1x32xf32>
    %261 = vector.shape_cast %260 : vector<1x1x32xf32> to vector<1x32xf32>
    %262 = vector.broadcast %261 : vector<1x32xf32> to vector<16x32xf32>
    %263 = arith.addf %259, %262 : vector<16x32xf32>
    %264 = arith.addf %263, %241 : vector<16x32xf32>
    %c0_151 = arith.constant 0 : index
    %c0_152 = arith.constant 0 : index
    %c0_153 = arith.constant 0 : index
    %265 = vector.load %arg14[%c0_151, %c0_152, %c0_153] : memref<2x1x32xf32, #tpu.memory_space<vmem>>, vector<1x1x32xf32>
    %266 = vector.shape_cast %265 : vector<1x1x32xf32> to vector<1x32xf32>
    %c0_154 = arith.constant 0 : index
    %c0_155 = arith.constant 0 : index
    %c0_156 = arith.constant 0 : index
    %267 = vector.load %arg15[%c0_154, %c0_155, %c0_156] : memref<2x1x32xf32, #tpu.memory_space<vmem>>, vector<1x1x32xf32>
    %268 = vector.shape_cast %267 : vector<1x1x32xf32> to vector<1x32xf32>
    %cst_157 = arith.constant dense<0.000000e+00> : vector<16xf32>
    %269 = vector.multi_reduction <add>, %264, %cst_157 [1] : vector<16x32xf32> to vector<16xf32>
    %270 = vector.shape_cast %269 : vector<16xf32> to vector<16x1xf32>
    %cst_158 = arith.constant 3.200000e+01 : f32
    %271 = vector.broadcast %cst_158 : f32 to vector<16x1xf32>
    %272 = arith.divf %270, %271 : vector<16x1xf32>
    %273 = vector.broadcast %272 : vector<16x1xf32> to vector<16x32xf32>
    %274 = arith.subf %264, %273 : vector<16x32xf32>
    %275 = vector.broadcast %272 : vector<16x1xf32> to vector<16x32xf32>
    %276 = arith.subf %264, %275 : vector<16x32xf32>
    %277 = arith.mulf %274, %276 : vector<16x32xf32>
    %cst_159 = arith.constant dense<0.000000e+00> : vector<16xf32>
    %278 = vector.multi_reduction <add>, %277, %cst_159 [1] : vector<16x32xf32> to vector<16xf32>
    %279 = vector.shape_cast %278 : vector<16xf32> to vector<16x1xf32>
    %cst_160 = arith.constant 3.200000e+01 : f32
    %280 = vector.broadcast %cst_160 : f32 to vector<16x1xf32>
    %281 = arith.divf %279, %280 : vector<16x1xf32>
    %282 = vector.broadcast %272 : vector<16x1xf32> to vector<16x32xf32>
    %283 = arith.subf %264, %282 : vector<16x32xf32>
    %cst_161 = arith.constant 9.99999996E-13 : f32
    %284 = vector.broadcast %cst_161 : f32 to vector<16x1xf32>
    %285 = arith.addf %281, %284 : vector<16x1xf32>
    %286 = math.rsqrt %285 : vector<16x1xf32>
    %287 = vector.broadcast %286 : vector<16x1xf32> to vector<16x32xf32>
    %288 = arith.mulf %283, %287 : vector<16x32xf32>
    %289 = vector.broadcast %266 : vector<1x32xf32> to vector<16x32xf32>
    %290 = arith.mulf %288, %289 : vector<16x32xf32>
    %291 = vector.broadcast %268 : vector<1x32xf32> to vector<16x32xf32>
    %292 = arith.addf %290, %291 : vector<16x32xf32>
    %c1_162 = arith.constant 1 : index
    %c0_163 = arith.constant 0 : index
    %c0_164 = arith.constant 0 : index
    %293 = vector.load %arg4[%c1_162, %c0_163, %c0_164] : memref<2x32x96xf32, #tpu.memory_space<vmem>>, vector<1x32x96xf32>
    %294 = vector.shape_cast %293 : vector<1x32x96xf32> to vector<32x96xf32>
    %cst_165 = arith.constant dense<0.000000e+00> : vector<16x96xf32>
    %295 = tpu.matmul %292, %294, %cst_165 {dimension_numbers = #tpu.dot_dimension_numbers<[1], [0], [0], [1], [0, 0, 1, 1], [], []>} : vector<16x32xf32>, vector<32x96xf32>, vector<16x96xf32> -> vector<16x96xf32>
    %c1_166 = arith.constant 1 : index
    %c0_167 = arith.constant 0 : index
    %c0_168 = arith.constant 0 : index
    %296 = vector.load %arg5[%c1_166, %c0_167, %c0_168] : memref<2x1x96xf32, #tpu.memory_space<vmem>>, vector<1x1x96xf32>
    %297 = vector.shape_cast %296 : vector<1x1x96xf32> to vector<1x96xf32>
    %298 = vector.broadcast %297 : vector<1x96xf32> to vector<16x96xf32>
    %299 = arith.addf %295, %298 : vector<16x96xf32>
    %c0_169 = arith.constant 0 : index
    %c0_170 = arith.constant 0 : index
    %300 = vector.load %arg20[%c0_169, %c0_170] : memref<16x96xf32, #tpu.memory_space<vmem>>, vector<16x96xf32>
    tpu.vector_store %arg20[%c0_169, %c0_170], %299 {strides = array<i32>} : memref<16x96xf32, #tpu.memory_space<vmem>>, vector<16x96xf32>,
    %c0_171 = arith.constant 0 : index
    %c0_172 = arith.constant 0 : index
    %301 = vector.load %arg1[%c0_171, %c0_172] : memref<2x8xf32, #tpu.memory_space<vmem>>, vector<1x8xf32>
    %c0_173 = arith.constant 0 : index
    %c0_174 = arith.constant 0 : index
    %302 = vector.load %arg20[%c0_173, %c0_174] : memref<16x96xf32, #tpu.memory_space<vmem>>, vector<8x8xf32>
    %c0_175 = arith.constant 0 : index
    %c32_176 = arith.constant 32 : index
    %303 = vector.load %arg20[%c0_175, %c32_176] : memref<16x96xf32, #tpu.memory_space<vmem>>, vector<8x8xf32>
    %c0_177 = arith.constant 0 : index
    %c64_178 = arith.constant 64 : index
    %304 = vector.load %arg20[%c0_177, %c64_178] : memref<16x96xf32, #tpu.memory_space<vmem>>, vector<8x8xf32>
    %305 = tpu.transpose %303, [1, 0] : vector<8x8xf32> -> vector<8x8xf32>
    %cst_179 = arith.constant dense<0.000000e+00> : vector<8x8xf32>
    %306 = tpu.matmul %302, %305, %cst_179 {dimension_numbers = #tpu.dot_dimension_numbers<[1], [0], [0], [1], [0, 0, 1, 1], [], []>} : vector<8x8xf32>, vector<8x8xf32>, vector<8x8xf32> -> vector<8x8xf32>
    %cst_180 = arith.constant 0.353553385 : f32
    %307 = vector.broadcast %cst_180 : f32 to vector<8x8xf32>
    %308 = arith.mulf %306, %307 : vector<8x8xf32>
    %309 = vector.broadcast %301 : vector<1x8xf32> to vector<8x8xf32>
    %310 = arith.addf %308, %309 : vector<8x8xf32>
    %cst_181 = arith.constant dense<0xFF800000> : vector<8xf32>
    %311 = vector.multi_reduction <maximumf>, %310, %cst_181 [1] : vector<8x8xf32> to vector<8xf32>
    %312 = vector.shape_cast %311 : vector<8xf32> to vector<8x1xf32>
    %313 = vector.broadcast %312 : vector<8x1xf32> to vector<8x8xf32>
    %314 = arith.subf %310, %313 : vector<8x8xf32>
    %315 = math.exp %314 : vector<8x8xf32>
    %cst_182 = arith.constant dense<0.000000e+00> : vector<8xf32>
    %316 = vector.multi_reduction <add>, %315, %cst_182 [1] : vector<8x8xf32> to vector<8xf32>
    %317 = vector.shape_cast %316 : vector<8xf32> to vector<8x1xf32>
    %318 = tpu.reciprocal %317 {approx = true} : vector<8x1xf32> -> vector<8x1xf32>
    %319 = vector.broadcast %318 : vector<8x1xf32> to vector<8x8xf32>
    %320 = arith.mulf %315, %319 : vector<8x8xf32>
    %cst_183 = arith.constant dense<0.000000e+00> : vector<8x8xf32>
    %321 = tpu.matmul %320, %304, %cst_183 {dimension_numbers = #tpu.dot_dimension_numbers<[1], [0], [0], [1], [0, 0, 1, 1], [], []>} : vector<8x8xf32>, vector<8x8xf32>, vector<8x8xf32> -> vector<8x8xf32>
    %c0_184 = arith.constant 0 : index
    %c0_185 = arith.constant 0 : index
    %322 = vector.load %arg21[%c0_184, %c0_185] : memref<16x32xf32, #tpu.memory_space<vmem>>, vector<8x8xf32>
    tpu.vector_store %arg21[%c0_184, %c0_185], %321 {strides = array<i32>} : memref<16x32xf32, #tpu.memory_space<vmem>>, vector<8x8xf32>,
    %c0_186 = arith.constant 0 : index
    %c8_187 = arith.constant 8 : index
    %323 = vector.load %arg20[%c0_186, %c8_187] : memref<16x96xf32, #tpu.memory_space<vmem>>, vector<8x8xf32>
    %c0_188 = arith.constant 0 : index
    %c40_189 = arith.constant 40 : index
    %324 = vector.load %arg20[%c0_188, %c40_189] : memref<16x96xf32, #tpu.memory_space<vmem>>, vector<8x8xf32>
    %c0_190 = arith.constant 0 : index
    %c72_191 = arith.constant 72 : index
    %325 = vector.load %arg20[%c0_190, %c72_191] : memref<16x96xf32, #tpu.memory_space<vmem>>, vector<8x8xf32>
    %326 = tpu.transpose %324, [1, 0] : vector<8x8xf32> -> vector<8x8xf32>
    %cst_192 = arith.constant dense<0.000000e+00> : vector<8x8xf32>
    %327 = tpu.matmul %323, %326, %cst_192 {dimension_numbers = #tpu.dot_dimension_numbers<[1], [0], [0], [1], [0, 0, 1, 1], [], []>} : vector<8x8xf32>, vector<8x8xf32>, vector<8x8xf32> -> vector<8x8xf32>
    %cst_193 = arith.constant 0.353553385 : f32
    %328 = vector.broadcast %cst_193 : f32 to vector<8x8xf32>
    %329 = arith.mulf %327, %328 : vector<8x8xf32>
    %330 = vector.broadcast %301 : vector<1x8xf32> to vector<8x8xf32>
    %331 = arith.addf %329, %330 : vector<8x8xf32>
    %cst_194 = arith.constant dense<0xFF800000> : vector<8xf32>
    %332 = vector.multi_reduction <maximumf>, %331, %cst_194 [1] : vector<8x8xf32> to vector<8xf32>
    %333 = vector.shape_cast %332 : vector<8xf32> to vector<8x1xf32>
    %334 = vector.broadcast %333 : vector<8x1xf32> to vector<8x8xf32>
    %335 = arith.subf %331, %334 : vector<8x8xf32>
    %336 = math.exp %335 : vector<8x8xf32>
    %cst_195 = arith.constant dense<0.000000e+00> : vector<8xf32>
    %337 = vector.multi_reduction <add>, %336, %cst_195 [1] : vector<8x8xf32> to vector<8xf32>
    %338 = vector.shape_cast %337 : vector<8xf32> to vector<8x1xf32>
    %339 = tpu.reciprocal %338 {approx = true} : vector<8x1xf32> -> vector<8x1xf32>
    %340 = vector.broadcast %339 : vector<8x1xf32> to vector<8x8xf32>
    %341 = arith.mulf %336, %340 : vector<8x8xf32>
    %cst_196 = arith.constant dense<0.000000e+00> : vector<8x8xf32>
    %342 = tpu.matmul %341, %325, %cst_196 {dimension_numbers = #tpu.dot_dimension_numbers<[1], [0], [0], [1], [0, 0, 1, 1], [], []>} : vector<8x8xf32>, vector<8x8xf32>, vector<8x8xf32> -> vector<8x8xf32>
    %c0_197 = arith.constant 0 : index
    %c8_198 = arith.constant 8 : index
    %343 = vector.load %arg21[%c0_197, %c8_198] : memref<16x32xf32, #tpu.memory_space<vmem>>, vector<8x8xf32>
    tpu.vector_store %arg21[%c0_197, %c8_198], %342 {strides = array<i32>} : memref<16x32xf32, #tpu.memory_space<vmem>>, vector<8x8xf32>,
    %c0_199 = arith.constant 0 : index
    %c16_200 = arith.constant 16 : index
    %344 = vector.load %arg20[%c0_199, %c16_200] : memref<16x96xf32, #tpu.memory_space<vmem>>, vector<8x8xf32>
    %c0_201 = arith.constant 0 : index
    %c48_202 = arith.constant 48 : index
    %345 = vector.load %arg20[%c0_201, %c48_202] : memref<16x96xf32, #tpu.memory_space<vmem>>, vector<8x8xf32>
    %c0_203 = arith.constant 0 : index
    %c80_204 = arith.constant 80 : index
    %346 = vector.load %arg20[%c0_203, %c80_204] : memref<16x96xf32, #tpu.memory_space<vmem>>, vector<8x8xf32>
    %347 = tpu.transpose %345, [1, 0] : vector<8x8xf32> -> vector<8x8xf32>
    %cst_205 = arith.constant dense<0.000000e+00> : vector<8x8xf32>
    %348 = tpu.matmul %344, %347, %cst_205 {dimension_numbers = #tpu.dot_dimension_numbers<[1], [0], [0], [1], [0, 0, 1, 1], [], []>} : vector<8x8xf32>, vector<8x8xf32>, vector<8x8xf32> -> vector<8x8xf32>
    %cst_206 = arith.constant 0.353553385 : f32
    %349 = vector.broadcast %cst_206 : f32 to vector<8x8xf32>
    %350 = arith.mulf %348, %349 : vector<8x8xf32>
    %351 = vector.broadcast %301 : vector<1x8xf32> to vector<8x8xf32>
    %352 = arith.addf %350, %351 : vector<8x8xf32>
    %cst_207 = arith.constant dense<0xFF800000> : vector<8xf32>
    %353 = vector.multi_reduction <maximumf>, %352, %cst_207 [1] : vector<8x8xf32> to vector<8xf32>
    %354 = vector.shape_cast %353 : vector<8xf32> to vector<8x1xf32>
    %355 = vector.broadcast %354 : vector<8x1xf32> to vector<8x8xf32>
    %356 = arith.subf %352, %355 : vector<8x8xf32>
    %357 = math.exp %356 : vector<8x8xf32>
    %cst_208 = arith.constant dense<0.000000e+00> : vector<8xf32>
    %358 = vector.multi_reduction <add>, %357, %cst_208 [1] : vector<8x8xf32> to vector<8xf32>
    %359 = vector.shape_cast %358 : vector<8xf32> to vector<8x1xf32>
    %360 = tpu.reciprocal %359 {approx = true} : vector<8x1xf32> -> vector<8x1xf32>
    %361 = vector.broadcast %360 : vector<8x1xf32> to vector<8x8xf32>
    %362 = arith.mulf %357, %361 : vector<8x8xf32>
    %cst_209 = arith.constant dense<0.000000e+00> : vector<8x8xf32>
    %363 = tpu.matmul %362, %346, %cst_209 {dimension_numbers = #tpu.dot_dimension_numbers<[1], [0], [0], [1], [0, 0, 1, 1], [], []>} : vector<8x8xf32>, vector<8x8xf32>, vector<8x8xf32> -> vector<8x8xf32>
    %c0_210 = arith.constant 0 : index
    %c16_211 = arith.constant 16 : index
    %364 = vector.load %arg21[%c0_210, %c16_211] : memref<16x32xf32, #tpu.memory_space<vmem>>, vector<8x8xf32>
    tpu.vector_store %arg21[%c0_210, %c16_211], %363 {strides = array<i32>} : memref<16x32xf32, #tpu.memory_space<vmem>>, vector<8x8xf32>,
    %c0_212 = arith.constant 0 : index
    %c24_213 = arith.constant 24 : index
    %365 = vector.load %arg20[%c0_212, %c24_213] : memref<16x96xf32, #tpu.memory_space<vmem>>, vector<8x8xf32>
    %c0_214 = arith.constant 0 : index
    %c56_215 = arith.constant 56 : index
    %366 = vector.load %arg20[%c0_214, %c56_215] : memref<16x96xf32, #tpu.memory_space<vmem>>, vector<8x8xf32>
    %c0_216 = arith.constant 0 : index
    %c88_217 = arith.constant 88 : index
    %367 = vector.load %arg20[%c0_216, %c88_217] : memref<16x96xf32, #tpu.memory_space<vmem>>, vector<8x8xf32>
    %368 = tpu.transpose %366, [1, 0] : vector<8x8xf32> -> vector<8x8xf32>
    %cst_218 = arith.constant dense<0.000000e+00> : vector<8x8xf32>
    %369 = tpu.matmul %365, %368, %cst_218 {dimension_numbers = #tpu.dot_dimension_numbers<[1], [0], [0], [1], [0, 0, 1, 1], [], []>} : vector<8x8xf32>, vector<8x8xf32>, vector<8x8xf32> -> vector<8x8xf32>
    %cst_219 = arith.constant 0.353553385 : f32
    %370 = vector.broadcast %cst_219 : f32 to vector<8x8xf32>
    %371 = arith.mulf %369, %370 : vector<8x8xf32>
    %372 = vector.broadcast %301 : vector<1x8xf32> to vector<8x8xf32>
    %373 = arith.addf %371, %372 : vector<8x8xf32>
    %cst_220 = arith.constant dense<0xFF800000> : vector<8xf32>
    %374 = vector.multi_reduction <maximumf>, %373, %cst_220 [1] : vector<8x8xf32> to vector<8xf32>
    %375 = vector.shape_cast %374 : vector<8xf32> to vector<8x1xf32>
    %376 = vector.broadcast %375 : vector<8x1xf32> to vector<8x8xf32>
    %377 = arith.subf %373, %376 : vector<8x8xf32>
    %378 = math.exp %377 : vector<8x8xf32>
    %cst_221 = arith.constant dense<0.000000e+00> : vector<8xf32>
    %379 = vector.multi_reduction <add>, %378, %cst_221 [1] : vector<8x8xf32> to vector<8xf32>
    %380 = vector.shape_cast %379 : vector<8xf32> to vector<8x1xf32>
    %381 = tpu.reciprocal %380 {approx = true} : vector<8x1xf32> -> vector<8x1xf32>
    %382 = vector.broadcast %381 : vector<8x1xf32> to vector<8x8xf32>
    %383 = arith.mulf %378, %382 : vector<8x8xf32>
    %cst_222 = arith.constant dense<0.000000e+00> : vector<8x8xf32>
    %384 = tpu.matmul %383, %367, %cst_222 {dimension_numbers = #tpu.dot_dimension_numbers<[1], [0], [0], [1], [0, 0, 1, 1], [], []>} : vector<8x8xf32>, vector<8x8xf32>, vector<8x8xf32> -> vector<8x8xf32>
    %c0_223 = arith.constant 0 : index
    %c24_224 = arith.constant 24 : index
    %385 = vector.load %arg21[%c0_223, %c24_224] : memref<16x32xf32, #tpu.memory_space<vmem>>, vector<8x8xf32>
    tpu.vector_store %arg21[%c0_223, %c24_224], %384 {strides = array<i32>} : memref<16x32xf32, #tpu.memory_space<vmem>>, vector<8x8xf32>,
    %c1_225 = arith.constant 1 : index
    %c0_226 = arith.constant 0 : index
    %386 = vector.load %arg1[%c1_225, %c0_226] : memref<2x8xf32, #tpu.memory_space<vmem>>, vector<1x8xf32>
    %c8_227 = arith.constant 8 : index
    %c0_228 = arith.constant 0 : index
    %387 = vector.load %arg20[%c8_227, %c0_228] : memref<16x96xf32, #tpu.memory_space<vmem>>, vector<8x8xf32>
    %c8_229 = arith.constant 8 : index
    %c32_230 = arith.constant 32 : index
    %388 = vector.load %arg20[%c8_229, %c32_230] : memref<16x96xf32, #tpu.memory_space<vmem>>, vector<8x8xf32>
    %c8_231 = arith.constant 8 : index
    %c64_232 = arith.constant 64 : index
    %389 = vector.load %arg20[%c8_231, %c64_232] : memref<16x96xf32, #tpu.memory_space<vmem>>, vector<8x8xf32>
    %390 = tpu.transpose %388, [1, 0] : vector<8x8xf32> -> vector<8x8xf32>
    %cst_233 = arith.constant dense<0.000000e+00> : vector<8x8xf32>
    %391 = tpu.matmul %387, %390, %cst_233 {dimension_numbers = #tpu.dot_dimension_numbers<[1], [0], [0], [1], [0, 0, 1, 1], [], []>} : vector<8x8xf32>, vector<8x8xf32>, vector<8x8xf32> -> vector<8x8xf32>
    %cst_234 = arith.constant 0.353553385 : f32
    %392 = vector.broadcast %cst_234 : f32 to vector<8x8xf32>
    %393 = arith.mulf %391, %392 : vector<8x8xf32>
    %394 = vector.broadcast %386 : vector<1x8xf32> to vector<8x8xf32>
    %395 = arith.addf %393, %394 : vector<8x8xf32>
    %cst_235 = arith.constant dense<0xFF800000> : vector<8xf32>
    %396 = vector.multi_reduction <maximumf>, %395, %cst_235 [1] : vector<8x8xf32> to vector<8xf32>
    %397 = vector.shape_cast %396 : vector<8xf32> to vector<8x1xf32>
    %398 = vector.broadcast %397 : vector<8x1xf32> to vector<8x8xf32>
    %399 = arith.subf %395, %398 : vector<8x8xf32>
    %400 = math.exp %399 : vector<8x8xf32>
    %cst_236 = arith.constant dense<0.000000e+00> : vector<8xf32>
    %401 = vector.multi_reduction <add>, %400, %cst_236 [1] : vector<8x8xf32> to vector<8xf32>
    %402 = vector.shape_cast %401 : vector<8xf32> to vector<8x1xf32>
    %403 = tpu.reciprocal %402 {approx = true} : vector<8x1xf32> -> vector<8x1xf32>
    %404 = vector.broadcast %403 : vector<8x1xf32> to vector<8x8xf32>
    %405 = arith.mulf %400, %404 : vector<8x8xf32>
    %cst_237 = arith.constant dense<0.000000e+00> : vector<8x8xf32>
    %406 = tpu.matmul %405, %389, %cst_237 {dimension_numbers = #tpu.dot_dimension_numbers<[1], [0], [0], [1], [0, 0, 1, 1], [], []>} : vector<8x8xf32>, vector<8x8xf32>, vector<8x8xf32> -> vector<8x8xf32>
    %c8_238 = arith.constant 8 : index
    %c0_239 = arith.constant 0 : index
    %407 = vector.load %arg21[%c8_238, %c0_239] : memref<16x32xf32, #tpu.memory_space<vmem>>, vector<8x8xf32>
    tpu.vector_store %arg21[%c8_238, %c0_239], %406 {strides = array<i32>} : memref<16x32xf32, #tpu.memory_space<vmem>>, vector<8x8xf32>,
    %c8_240 = arith.constant 8 : index
    %c8_241 = arith.constant 8 : index
    %408 = vector.load %arg20[%c8_240, %c8_241] : memref<16x96xf32, #tpu.memory_space<vmem>>, vector<8x8xf32>
    %c8_242 = arith.constant 8 : index
    %c40_243 = arith.constant 40 : index
    %409 = vector.load %arg20[%c8_242, %c40_243] : memref<16x96xf32, #tpu.memory_space<vmem>>, vector<8x8xf32>
    %c8_244 = arith.constant 8 : index
    %c72_245 = arith.constant 72 : index
    %410 = vector.load %arg20[%c8_244, %c72_245] : memref<16x96xf32, #tpu.memory_space<vmem>>, vector<8x8xf32>
    %411 = tpu.transpose %409, [1, 0] : vector<8x8xf32> -> vector<8x8xf32>
    %cst_246 = arith.constant dense<0.000000e+00> : vector<8x8xf32>
    %412 = tpu.matmul %408, %411, %cst_246 {dimension_numbers = #tpu.dot_dimension_numbers<[1], [0], [0], [1], [0, 0, 1, 1], [], []>} : vector<8x8xf32>, vector<8x8xf32>, vector<8x8xf32> -> vector<8x8xf32>
    %cst_247 = arith.constant 0.353553385 : f32
    %413 = vector.broadcast %cst_247 : f32 to vector<8x8xf32>
    %414 = arith.mulf %412, %413 : vector<8x8xf32>
    %415 = vector.broadcast %386 : vector<1x8xf32> to vector<8x8xf32>
    %416 = arith.addf %414, %415 : vector<8x8xf32>
    %cst_248 = arith.constant dense<0xFF800000> : vector<8xf32>
    %417 = vector.multi_reduction <maximumf>, %416, %cst_248 [1] : vector<8x8xf32> to vector<8xf32>
    %418 = vector.shape_cast %417 : vector<8xf32> to vector<8x1xf32>
    %419 = vector.broadcast %418 : vector<8x1xf32> to vector<8x8xf32>
    %420 = arith.subf %416, %419 : vector<8x8xf32>
    %421 = math.exp %420 : vector<8x8xf32>
    %cst_249 = arith.constant dense<0.000000e+00> : vector<8xf32>
    %422 = vector.multi_reduction <add>, %421, %cst_249 [1] : vector<8x8xf32> to vector<8xf32>
    %423 = vector.shape_cast %422 : vector<8xf32> to vector<8x1xf32>
    %424 = tpu.reciprocal %423 {approx = true} : vector<8x1xf32> -> vector<8x1xf32>
    %425 = vector.broadcast %424 : vector<8x1xf32> to vector<8x8xf32>
    %426 = arith.mulf %421, %425 : vector<8x8xf32>
    %cst_250 = arith.constant dense<0.000000e+00> : vector<8x8xf32>
    %427 = tpu.matmul %426, %410, %cst_250 {dimension_numbers = #tpu.dot_dimension_numbers<[1], [0], [0], [1], [0, 0, 1, 1], [], []>} : vector<8x8xf32>, vector<8x8xf32>, vector<8x8xf32> -> vector<8x8xf32>
    %c8_251 = arith.constant 8 : index
    %c8_252 = arith.constant 8 : index
    %428 = vector.load %arg21[%c8_251, %c8_252] : memref<16x32xf32, #tpu.memory_space<vmem>>, vector<8x8xf32>
    tpu.vector_store %arg21[%c8_251, %c8_252], %427 {strides = array<i32>} : memref<16x32xf32, #tpu.memory_space<vmem>>, vector<8x8xf32>,
    %c8_253 = arith.constant 8 : index
    %c16_254 = arith.constant 16 : index
    %429 = vector.load %arg20[%c8_253, %c16_254] : memref<16x96xf32, #tpu.memory_space<vmem>>, vector<8x8xf32>
    %c8_255 = arith.constant 8 : index
    %c48_256 = arith.constant 48 : index
    %430 = vector.load %arg20[%c8_255, %c48_256] : memref<16x96xf32, #tpu.memory_space<vmem>>, vector<8x8xf32>
    %c8_257 = arith.constant 8 : index
    %c80_258 = arith.constant 80 : index
    %431 = vector.load %arg20[%c8_257, %c80_258] : memref<16x96xf32, #tpu.memory_space<vmem>>, vector<8x8xf32>
    %432 = tpu.transpose %430, [1, 0] : vector<8x8xf32> -> vector<8x8xf32>
    %cst_259 = arith.constant dense<0.000000e+00> : vector<8x8xf32>
    %433 = tpu.matmul %429, %432, %cst_259 {dimension_numbers = #tpu.dot_dimension_numbers<[1], [0], [0], [1], [0, 0, 1, 1], [], []>} : vector<8x8xf32>, vector<8x8xf32>, vector<8x8xf32> -> vector<8x8xf32>
    %cst_260 = arith.constant 0.353553385 : f32
    %434 = vector.broadcast %cst_260 : f32 to vector<8x8xf32>
    %435 = arith.mulf %433, %434 : vector<8x8xf32>
    %436 = vector.broadcast %386 : vector<1x8xf32> to vector<8x8xf32>
    %437 = arith.addf %435, %436 : vector<8x8xf32>
    %cst_261 = arith.constant dense<0xFF800000> : vector<8xf32>
    %438 = vector.multi_reduction <maximumf>, %437, %cst_261 [1] : vector<8x8xf32> to vector<8xf32>
    %439 = vector.shape_cast %438 : vector<8xf32> to vector<8x1xf32>
    %440 = vector.broadcast %439 : vector<8x1xf32> to vector<8x8xf32>
    %441 = arith.subf %437, %440 : vector<8x8xf32>
    %442 = math.exp %441 : vector<8x8xf32>
    %cst_262 = arith.constant dense<0.000000e+00> : vector<8xf32>
    %443 = vector.multi_reduction <add>, %442, %cst_262 [1] : vector<8x8xf32> to vector<8xf32>
    %444 = vector.shape_cast %443 : vector<8xf32> to vector<8x1xf32>
    %445 = tpu.reciprocal %444 {approx = true} : vector<8x1xf32> -> vector<8x1xf32>
    %446 = vector.broadcast %445 : vector<8x1xf32> to vector<8x8xf32>
    %447 = arith.mulf %442, %446 : vector<8x8xf32>
    %cst_263 = arith.constant dense<0.000000e+00> : vector<8x8xf32>
    %448 = tpu.matmul %447, %431, %cst_263 {dimension_numbers = #tpu.dot_dimension_numbers<[1], [0], [0], [1], [0, 0, 1, 1], [], []>} : vector<8x8xf32>, vector<8x8xf32>, vector<8x8xf32> -> vector<8x8xf32>
    %c8_264 = arith.constant 8 : index
    %c16_265 = arith.constant 16 : index
    %449 = vector.load %arg21[%c8_264, %c16_265] : memref<16x32xf32, #tpu.memory_space<vmem>>, vector<8x8xf32>
    tpu.vector_store %arg21[%c8_264, %c16_265], %448 {strides = array<i32>} : memref<16x32xf32, #tpu.memory_space<vmem>>, vector<8x8xf32>,
    %c8_266 = arith.constant 8 : index
    %c24_267 = arith.constant 24 : index
    %450 = vector.load %arg20[%c8_266, %c24_267] : memref<16x96xf32, #tpu.memory_space<vmem>>, vector<8x8xf32>
    %c8_268 = arith.constant 8 : index
    %c56_269 = arith.constant 56 : index
    %451 = vector.load %arg20[%c8_268, %c56_269] : memref<16x96xf32, #tpu.memory_space<vmem>>, vector<8x8xf32>
    %c8_270 = arith.constant 8 : index
    %c88_271 = arith.constant 88 : index
    %452 = vector.load %arg20[%c8_270, %c88_271] : memref<16x96xf32, #tpu.memory_space<vmem>>, vector<8x8xf32>
    %453 = tpu.transpose %451, [1, 0] : vector<8x8xf32> -> vector<8x8xf32>
    %cst_272 = arith.constant dense<0.000000e+00> : vector<8x8xf32>
    %454 = tpu.matmul %450, %453, %cst_272 {dimension_numbers = #tpu.dot_dimension_numbers<[1], [0], [0], [1], [0, 0, 1, 1], [], []>} : vector<8x8xf32>, vector<8x8xf32>, vector<8x8xf32> -> vector<8x8xf32>
    %cst_273 = arith.constant 0.353553385 : f32
    %455 = vector.broadcast %cst_273 : f32 to vector<8x8xf32>
    %456 = arith.mulf %454, %455 : vector<8x8xf32>
    %457 = vector.broadcast %386 : vector<1x8xf32> to vector<8x8xf32>
    %458 = arith.addf %456, %457 : vector<8x8xf32>
    %cst_274 = arith.constant dense<0xFF800000> : vector<8xf32>
    %459 = vector.multi_reduction <maximumf>, %458, %cst_274 [1] : vector<8x8xf32> to vector<8xf32>
    %460 = vector.shape_cast %459 : vector<8xf32> to vector<8x1xf32>
    %461 = vector.broadcast %460 : vector<8x1xf32> to vector<8x8xf32>
    %462 = arith.subf %458, %461 : vector<8x8xf32>
    %463 = math.exp %462 : vector<8x8xf32>
    %cst_275 = arith.constant dense<0.000000e+00> : vector<8xf32>
    %464 = vector.multi_reduction <add>, %463, %cst_275 [1] : vector<8x8xf32> to vector<8xf32>
    %465 = vector.shape_cast %464 : vector<8xf32> to vector<8x1xf32>
    %466 = tpu.reciprocal %465 {approx = true} : vector<8x1xf32> -> vector<8x1xf32>
    %467 = vector.broadcast %466 : vector<8x1xf32> to vector<8x8xf32>
    %468 = arith.mulf %463, %467 : vector<8x8xf32>
    %cst_276 = arith.constant dense<0.000000e+00> : vector<8x8xf32>
    %469 = tpu.matmul %468, %452, %cst_276 {dimension_numbers = #tpu.dot_dimension_numbers<[1], [0], [0], [1], [0, 0, 1, 1], [], []>} : vector<8x8xf32>, vector<8x8xf32>, vector<8x8xf32> -> vector<8x8xf32>
    %c8_277 = arith.constant 8 : index
    %c24_278 = arith.constant 24 : index
    %470 = vector.load %arg21[%c8_277, %c24_278] : memref<16x32xf32, #tpu.memory_space<vmem>>, vector<8x8xf32>
    tpu.vector_store %arg21[%c8_277, %c24_278], %469 {strides = array<i32>} : memref<16x32xf32, #tpu.memory_space<vmem>>, vector<8x8xf32>,
    %c0_279 = arith.constant 0 : index
    %c0_280 = arith.constant 0 : index
    %471 = vector.load %arg21[%c0_279, %c0_280] : memref<16x32xf32, #tpu.memory_space<vmem>>, vector<16x32xf32>
    %c1_281 = arith.constant 1 : index
    %c0_282 = arith.constant 0 : index
    %c0_283 = arith.constant 0 : index
    %472 = vector.load %arg6[%c1_281, %c0_282, %c0_283] : memref<2x32x32xf32, #tpu.memory_space<vmem>>, vector<1x32x32xf32>
    %473 = vector.shape_cast %472 : vector<1x32x32xf32> to vector<32x32xf32>
    %cst_284 = arith.constant dense<0.000000e+00> : vector<16x32xf32>
    %474 = tpu.matmul %471, %473, %cst_284 {dimension_numbers = #tpu.dot_dimension_numbers<[1], [0], [0], [1], [0, 0, 1, 1], [], []>} : vector<16x32xf32>, vector<32x32xf32>, vector<16x32xf32> -> vector<16x32xf32>
    %c1_285 = arith.constant 1 : index
    %c0_286 = arith.constant 0 : index
    %c0_287 = arith.constant 0 : index
    %475 = vector.load %arg7[%c1_285, %c0_286, %c0_287] : memref<2x1x32xf32, #tpu.memory_space<vmem>>, vector<1x1x32xf32>
    %476 = vector.shape_cast %475 : vector<1x1x32xf32> to vector<1x32xf32>
    %477 = vector.broadcast %476 : vector<1x32xf32> to vector<16x32xf32>
    %478 = arith.addf %474, %477 : vector<16x32xf32>
    %479 = arith.addf %478, %292 : vector<16x32xf32>
    %c1_288 = arith.constant 1 : index
    %c0_289 = arith.constant 0 : index
    %c0_290 = arith.constant 0 : index
    %480 = vector.load %arg8[%c1_288, %c0_289, %c0_290] : memref<2x1x32xf32, #tpu.memory_space<vmem>>, vector<1x1x32xf32>
    %481 = vector.shape_cast %480 : vector<1x1x32xf32> to vector<1x32xf32>
    %c1_291 = arith.constant 1 : index
    %c0_292 = arith.constant 0 : index
    %c0_293 = arith.constant 0 : index
    %482 = vector.load %arg9[%c1_291, %c0_292, %c0_293] : memref<2x1x32xf32, #tpu.memory_space<vmem>>, vector<1x1x32xf32>
    %483 = vector.shape_cast %482 : vector<1x1x32xf32> to vector<1x32xf32>
    %cst_294 = arith.constant dense<0.000000e+00> : vector<16xf32>
    %484 = vector.multi_reduction <add>, %479, %cst_294 [1] : vector<16x32xf32> to vector<16xf32>
    %485 = vector.shape_cast %484 : vector<16xf32> to vector<16x1xf32>
    %cst_295 = arith.constant 3.200000e+01 : f32
    %486 = vector.broadcast %cst_295 : f32 to vector<16x1xf32>
    %487 = arith.divf %485, %486 : vector<16x1xf32>
    %488 = vector.broadcast %487 : vector<16x1xf32> to vector<16x32xf32>
    %489 = arith.subf %479, %488 : vector<16x32xf32>
    %490 = vector.broadcast %487 : vector<16x1xf32> to vector<16x32xf32>
    %491 = arith.subf %479, %490 : vector<16x32xf32>
    %492 = arith.mulf %489, %491 : vector<16x32xf32>
    %cst_296 = arith.constant dense<0.000000e+00> : vector<16xf32>
    %493 = vector.multi_reduction <add>, %492, %cst_296 [1] : vector<16x32xf32> to vector<16xf32>
    %494 = vector.shape_cast %493 : vector<16xf32> to vector<16x1xf32>
    %cst_297 = arith.constant 3.200000e+01 : f32
    %495 = vector.broadcast %cst_297 : f32 to vector<16x1xf32>
    %496 = arith.divf %494, %495 : vector<16x1xf32>
    %497 = vector.broadcast %487 : vector<16x1xf32> to vector<16x32xf32>
    %498 = arith.subf %479, %497 : vector<16x32xf32>
    %cst_298 = arith.constant 9.99999996E-13 : f32
    %499 = vector.broadcast %cst_298 : f32 to vector<16x1xf32>
    %500 = arith.addf %496, %499 : vector<16x1xf32>
    %501 = math.rsqrt %500 : vector<16x1xf32>
    %502 = vector.broadcast %501 : vector<16x1xf32> to vector<16x32xf32>
    %503 = arith.mulf %498, %502 : vector<16x32xf32>
    %504 = vector.broadcast %481 : vector<1x32xf32> to vector<16x32xf32>
    %505 = arith.mulf %503, %504 : vector<16x32xf32>
    %506 = vector.broadcast %483 : vector<1x32xf32> to vector<16x32xf32>
    %507 = arith.addf %505, %506 : vector<16x32xf32>
    %c1_299 = arith.constant 1 : index
    %c0_300 = arith.constant 0 : index
    %c0_301 = arith.constant 0 : index
    %508 = vector.load %arg10[%c1_299, %c0_300, %c0_301] : memref<2x32x64xf32, #tpu.memory_space<vmem>>, vector<1x32x64xf32>
    %509 = vector.shape_cast %508 : vector<1x32x64xf32> to vector<32x64xf32>
    %cst_302 = arith.constant dense<0.000000e+00> : vector<16x64xf32>
    %510 = tpu.matmul %507, %509, %cst_302 {dimension_numbers = #tpu.dot_dimension_numbers<[1], [0], [0], [1], [0, 0, 1, 1], [], []>} : vector<16x32xf32>, vector<32x64xf32>, vector<16x64xf32> -> vector<16x64xf32>
    %c1_303 = arith.constant 1 : index
    %c0_304 = arith.constant 0 : index
    %c0_305 = arith.constant 0 : index
    %511 = vector.load %arg11[%c1_303, %c0_304, %c0_305] : memref<2x1x64xf32, #tpu.memory_space<vmem>>, vector<1x1x64xf32>
    %512 = vector.shape_cast %511 : vector<1x1x64xf32> to vector<1x64xf32>
    %513 = vector.broadcast %512 : vector<1x64xf32> to vector<16x64xf32>
    %514 = arith.addf %510, %513 : vector<16x64xf32>
    %cst_306 = arith.constant 5.000000e-01 : f32
    %515 = vector.broadcast %cst_306 : f32 to vector<16x64xf32>
    %516 = arith.mulf %515, %514 : vector<16x64xf32>
    %cst_307 = arith.constant 0.707106769 : f32
    %517 = vector.broadcast %cst_307 : f32 to vector<16x64xf32>
    %518 = arith.mulf %514, %517 : vector<16x64xf32>
    %519 = math.erf %518 : vector<16x64xf32>
    %cst_308 = arith.constant 1.000000e+00 : f32
    %520 = vector.broadcast %cst_308 : f32 to vector<16x64xf32>
    %521 = arith.addf %520, %519 : vector<16x64xf32>
    %522 = arith.mulf %516, %521 : vector<16x64xf32>
    %c1_309 = arith.constant 1 : index
    %c0_310 = arith.constant 0 : index
    %c0_311 = arith.constant 0 : index
    %523 = vector.load %arg12[%c1_309, %c0_310, %c0_311] : memref<2x64x32xf32, #tpu.memory_space<vmem>>, vector<1x64x32xf32>
    %524 = vector.shape_cast %523 : vector<1x64x32xf32> to vector<64x32xf32>
    %cst_312 = arith.constant dense<0.000000e+00> : vector<16x32xf32>
    %525 = tpu.matmul %522, %524, %cst_312 {dimension_numbers = #tpu.dot_dimension_numbers<[1], [0], [0], [1], [0, 0, 1, 1], [], []>} : vector<16x64xf32>, vector<64x32xf32>, vector<16x32xf32> -> vector<16x32xf32>
    %c1_313 = arith.constant 1 : index
    %c0_314 = arith.constant 0 : index
    %c0_315 = arith.constant 0 : index
    %526 = vector.load %arg13[%c1_313, %c0_314, %c0_315] : memref<2x1x32xf32, #tpu.memory_space<vmem>>, vector<1x1x32xf32>
    %527 = vector.shape_cast %526 : vector<1x1x32xf32> to vector<1x32xf32>
    %528 = vector.broadcast %527 : vector<1x32xf32> to vector<16x32xf32>
    %529 = arith.addf %525, %528 : vector<16x32xf32>
    %530 = arith.addf %529, %507 : vector<16x32xf32>
    %c1_316 = arith.constant 1 : index
    %c0_317 = arith.constant 0 : index
    %c0_318 = arith.constant 0 : index
    %531 = vector.load %arg14[%c1_316, %c0_317, %c0_318] : memref<2x1x32xf32, #tpu.memory_space<vmem>>, vector<1x1x32xf32>
    %532 = vector.shape_cast %531 : vector<1x1x32xf32> to vector<1x32xf32>
    %c1_319 = arith.constant 1 : index
    %c0_320 = arith.constant 0 : index
    %c0_321 = arith.constant 0 : index
    %533 = vector.load %arg15[%c1_319, %c0_320, %c0_321] : memref<2x1x32xf32, #tpu.memory_space<vmem>>, vector<1x1x32xf32>
    %534 = vector.shape_cast %533 : vector<1x1x32xf32> to vector<1x32xf32>
    %cst_322 = arith.constant dense<0.000000e+00> : vector<16xf32>
    %535 = vector.multi_reduction <add>, %530, %cst_322 [1] : vector<16x32xf32> to vector<16xf32>
    %536 = vector.shape_cast %535 : vector<16xf32> to vector<16x1xf32>
    %cst_323 = arith.constant 3.200000e+01 : f32
    %537 = vector.broadcast %cst_323 : f32 to vector<16x1xf32>
    %538 = arith.divf %536, %537 : vector<16x1xf32>
    %539 = vector.broadcast %538 : vector<16x1xf32> to vector<16x32xf32>
    %540 = arith.subf %530, %539 : vector<16x32xf32>
    %541 = vector.broadcast %538 : vector<16x1xf32> to vector<16x32xf32>
    %542 = arith.subf %530, %541 : vector<16x32xf32>
    %543 = arith.mulf %540, %542 : vector<16x32xf32>
    %cst_324 = arith.constant dense<0.000000e+00> : vector<16xf32>
    %544 = vector.multi_reduction <add>, %543, %cst_324 [1] : vector<16x32xf32> to vector<16xf32>
    %545 = vector.shape_cast %544 : vector<16xf32> to vector<16x1xf32>
    %cst_325 = arith.constant 3.200000e+01 : f32
    %546 = vector.broadcast %cst_325 : f32 to vector<16x1xf32>
    %547 = arith.divf %545, %546 : vector<16x1xf32>
    %548 = vector.broadcast %538 : vector<16x1xf32> to vector<16x32xf32>
    %549 = arith.subf %530, %548 : vector<16x32xf32>
    %cst_326 = arith.constant 9.99999996E-13 : f32
    %550 = vector.broadcast %cst_326 : f32 to vector<16x1xf32>
    %551 = arith.addf %547, %550 : vector<16x1xf32>
    %552 = math.rsqrt %551 : vector<16x1xf32>
    %553 = vector.broadcast %552 : vector<16x1xf32> to vector<16x32xf32>
    %554 = arith.mulf %549, %553 : vector<16x32xf32>
    %555 = vector.broadcast %532 : vector<1x32xf32> to vector<16x32xf32>
    %556 = arith.mulf %554, %555 : vector<16x32xf32>
    %557 = vector.broadcast %534 : vector<1x32xf32> to vector<16x32xf32>
    %558 = arith.addf %556, %557 : vector<16x32xf32>
    %c0_327 = arith.constant 0 : index
    %c0_328 = arith.constant 0 : index
    %559 = vector.load %arg18[%c0_327, %c0_328] : memref<16x32xf32, #tpu.memory_space<vmem>>, vector<16x32xf32>
    tpu.vector_store %arg18[%c0_327, %c0_328], %558 {strides = array<i32>} : memref<16x32xf32, #tpu.memory_space<vmem>>, vector<16x32xf32>,
    %c0_329 = arith.constant 0 : index
    %c0_330 = arith.constant 0 : index
    %560 = vector.load %arg16[%c0_329, %c0_330] : memref<32x32xf32, #tpu.memory_space<vmem>>, vector<32x32xf32>
    %cst_331 = arith.constant dense<0.000000e+00> : vector<16x32xf32>
    %561 = tpu.matmul %558, %560, %cst_331 {dimension_numbers = #tpu.dot_dimension_numbers<[1], [0], [0], [1], [0, 0, 1, 1], [], []>} : vector<16x32xf32>, vector<32x32xf32>, vector<16x32xf32> -> vector<16x32xf32>
    %c0_332 = arith.constant 0 : index
    %c0_333 = arith.constant 0 : index
    %562 = vector.load %arg17[%c0_332, %c0_333] : memref<1x32xf32, #tpu.memory_space<vmem>>, vector<1x32xf32>
    %563 = vector.broadcast %562 : vector<1x32xf32> to vector<16x32xf32>
    %564 = arith.addf %561, %563 : vector<16x32xf32>
    %565 = math.tanh %564 : vector<16x32xf32>
    %c0_334 = arith.constant 0 : index
    %c0_335 = arith.constant 0 : index
    %566 = vector.load %arg21[%c0_334, %c0_335] : memref<16x32xf32, #tpu.memory_space<vmem>>, vector<16x32xf32>
    tpu.vector_store %arg21[%c0_334, %c0_335], %565 {strides = array<i32>} : memref<16x32xf32, #tpu.memory_space<vmem>>, vector<16x32xf32>,
    %c0_336 = arith.constant 0 : index
    %c0_337 = arith.constant 0 : index
    %567 = vector.load %arg21[%c0_336, %c0_337] : memref<16x32xf32, #tpu.memory_space<vmem>>, vector<1x32xf32>
    %c0_338 = arith.constant 0 : index
    %c0_339 = arith.constant 0 : index
    %568 = vector.load %arg19[%c0_338, %c0_339] : memref<2x32xf32, #tpu.memory_space<vmem>>, vector<1x32xf32>
    tpu.vector_store %arg19[%c0_338, %c0_339], %567 {strides = array<i32>} : memref<2x32xf32, #tpu.memory_space<vmem>>, vector<1x32xf32>,
    %c8_340 = arith.constant 8 : index
    %c0_341 = arith.constant 0 : index
    %569 = vector.load %arg21[%c8_340, %c0_341] : memref<16x32xf32, #tpu.memory_space<vmem>>, vector<1x32xf32>
    %c1_342 = arith.constant 1 : index
    %c0_343 = arith.constant 0 : index
    %570 = vector.load %arg19[%c1_342, %c0_343] : memref<2x32xf32, #tpu.memory_space<vmem>>, vector<1x32xf32>
    tpu.vector_store %arg19[%c1_342, %c0_343], %569 {strides = array<i32>} : memref<2x32xf32, #tpu.memory_space<vmem>>, vector<1x32xf32>,
    return
  }
}

</mosaic_0001>

<bundles_post_ra>
// kernel: bert_forward.1
= control target key start
LH: loop header
LB: loop body
LE: loop exit
PB: predicated region body
PF: predicated region fallthrough
CT: control target
= control target key end

     0   :  { %s3100_s0 = inlined_call_operand.vmem [shape: f32[16,32], index: 0, kind: input, shape index: {}]   ;;  %s3101_s1 = inlined_call_operand.vmem [shape: f32[2,8], index: 1, kind: input, shape index: {}]   ;;  %s3102_s2 = inlined_call_operand.vmem [shape: f32[1,32], index: 2, kind: input, shape index: {}]   ;;  %s3103_s3 = inlined_call_operand.vmem [shape: f32[1,32], index: 3, kind: input, shape index: {}]   ;;  %s3104_s4 = inlined_call_operand.vmem [shape: f32[2,32,96], index: 4, kind: input, shape index: {}]   ;;  %s3105_s5 = inlined_call_operand.vmem [shape: f32[2,1,96], index: 5, kind: input, shape index: {}]   ;;  %s3106_s6 = inlined_call_operand.vmem [shape: f32[2,32,32], index: 6, kind: input, shape index: {}]   ;;  %s3107_s7 = inlined_call_operand.vmem [shape: f32[2,1,32], index: 7, kind: input, shape index: {}]   ;;  %s3108_s8 = inlined_call_operand.vmem [shape: f32[2,1,32], index: 8, kind: input, shape index: {}]   ;;  %s3109_s9 = inlined_call_operand.vmem [shape: f32[2,1,32], index: 9, kind: input, shape index: {}]   ;;  %s3110_s10 = inlined_call_operand.vmem [shape: f32[2,32,64], index: 10, kind: input, shape index: {}]   ;;  %s3111_s11 = inlined_call_operand.vmem [shape: f32[2,1,64], index: 11, kind: input, shape index: {}]   ;;  %s3112_s12 = inlined_call_operand.vmem [shape: f32[2,64,32], index: 12, kind: input, shape index: {}]   ;;  %s3113_s13 = inlined_call_operand.vmem [shape: f32[2,1,32], index: 13, kind: input, shape index: {}]   ;;  %s3114_s14 = inlined_call_operand.vmem [shape: f32[2,1,32], index: 14, kind: input, shape index: {}]   ;;  %s3115_s15 = inlined_call_operand.vmem [shape: f32[2,1,32], index: 15, kind: input, shape index: {}]   ;;  %s3116_s16 = inlined_call_operand.vmem [shape: f32[32,32], index: 16, kind: input, shape index: {}]   ;;  %s3117_s17 = inlined_call_operand.vmem [shape: f32[1,32], index: 17, kind: input, shape index: {}]   ;;  %s3118_s18 = inlined_call_operand.hbm [shape: f32[16,32], index: 18, kind: output, shape index: {0}]   ;;  %s3119_s19 = inlined_call_operand.hbm [shape: f32[2,32], index: 19, kind: output, shape index: {1}]  }
   0x1   :  { %3138 = sst [smem:[#allocation10_spill]] %s3100_s0 }
   0x2   :  { %3139 = sst [smem:[#allocation11_spill]] %s3101_s1 }
   0x3   :  { %3140 = sst [smem:[#allocation12_spill]] %s3102_s2 }
   0x4   :  { %3141 = sst [smem:[#allocation13_spill]] %s3103_s3 }
   0x5   :  { %25 = vsyncpa [#allocation5], 0  ;;  %s3142_s20 = sld [smem:[#allocation10_spill]]  ;;  %vm67_vm0 = vcmask 261120  }
   0xb   :  { %v63_v0 = vld [vmem:[%s3142_s20] sm:$0xff]  ;;  %v64_v1 = vld [vmem:[%s3142_s20 + $0x8] sm:$0xff] }
   0xc   :  { %v68_v2 = vsel %vm67_vm0, %v63_v0, 0.0  ;;  %v71_v3 = vsel %vm67_vm0, %v64_v1, 0.0 }
   0xd   :  { %69 = vadd.xlane.f32.xlu0 %v68_v2  ;;  %72 = vadd.xlane.f32.xlu1 %v71_v3 }
   0xe   :  { %26 = vsyncpa [#allocation7], 0  ;;  %v2406_v4 = vmov 32.0   ;;  %v132_v21 = vld [vmem:[%s3104_s4 + $0x18] sm:$0xff]  ;;  %v131_v22 = vld [vmem:[%s3104_s4 + $0x10] sm:$0xff]  ;;  %s3143_s0 = sld [smem:[#allocation12_spill]] }
   0xf   :  { %2256 = vrcp.f32 %v2406_v4  ;;  %155 = vmatpush.msra.mxu0 %v132_v21  ;;  %v130_v23 = vld [vmem:[%s3104_s4 + $0x8] sm:$0xff]  ;;  %v129_v24 = vld [vmem:[%s3104_s4] sm:$0xff]  ;;  %s3144_s21 = sld [smem:[#allocation13_spill]]  ;;  %vm166_vm8 = vcmask 785408   ;;  %s3124_s2 = smov 120   ;;  %vm174_vm9 = vcmask 64512  }
  0x10   :  { %v2235_v53 = vld [vmem:[%s3105_s5] ss:$0 sm:$0xff]  ;;  %s3136_s23 = smov 96   ;;  %s3134_s24 = smov 64   ;;  %vm313_vm10 = vcmask 130112   ;;  %vm388_vm11 = vcmask 195712  }
  0x11   :  { %156 = vmatpush.msra.mxu0 %v131_v22  ;;  %s3132_s25 = smov 88   ;;  %s3130_s3 = smov 80   ;;  %vm463_vm12 = vcmask 261312  }
  0x12   :  { %s3128_s26 = smov 72   ;;  %s3122_s27 = smov 104  }
  0x13   :  { %157 = vmatpush.msra.mxu0 %v130_v23  ;;  %s3126_s30 = smov 112   ;;  %s2415_s20 = smov 56  }
  0x14   :  { %v2233_v42 = vld [vmem:[%s3143_s0] ss:$0 sm:$0xff]  ;;  %s3145_s0 = sld [smem:[#allocation11_spill]]  ;;  %s2417_s1 = smov 48  }
  0x15   :  { %v2257_v5 = vpop.eup %2256  ;;  %158 = vmatpush.msra.mxu0 %v129_v24  ;;  %v2234_v46 = vld [vmem:[%s3144_s21] ss:$0 sm:$0xff]  ;;  %s2416_s21 = smov 40   ;;  %s2418_s22 = smov 8  }
  0x16   :  { %v75_v6 = vmul.f32 32.0, %v2257_v5  ;;  %vm79_vm1 = vweird.f32 %v2257_v5  ;;  %s2419_s28 = smov 16   ;;  %s3146_s29 = smov 96  }
  0x18   :  { %v76_v7 = vsub.f32 1.0, %v75_v6 }
  0x1a   :  { %v77_v8 = vmul.f32 %v2257_v5, %v76_v7 }
  0x1c   :  { %v78_v9 = vadd.f32 %v2257_v5, %v77_v8 }
  0x1e   :  { %v2532_v10 = vsel %vm79_vm1, %v2257_v5, %v78_v9 }
  0x80   :  { %v70_v11 = vpop.xlane.xlu0 %69  ;;  %v73_v12 = vpop.xlane.xlu1 %72 }
  0x81   :  { %v81_v13 = vmul.f32 %v2532_v10, %v70_v11  ;;  %v82_v14 = vmul.f32 %v2532_v10, %v73_v12 }
  0x83   :  { %v83_v15 = vsub.f32 %v63_v0, %v81_v13  ;;  %v84_v16 = vsub.f32 %v64_v1, %v82_v14  ;;  %v2596_v0 = vld [vmem:[%s3145_s0] ss:$0 sm:$0xff] }
  0x85   :  { %v85_v17 = vmul.f32 %v83_v15, %v83_v15  ;;  %v86_v18 = vmul.f32 %v84_v16, %v84_v16 }
  0x87   :  { %v87_v19 = vsel %vm67_vm0, %v85_v17, 0.0  ;;  %v90_v20 = vsel %vm67_vm0, %v86_v18, 0.0 }
  0x88   :  { %88 = vadd.xlane.f32.xlu0 %v87_v19  ;;  %91 = vadd.xlane.f32.xlu1 %v90_v20 }
  0xfb   :  { %v89_v25 = vpop.xlane.xlu0 %88  ;;  %v92_v26 = vpop.xlane.xlu1 %91 }
  0xfc   :  { %v93_v27 = vmul.f32 %v89_v25, %v2532_v10  ;;  %v94_v28 = vmul.f32 %v92_v26, %v2532_v10 }
  0xfe   :  { %v95_v29 = vadd.f32 1e-12, %v93_v27  ;;  %v96_v30 = vadd.f32 1e-12, %v94_v28 }
 0x100   :  { %2258 = vrsqrt.f32 %v95_v29  ;;  %vm113_vm2 = vweird.f32 %v96_v30  ;;  %vm103_vm5 = vweird.f32 %v95_v29 }
 0x101   :  { %2260 = vrsqrt.f32 %v96_v30 }
 0x106   :  { %v2259_v31 = vpop.eup %2258 }
 0x107   :  { %v2261_v32 = vpop.eup %2260  ;;  %v98_v33 = vmul.f32 %v2259_v31, %v95_v29  ;;  %vm104_vm4 = vweird.f32 %v2259_v31 }
 0x108   :  { %v108_v34 = vmul.f32 %v2261_v32, %v96_v30  ;;  %vm114_vm3 = vweird.f32 %v2261_v32  ;;  %vm105_vm7 = vmor %vm103_vm5, %vm104_vm4  ;;  %vm991_vm5 = vcmask 523264  }
 0x109   :  { %v99_v35 = vmul.f32 %v2259_v31, %v98_v33  ;;  %vm115_vm6 = vmor %vm113_vm2, %vm114_vm3 }
 0x10a   :  { %v109_v36 = vmul.f32 %v2261_v32, %v108_v34 }
 0x10b   :  { %v100_v37 = vmul.f32 0.5, %v99_v35 }
 0x10c   :  { %v110_v38 = vmul.f32 0.5, %v109_v36 }
 0x10d   :  { %v101_v39 = vsub.f32 1.5, %v100_v37 }
 0x10e   :  { %v111_v40 = vsub.f32 1.5, %v110_v38 }
 0x10f   :  { %v102_v41 = vmul.f32 %v2259_v31, %v101_v39 }
 0x110   :  { %v112_v43 = vmul.f32 %v2261_v32, %v111_v40 }
 0x111   :  { %v106_v44 = vsel %vm105_vm7, %v2259_v31, %v102_v41 }
 0x112   :  { %v117_v45 = vmul.f32 %v106_v44, %v83_v15  ;;  %v116_v47 = vsel %vm115_vm6, %v2261_v32, %v112_v43 }
 0x113   :  { %v118_v49 = vmul.f32 %v116_v47, %v84_v16 }
 0x114   :  { %v122_v48 = vmul.f32 %v2233_v42, %v117_v45 }
 0x115   :  { %v123_v51 = vmul.f32 %v2233_v42, %v118_v49 }
 0x116   :  { %v2558_v50 = vadd.f32 %v2234_v46, %v122_v48 }
 0x117   :  { %v2562_v52 = vadd.f32 %v2234_v46, %v123_v51 }
 0x118   :  { %2117 = vmatmul.msk.f32.vlgmr.msra.gmra.mxu0 %vm67_vm0, %v2558_v50 }
 0x120   :  { %2118 = vmatmul.msk.f32.gmra.mxu0 %vm67_vm0, %v2562_v52 }
 0x195   :  { %v160_v54 = vpop.f32.mrf.mxu0 }
 0x196   :  { %v161_v55 = vadd.f32 %v2235_v53, %v160_v54 }
 0x198   :  { %167 = vst.msk [vmem:[#allocation2] sm:$0xff] %vm166_vm8, %v161_v55 }
 0x19d   :  { %v163_v57 = vpop.f32.mrf.mxu0 }
 0x19e   :  { %v164_v58 = vadd.f32 %v2235_v53, %v163_v57 }
 0x19f   :  { %v2570_v56 = vld [vmem:[#allocation2] sm:$0xff] }
 0x1a0   :  { %242 = vrot.lane.b32.xlu0 %v2570_v56, %s3124_s2  ;;  %172 = vrot.lane.b32.xlu2 %v2570_v56, %s3136_s23  ;;  %168 = vst.msk [vmem:[#allocation2 + $0x8] sm:$0xff] %vm166_vm8, %v164_v58 }
 0x1a7   :  { %v2617_v34 = vld [vmem:[#allocation2 + $0x8] sm:$0xff] }
 0x1a8   :  { %213 = vrot.lane.b32.xlu0 %v2570_v56, %s3134_s24  ;;  %244 = vrot.lane.b32.xlu2 %v2570_v56, %s3132_s25 }
 0x1b0   :  { %319 = vrot.lane.b32.xlu0 %v2570_v56, %s3130_s3 }
 0x1b8   :  { %394 = vrot.lane.b32.xlu0 %v2570_v56, %s3128_s26 }
 0x1c0   :  { %392 = vrot.lane.b32.xlu0 %v2570_v56, %s3122_s27 }
 0x1fa   :  { %v173_v59 = vpop.permute.xlu2 %172 }
 0x1fb   :  { %2119 = vmatpush.xpose.msk.msrb.mxu0 %vm174_vm9, %v173_v59 }
 0x1fe   :  { %2120 = vmatmul.msk.f32.vlgmr.msrb.gmra.mxu0 %vm174_vm9, %v2570_v56 }
 0x202   :  { %v245_v60 = vpop.permute.xlu2 %244 }
 0x203   :  { %2122 = vmatpush.xpose.msk.msra.mxu3 %vm174_vm9, %v245_v60 }
 0x212   :  { %v243_v61 = vpop.permute.xlu0 %242 }
 0x213   :  { %2123 = vmatmul.msk.f32.vlgmr.msra.gmra.mxu3 %vm174_vm9, %v243_v61 }
 0x21a   :  { %v214_v62 = vpop.permute.xlu0 %213 }
 0x21b   :  { %234 = vmatpush.msra.mxu2 %v214_v62 }
 0x222   :  { %v320_v63 = vpop.permute.xlu0 %319 }
 0x223   :  { %2125 = vmatpush.xpose.msk.msra.mxu1 %vm174_vm9, %v320_v63 }
 0x22a   :  { %v395_v30 = vpop.permute.xlu0 %394 }
 0x232   :  { %v393_v33 = vpop.permute.xlu0 %392 }
 0x27b   :  { %v196_v1 = vpop.f32.mrf.mxu0 }
 0x27c   :  { %v199_v2 = vmul.f32 0.35355338, %v196_v1 }
 0x27e   :  { %v201_v3 = vadd.f32 %v2596_v0, %v199_v2 }
 0x280   :  { %v202_v4 = vsel %vm174_vm9, %v201_v3, -inf }
 0x281   :  { %203 = vmax.xlane.f32.xlu1 %v202_v4 }
 0x296   :  { %v267_v5 = vpop.f32.mrf.mxu3 }
 0x297   :  { %v270_v6 = vmul.f32 0.35355338, %v267_v5 }
 0x299   :  { %v271_v7 = vadd.f32 %v2596_v0, %v270_v6  ;;  %v2237_v6 = vld [vmem:[%s3145_s0 + $0x1] ss:$0 sm:$0xff] }
 0x29b   :  { %v272_v8 = vsel %vm174_vm9, %v271_v7, -inf }
 0x29c   :  { %273 = vmax.xlane.f32.xlu2 %v272_v8 }
 0x2b4   :  { %317 = vrot.lane.b32.xlu2 %v2570_v56, %s3126_s30 }
 0x2f4   :  { %v204_v9 = vpop.xlane.xlu1 %203 }
 0x2f5   :  { %v205_v11 = vsub.f32 %v201_v3, %v204_v9 }
 0x2f7   :  { %v206_v12 = vmul.f32 1.442695, %v205_v11 }
 0x2f9   :  { %2262 = vpow2.f32 %v206_v12 }
 0x2ff   :  { %v2263_v13 = vpop.eup %2262 }
 0x300   :  { %v208_v14 = vsel %vm174_vm9, %v2263_v13, 0.0 }
 0x301   :  { %209 = vadd.xlane.f32.xlu1 %v208_v14 }
 0x30f   :  { %v274_v15 = vpop.xlane.xlu2 %273 }
 0x310   :  { %v275_v16 = vsub.f32 %v271_v7, %v274_v15 }
 0x312   :  { %v276_v17 = vmul.f32 1.442695, %v275_v16 }
 0x314   :  { %2264 = vpow2.f32 %v276_v17 }
 0x317   :  { %v318_v18 = vpop.permute.xlu2 %317 }
 0x318   :  { %2126 = vmatmul.msk.f32.vlgmr.msra.gmra.mxu1 %vm174_vm9, %v318_v18 }
 0x31a   :  { %v2265_v19 = vpop.eup %2264 }
 0x31b   :  { %v278_v20 = vsel %vm174_vm9, %v2265_v19, 0.0 }
 0x31c   :  { %279 = vadd.xlane.f32.xlu1 %v278_v20 }
 0x335   :  { %283 = vrot.lane.b32.xlu1 %v2570_v56, %s2415_s20 }
 0x374   :  { %v210_v21 = vpop.xlane.xlu1 %209 }
 0x375   :  { %2266 = vrcp.f32 %v210_v21 }
 0x37b   :  { %v2267_v22 = vpop.eup %2266 }
 0x37c   :  { %v212_v23 = vmul.f32 %v2267_v22, %v2263_v13 }
 0x37e   :  { %2121 = vmatmul.msk.f32.vlgmr.msra.gmra.mxu2 %vm174_vm9, %v212_v23 }
 0x38f   :  { %v280_v28 = vpop.xlane.xlu1 %279 }
 0x390   :  { %2268 = vrcp.f32 %v280_v28 }
 0x395   :  { %v342_v24 = vpop.f32.mrf.mxu1 }
 0x396   :  { %v345_v25 = vmul.f32 0.35355338, %v342_v24  ;;  %v2269_v29 = vpop.eup %2268 }
 0x397   :  { %v282_v32 = vmul.f32 %v2269_v29, %v2265_v19 }
 0x398   :  { %v346_v26 = vadd.f32 %v2596_v0, %v345_v25 }
 0x39a   :  { %v347_v27 = vsel %vm174_vm9, %v346_v26, -inf }
 0x39b   :  { %348 = vmax.xlane.f32.xlu1 %v347_v27 }
 0x3a7   :  { %v284_v31 = vpop.permute.xlu1 %283 }
 0x3a8   :  { %304 = vmatpush.msrb.mxu2 %v284_v31 }
 0x3a9   :  { %2124 = vmatmul.msk.f32.vlgmr.msrb.gmra.mxu2 %vm174_vm9, %v282_v32 }
 0x3aa   :  { %2128 = vmatpush.xpose.msk.msra.mxu2 %vm174_vm9, %v395_v30 }
 0x3b1   :  { %2129 = vmatmul.msk.f32.vlgmr.msra.gmra.mxu2 %vm174_vm9, %v393_v33 }
 0x3b4   :  { %433 = vrot.lane.b32.xlu1 %v2570_v56, %s2416_s21 }
 0x3bc   :  { %613 = vrot.lane.b32.xlu1 %v2617_v34, %s3130_s3  ;;  %s3152_s3 = smov 104  }
 0x401   :  { %v236_v35 = vpop.f32.mrf.mxu2 }
 0x402   :  { %239 = vst.msk [vmem:[#allocation3] sm:$0xff] %vm174_vm9, %v236_v35 }
 0x40e   :  { %v349_v36 = vpop.xlane.xlu1 %348 }
 0x40f   :  { %v350_v37 = vsub.f32 %v346_v26, %v349_v36 }
 0x411   :  { %v351_v38 = vmul.f32 1.442695, %v350_v37  ;;  %v762_v37 = vld [vmem:[%s3106_s6 + $0x18] sm:$0xff] }
 0x413   :  { %2270 = vpow2.f32 %v351_v38  ;;  %v761_v38 = vld [vmem:[%s3106_s6 + $0x10] sm:$0xff] }
 0x419   :  { %v2271_v39 = vpop.eup %2270 }
 0x41a   :  { %v353_v40 = vsel %vm174_vm9, %v2271_v39, 0.0 }
 0x41b   :  { %354 = vadd.xlane.f32.xlu2 %v353_v40  ;;  %v759_v40 = vld [vmem:[%s3106_s6] sm:$0xff] }
 0x426   :  { %v434_v41 = vpop.permute.xlu1 %433 }
 0x427   :  { %454 = vmatpush.msrb.mxu1 %v434_v41 }
 0x42c   :  { %v306_v42 = vpop.f32.mrf.mxu2 }
 0x42e   :  { %v614_v59 = vpop.permute.xlu1 %613 }
 0x433   :  { %468 = vrot.lane.b32.xlu2 %v2617_v34, %s3136_s23  ;;  %s3147_s23 = smov 88  }
 0x434   :  { %v417_v43 = vpop.f32.mrf.mxu2 }
 0x435   :  { %v420_v44 = vmul.f32 0.35355338, %v417_v43 }
 0x437   :  { %v421_v45 = vadd.f32 %v2596_v0, %v420_v44 }
 0x439   :  { %v422_v46 = vsel %vm174_vm9, %v421_v45, -inf }
 0x43a   :  { %423 = vmax.xlane.f32.xlu0 %v422_v46 }
 0x43b   :  { %611 = vrot.lane.b32.xlu2 %v2617_v34, %s3126_s30 }
 0x44e   :  { %358 = vrot.lane.b32.xlu0 %v2570_v56, %s2417_s1 }
 0x456   :  { %539 = vrot.lane.b32.xlu0 %v2617_v34, %s3132_s25  ;;  %s3151_s25 = smov 120  }
 0x45e   :  { %537 = vrot.lane.b32.xlu0 %v2617_v34, %s3124_s2  ;;  %s2420_s2 = smov 24  }
 0x466   :  { %687 = vrot.lane.b32.xlu0 %v2617_v34, %s3128_s26 }
 0x46e   :  { %310 = vrot.lane.b32.xlu0 %v306_v42, %s2418_s22 }
 0x48e   :  { %v355_v51 = vpop.xlane.xlu2 %354 }
 0x496   :  { %v469_v58 = vpop.permute.xlu2 %468 }
 0x49e   :  { %v612_v62 = vpop.permute.xlu2 %611 }
 0x4ad   :  { %v424_v47 = vpop.xlane.xlu0 %423 }
 0x4ae   :  { %v425_v48 = vsub.f32 %v421_v45, %v424_v47 }
 0x4b0   :  { %v426_v49 = vmul.f32 1.442695, %v425_v48 }
 0x4b2   :  { %2272 = vpow2.f32 %v426_v49 }
 0x4b3   :  { %2274 = vrcp.f32 %v355_v51 }
 0x4b8   :  { %v2273_v53 = vpop.eup %2272 }
 0x4b9   :  { %v428_v54 = vsel %vm174_vm9, %v2273_v53, 0.0  ;;  %v2275_v55 = vpop.eup %2274 }
 0x4ba   :  { %429 = vadd.xlane.f32.xlu1 %v428_v54  ;;  %v357_v57 = vmul.f32 %v2275_v55, %v2271_v39  ;;  %v760_v39 = vld [vmem:[%s3106_s6 + $0x8] sm:$0xff] }
 0x4c0   :  { %v359_v56 = vpop.permute.xlu0 %358 }
 0x4c1   :  { %379 = vmatpush.msrb.mxu3 %v359_v56 }
 0x4c2   :  { %2127 = vmatmul.msk.f32.vlgmr.msrb.gmra.mxu3 %vm174_vm9, %v357_v57 }
 0x4c3   :  { %2131 = vmatpush.xpose.msk.msra.mxu3 %vm174_vm9, %v469_v58 }
 0x4c7   :  { %2137 = vmatpush.xpose.msk.msrb.mxu3 %vm174_vm9, %v614_v59  ;;  %v2693_v59 = vld [vmem:[%s3107_s7] ss:$0 sm:$0xff] }
 0x4c8   :  { %v540_v60 = vpop.permute.xlu0 %539 }
 0x4c9   :  { %2134 = vmatpush.xpose.msk.msrb.mxu2 %vm174_vm9, %v540_v60 }
 0x4ca   :  { %2132 = vmatmul.msk.f32.vlgmr.msra.gmra.mxu3 %vm174_vm9, %v2617_v34 }
 0x4cb   :  { %785 = vmatpush.msra.mxu3 %v762_v37  ;;  %v2728_v37 = vld [vmem:[%s3109_s9] ss:$0 sm:$0xff] }
 0x4cd   :  { %786 = vmatpush.msra.mxu3 %v761_v38 }
 0x4cf   :  { %787 = vmatpush.msra.mxu3 %v760_v39 }
 0x4d0   :  { %v538_v61 = vpop.permute.xlu0 %537 }
 0x4d1   :  { %2135 = vmatmul.msk.f32.vlgmr.msrb.gmra.mxu2 %vm174_vm9, %v538_v61  ;;  %788 = vmatpush.msra.mxu3 %v759_v40 }
 0x4d2   :  { %2138 = vmatmul.msk.f32.vlgmr.msrb.gmra.mxu3 %vm174_vm9, %v612_v62 }
 0x4d3   :  { %685 = vrot.lane.b32.xlu1 %v2617_v34, %s3122_s27  ;;  %s3153_s27 = smov 64  }
 0x4d8   :  { %v688_v63 = vpop.permute.xlu0 %687 }
 0x4d9   :  { %2140 = vmatpush.xpose.msk.msra.mxu2 %vm174_vm9, %v688_v63 }
 0x4e0   :  { %v311_v0 = vpop.permute.xlu0 %310 }
 0x4e1   :  { %314 = vst.msk [vmem:[#allocation3] sm:$0xff] %vm313_vm10, %v311_v0 }
 0x52d   :  { %v430_v1 = vpop.xlane.xlu1 %429 }
 0x52e   :  { %2276 = vrcp.f32 %v430_v1 }
 0x534   :  { %v2277_v2 = vpop.eup %2276 }
 0x535   :  { %v432_v3 = vmul.f32 %v2277_v2, %v2273_v53 }
 0x537   :  { %2130 = vmatmul.msk.f32.vlgmr.msrb.gmra.mxu1 %vm174_vm9, %v432_v3 }
 0x545   :  { %v381_v4 = vpop.f32.mrf.mxu3  ;;  %v686_v5 = vpop.permute.xlu1 %685 }
 0x546   :  { %385 = vrot.lane.b32.xlu2 %v381_v4, %s2419_s28  ;;  %2141 = vmatmul.msk.f32.vlgmr.msra.gmra.mxu2 %vm174_vm9, %v686_v5 }
 0x54d   :  { %v491_v7 = vpop.f32.mrf.mxu3 }
 0x54e   :  { %v494_v8 = vmul.f32 0.35355338, %v491_v7 }
 0x550   :  { %v496_v9 = vadd.f32 %v2237_v6, %v494_v8 }
 0x552   :  { %v497_v11 = vsel %vm174_vm9, %v496_v9, -inf }
 0x553   :  { %498 = vmax.xlane.f32.xlu0 %v497_v11 }
 0x554   :  { %v562_v12 = vpop.f32.mrf.mxu2 }
 0x555   :  { %v565_v13 = vmul.f32 0.35355338, %v562_v12  ;;  %v636_v27 = vpop.f32.mrf.mxu3 }
 0x556   :  { %v639_v28 = vmul.f32 0.35355338, %v636_v27 }
 0x557   :  { %v566_v14 = vadd.f32 %v2237_v6, %v565_v13 }
 0x558   :  { %v640_v29 = vadd.f32 %v2237_v6, %v639_v28 }
 0x559   :  { %v567_v15 = vsel %vm174_vm9, %v566_v14, -inf }
 0x55a   :  { %v641_v30 = vsel %vm174_vm9, %v640_v29, -inf }
 0x56f   :  { %568 = vmax.xlane.f32.xlu2 %v567_v15 }
 0x5a0   :  { %v386_v16 = vpop.permute.xlu2 %385 }
 0x5a1   :  { %389 = vst.msk [vmem:[#allocation3] sm:$0xff] %vm388_vm11, %v386_v16 }
 0x5b4   :  { %v456_v17 = vpop.f32.mrf.mxu1 }
 0x5b5   :  { %460 = vrot.lane.b32.xlu1 %v456_v17, %s2420_s2 }
 0x5c6   :  { %v499_v18 = vpop.xlane.xlu0 %498 }
 0x5c7   :  { %v500_v19 = vsub.f32 %v496_v9, %v499_v18 }
 0x5c9   :  { %v501_v20 = vmul.f32 1.442695, %v500_v19  ;;  %v710_v21 = vpop.f32.mrf.mxu2 }
 0x5ca   :  { %v713_v22 = vmul.f32 0.35355338, %v710_v21  ;;  %v856_v21 = vld [vmem:[%s3110_s10 + $0x10] sm:$0xff] }
 0x5cb   :  { %2278 = vpow2.f32 %v501_v20  ;;  %v857_v20 = vld [vmem:[%s3110_s10 + $0x18] sm:$0xff] }
 0x5cc   :  { %v714_v23 = vadd.f32 %v2237_v6, %v713_v22  ;;  %v855_v22 = vld [vmem:[%s3110_s10 + $0x8] sm:$0xff] }
 0x5ce   :  { %v715_v24 = vsel %vm174_vm9, %v714_v23, -inf }
 0x5cf   :  { %716 = vmax.xlane.f32.xlu2 %v715_v24 }
 0x5d1   :  { %v2279_v25 = vpop.eup %2278 }
 0x5d2   :  { %v503_v26 = vsel %vm174_vm9, %v2279_v25, 0.0 }
 0x5d3   :  { %504 = vadd.xlane.f32.xlu0 %v503_v26 }
 0x5df   :  { %642 = vmax.xlane.f32.xlu1 %v641_v30 }
 0x5e2   :  { %v569_v31 = vpop.xlane.xlu2 %568 }
 0x5e3   :  { %v570_v32 = vsub.f32 %v566_v14, %v569_v31 }
 0x5e5   :  { %v571_v33 = vmul.f32 1.442695, %v570_v32 }
 0x5e7   :  { %2280 = vpow2.f32 %v571_v33  ;;  %508 = vrot.lane.b32.xlu0 %v2617_v34, %s3134_s24  ;;  %v2723_v33 = vld [vmem:[%s3108_s8] ss:$0 sm:$0xff]  ;;  %s3148_s24 = smov 80  }
 0x5ed   :  { %v2281_v35 = vpop.eup %2280 }
 0x5ee   :  { %v573_v36 = vsel %vm174_vm9, %v2281_v35, 0.0 }
 0x5ef   :  { %726 = vrot.lane.b32.xlu0 %v2617_v34, %s2416_s21  ;;  %574 = vadd.xlane.f32.xlu1 %v573_v36 }
 0x627   :  { %v461_v41 = vpop.permute.xlu1 %460 }
 0x628   :  { %464 = vst.msk [vmem:[#allocation3] sm:$0xff] %vm463_vm12, %v461_v41 }
 0x62f   :  { %v757_v42 = vld [vmem:[#allocation3] sm:$0xff] }
 0x630   :  { %2143 = vmatmul.msk.f32.vlgmr.msra.gmra.mxu3 %vm67_vm0, %v757_v42 }
 0x642   :  { %v717_v43 = vpop.xlane.xlu2 %716 }
 0x643   :  { %v718_v44 = vsub.f32 %v714_v23, %v717_v43  ;;  %v854_v23 = vld [vmem:[%s3110_s10] sm:$0xff] }
 0x645   :  { %v719_v45 = vmul.f32 1.442695, %v718_v44  ;;  %v2743_v44 = vld [vmem:[%s3111_s11] ss:$0 sm:$0xff] }
 0x646   :  { %v505_v47 = vpop.xlane.xlu0 %504 }
 0x647   :  { %2282 = vpow2.f32 %v719_v45 }
 0x648   :  { %2284 = vrcp.f32 %v505_v47 }
 0x64d   :  { %v2283_v46 = vpop.eup %2282 }
 0x64e   :  { %v721_v48 = vsel %vm174_vm9, %v2283_v46, 0.0  ;;  %v2285_v54 = vpop.eup %2284 }
 0x64f   :  { %722 = vadd.xlane.f32.xlu1 %v721_v48  ;;  %v507_v55 = vmul.f32 %v2285_v54, %v2279_v25 }
 0x652   :  { %v643_v49 = vpop.xlane.xlu1 %642 }
 0x653   :  { %v644_v51 = vsub.f32 %v640_v29, %v643_v49 }
 0x655   :  { %v645_v53 = vmul.f32 1.442695, %v644_v51  ;;  %v986_v51 = vld [vmem:[%s3112_s12 + $0x38] sm:$0xff] }
 0x656   :  { %1006 = vmatpush.msrb.mxu2 %v986_v51 }
 0x657   :  { %2286 = vpow2.f32 %v645_v53 }
 0x659   :  { %v509_v56 = vpop.permute.xlu0 %508 }
 0x65a   :  { %529 = vmatpush.msra.mxu0 %v509_v56 }
 0x65b   :  { %2133 = vmatmul.msk.f32.vlgmr.msra.gmra.mxu0 %vm174_vm9, %v507_v55  ;;  %v985_v55 = vld [vmem:[%s3112_s12 + $0x30] sm:$0xff] }
 0x65c   :  { %1007 = vmatpush.msrb.mxu2 %v985_v55 }
 0x65d   :  { %v2287_v57 = vpop.eup %2286 }
 0x65e   :  { %v647_v58 = vsel %vm174_vm9, %v2287_v57, 0.0 }
 0x65f   :  { %648 = vadd.xlane.f32.xlu2 %v647_v58  ;;  %v984_v58 = vld [vmem:[%s3112_s12 + $0x28] sm:$0xff] }
 0x660   :  { %1008 = vmatpush.msrb.mxu2 %v984_v58 }
 0x662   :  { %v575_v0 = vpop.xlane.xlu1 %574 }
 0x663   :  { %2288 = vrcp.f32 %v575_v0 }
 0x668   :  { %652 = vrot.lane.b32.xlu1 %v2617_v34, %s2417_s1 }
 0x669   :  { %v2289_v3 = vpop.eup %2288 }
 0x66a   :  { %v577_v5 = vmul.f32 %v2289_v3, %v2281_v35  ;;  %v981_v3 = vld [vmem:[%s3112_s12 + $0x10] sm:$0xff] }
 0x677   :  { %578 = vrot.lane.b32.xlu2 %v2617_v34, %s2415_s20 }
 0x6b3   :  { %v790_v60 = vpop.f32.mrf.mxu3 }
 0x6b4   :  { %v791_v61 = vadd.f32 %v2693_v59, %v790_v60 }
 0x6b6   :  { %v796_v62 = vadd.f32 %v791_v61, %v2558_v50  ;;  %v727_v50 = vpop.permute.xlu0 %726 }
 0x6b8   :  { %v800_v63 = vsel %vm67_vm0, %v796_v62, 0.0 }
 0x6b9   :  { %801 = vadd.xlane.f32.xlu0 %v800_v63 }
 0x6c2   :  { %v723_v1 = vpop.xlane.xlu1 %722 }
 0x6d2   :  { %v649_v2 = vpop.xlane.xlu2 %648 }
 0x6d3   :  { %2290 = vrcp.f32 %v649_v2 }
 0x6d4   :  { %2292 = vrcp.f32 %v723_v1  ;;  %v982_v1 = vld [vmem:[%s3112_s12 + $0x18] sm:$0xff] }
 0x6d8   :  { %v531_v34 = vpop.f32.mrf.mxu0 }
 0x6d9   :  { %v2291_v4 = vpop.eup %2290  ;;  %534 = vst.msk [vmem:[#allocation3 + $0x8] sm:$0xff] %vm174_vm9, %v531_v34 }
 0x6da   :  { %v651_v6 = vmul.f32 %v2291_v4, %v2287_v57  ;;  %v579_v7 = vpop.permute.xlu2 %578  ;;  %v653_v8 = vpop.permute.xlu1 %652 }
 0x6db   :  { %599 = vmatpush.msra.mxu1 %v579_v7  ;;  %673 = vmatpush.msrb.mxu0 %v653_v8  ;;  %v2293_v9 = vpop.eup %2292 }
 0x6dc   :  { %2136 = vmatmul.msk.f32.vlgmr.msra.gmra.mxu1 %vm174_vm9, %v577_v5  ;;  %2139 = vmatmul.msk.f32.vlgmr.msrb.gmra.mxu0 %vm174_vm9, %v651_v6  ;;  %v725_v11 = vmul.f32 %v2293_v9, %v2283_v46  ;;  %v980_v5 = vld [vmem:[%s3112_s12 + $0x8] sm:$0xff]  ;;  %v979_v6 = vld [vmem:[%s3112_s12] sm:$0xff] }
 0x6dd   :  { %747 = vmatpush.msrb.mxu1 %v727_v50  ;;  %880 = vmatpush.msra.mxu0 %v857_v20 }
 0x6df   :  { %881 = vmatpush.msra.mxu0 %v856_v21 }
 0x6e1   :  { %882 = vmatpush.msra.mxu0 %v855_v22 }
 0x6e3   :  { %883 = vmatpush.msra.mxu0 %v854_v23 }
 0x6e4   :  { %2142 = vmatmul.msk.f32.vlgmr.msrb.gmra.mxu1 %vm174_vm9, %v725_v11 }
 0x72c   :  { %v802_v12 = vpop.xlane.xlu0 %801 }
 0x72d   :  { %v806_v13 = vmul.f32 %v802_v12, %v2532_v10 }
 0x72f   :  { %v808_v14 = vsub.f32 %v796_v62, %v806_v13  ;;  %v983_v62 = vld [vmem:[%s3112_s12 + $0x20] sm:$0xff] }
 0x730   :  { %1009 = vmatpush.msrb.mxu2 %v983_v62 }
 0x731   :  { %v810_v15 = vmul.f32 %v808_v14, %v808_v14 }
 0x732   :  { %1010 = vmatpush.msrb.mxu2 %v982_v1 }
 0x733   :  { %v812_v16 = vsel %vm67_vm0, %v810_v15, 0.0 }
 0x734   :  { %813 = vadd.xlane.f32.xlu2 %v812_v16  ;;  %1011 = vmatpush.msrb.mxu2 %v981_v3 }
 0x736   :  { %1012 = vmatpush.msrb.mxu2 %v980_v5  ;;  %v2151_v5 = vld [vmem:[%s3104_s4 + $0x20] sm:$0xff] }
 0x738   :  { %1013 = vmatpush.msrb.mxu2 %v979_v6 }
 0x759   :  { %v601_v17 = vpop.f32.mrf.mxu1  ;;  %v675_v18 = vpop.f32.mrf.mxu0 }
 0x75a   :  { %605 = vrot.lane.b32.xlu1 %v601_v17, %s2418_s22 }
 0x761   :  { %v749_v19 = vpop.f32.mrf.mxu1 }
 0x762   :  { %679 = vrot.lane.b32.xlu1 %v675_v18, %s2419_s28 }
 0x76a   :  { %753 = vrot.lane.b32.xlu1 %v749_v19, %s2420_s2 }
 0x7a7   :  { %v814_v24 = vpop.xlane.xlu2 %813 }
 0x7a8   :  { %v818_v25 = vmul.f32 %v814_v24, %v2532_v10 }
 0x7aa   :  { %v820_v26 = vadd.f32 1e-12, %v818_v25 }
 0x7ac   :  { %2294 = vrsqrt.f32 %v820_v26  ;;  %vm828_vm14 = vweird.f32 %v820_v26 }
 0x7b2   :  { %v2295_v27 = vpop.eup %2294 }
 0x7b3   :  { %v823_v28 = vmul.f32 %v2295_v27, %v820_v26  ;;  %vm829_vm13 = vweird.f32 %v2295_v27 }
 0x7b4   :  { %vm830_vm15 = vmor %vm828_vm14, %vm829_vm13 }
 0x7b5   :  { %v824_v29 = vmul.f32 %v2295_v27, %v823_v28 }
 0x7b7   :  { %v825_v30 = vmul.f32 0.5, %v824_v29 }
 0x7b9   :  { %v826_v31 = vsub.f32 1.5, %v825_v30 }
 0x7bb   :  { %v827_v32 = vmul.f32 %v2295_v27, %v826_v31 }
 0x7bd   :  { %v831_v35 = vsel %vm830_vm15, %v2295_v27, %v827_v32 }
 0x7be   :  { %v842_v36 = vmul.f32 %v831_v35, %v808_v14 }
 0x7c0   :  { %v847_v38 = vmul.f32 %v2723_v33, %v842_v36 }
 0x7c2   :  { %v2732_v39 = vadd.f32 %v2728_v37, %v847_v38 }
 0x7c4   :  { %2145 = vmatmul.msk.f32.vlgmr.msra.gmra.mxu0 %vm67_vm0, %v2732_v39 }
 0x7cc   :  { %v606_v40 = vpop.permute.xlu1 %605 }
 0x7cd   :  { %608 = vst.msk [vmem:[#allocation3 + $0x8] sm:$0xff] %vm313_vm10, %v606_v40 }
 0x7d4   :  { %v680_v41 = vpop.permute.xlu1 %679 }
 0x7d5   :  { %682 = vst.msk [vmem:[#allocation3 + $0x8] sm:$0xff] %vm388_vm11, %v680_v41 }
 0x7dc   :  { %v754_v42 = vpop.permute.xlu1 %753 }
 0x7dd   :  { %756 = vst.msk [vmem:[#allocation3 + $0x8] sm:$0xff] %vm463_vm12, %v754_v42 }
 0x7e4   :  { %v758_v43 = vld [vmem:[#allocation3 + $0x8] sm:$0xff] }
 0x7e5   :  { %2144 = vmatmul.msk.f32.gmra.mxu3 %vm67_vm0, %v758_v43  ;;  %v2779_v43 = vld [vmem:[%s3113_s13] ss:$0 sm:$0xff] }
 0x841   :  { %v885_v45 = vpop.f32.mrf.mxu0 }
 0x842   :  { %v886_v46 = vadd.f32 %v2743_v44, %v885_v45 }
 0x844   :  { %v893_v47 = vmul.f32 0.70710677, %v886_v46  ;;  %v891_v35 = vmul.f32 0.5, %v886_v46 }
 0x846   :  { %v895_v48 = vmul.f32 %v893_v47, %v893_v47 }
 0x848   :  { %v896_v49 = vmin.f32 %v895_v48, 16.0 }
 0x84a   :  { %v897_v53 = vmul.f32 2.1237322e-06, %v896_v49  ;;  %v908_v54 = vmul.f32 3.8918573e-05, %v896_v49 }
 0x84c   :  { %v898_v56 = vadd.f32 0.00028619796, %v897_v53  ;;  %v909_v57 = vadd.f32 0.001143296, %v908_v54 }
 0x84e   :  { %v899_v60 = vmul.f32 %v898_v56, %v896_v49  ;;  %v910_v61 = vmul.f32 %v909_v57, %v896_v49 }
 0x850   :  { %v900_v63 = vadd.f32 0.0036580483, %v899_v60  ;;  %v911_v0 = vadd.f32 0.014752088, %v910_v61 }
 0x852   :  { %v912_v2 = vmul.f32 %v911_v0, %v896_v49  ;;  %v901_v34 = vmul.f32 %v900_v63, %v896_v49 }
 0x854   :  { %v913_v4 = vadd.f32 0.112945676, %v912_v2  ;;  %v902_v8 = vadd.f32 0.05243302, %v901_v34 }
 0x856   :  { %v914_v7 = vmul.f32 %v913_v4, %v896_v49  ;;  %v903_v11 = vmul.f32 %v902_v8, %v896_v49  ;;  %v2154_v4 = vld [vmem:[%s3104_s4 + $0x38] sm:$0xff] }
 0x857   :  { %1107 = vmatpush.msra.mxu1 %v2154_v4 }
 0x858   :  { %v915_v50 = vadd.f32 0.4994258, %v914_v7  ;;  %v904_v13 = vadd.f32 0.18741608, %v903_v11 }
 0x85a   :  { %v916_v9 = vmul.f32 %v915_v50, %v896_v49  ;;  %v905_v15 = vmul.f32 %v904_v13, %v896_v49 }
 0x85c   :  { %v917_v12 = vadd.f32 1.0, %v916_v9  ;;  %v906_v18 = vadd.f32 1.1283791, %v905_v15 }
 0x85e   :  { %2296 = vrcp.f32 %v917_v12  ;;  %v929_v19 = vand.u32 2147483648, %v917_v12  ;;  %v927_v22 = vand.u32 2147483647, %v917_v12  ;;  %vm923_vm2 = vweird.f32 %v917_v12 }
 0x85f   :  { %v907_v27 = vmul.f32 %v906_v18, %v893_v47 }
 0x860   :  { %v930_v26 = vor.u32 1.1754944e-38, %v929_v19  ;;  %vm928_vm4 = vcmp.eq.f32.partialorder %v927_v22, 8.507059e+37 }
 0x864   :  { %v2297_v14 = vpop.eup %2296 }
 0x865   :  { %v919_v16 = vmul.f32 %v2297_v14, %v917_v12  ;;  %vm924_vm1 = vweird.f32 %v2297_v14 }
 0x866   :  { %vm925_vm3 = vmor %vm923_vm2, %vm924_vm1 }
 0x867   :  { %v920_v17 = vsub.f32 1.0, %v919_v16 }
 0x868   :  { %v793_v20 = vpop.f32.mrf.mxu3 }
 0x869   :  { %v921_v21 = vmul.f32 %v2297_v14, %v920_v17  ;;  %v794_v23 = vadd.f32 %v2693_v59, %v793_v20 }
 0x86b   :  { %v922_v24 = vadd.f32 %v2297_v14, %v921_v21  ;;  %v797_v25 = vadd.f32 %v794_v23, %v2562_v52 }
 0x86d   :  { %v926_v28 = vsel %vm925_vm3, %v2297_v14, %v922_v24  ;;  %v803_v29 = vsel %vm67_vm0, %v797_v25, 0.0  ;;  %v2810_v24 = vld [vmem:[%s3114_s14] ss:$0 sm:$0xff] }
 0x86e   :  { %v931_v30 = vsel %vm928_vm4, %v930_v26, %v926_v28  ;;  %804 = vadd.xlane.f32.xlu1 %v803_v29  ;;  %v2815_v29 = vld [vmem:[%s3115_s15] ss:$0 sm:$0xff] }
 0x86f   :  { %v932_v31 = vmul.f32 %v931_v30, %v907_v27 }
 0x871   :  { %v2147_v32 = vclamps-f32 %v932_v31, 1.0 }
 0x873   :  { %v975_v36 = vadd.f32 1.0, %v2147_v32 }
 0x875   :  { %v977_v38 = vmul.f32 %v975_v36, %v891_v35 }
 0x877   :  { %2149 = vmatmul.msk.f32.vlgmr.msrb.gmra.mxu2 %vm991_vm5, %v977_v38 }
 0x8e1   :  { %v805_v59 = vpop.xlane.xlu1 %804 }
 0x8e2   :  { %v807_v52 = vmul.f32 %v805_v59, %v2532_v10 }
 0x8e4   :  { %v809_v40 = vsub.f32 %v797_v25, %v807_v52 }
 0x8e6   :  { %v811_v41 = vmul.f32 %v809_v40, %v809_v40 }
 0x8e8   :  { %v815_v42 = vsel %vm67_vm0, %v811_v41, 0.0 }
 0x8e9   :  { %816 = vadd.xlane.f32.xlu0 %v815_v42 }
 0x8fa   :  { %v1015_v45 = vpop.f32.mrf.mxu2 }
 0x8fb   :  { %v1016_v46 = vadd.f32 %v2779_v43, %v1015_v45 }
 0x8fd   :  { %v1021_v47 = vadd.f32 %v1016_v46, %v2732_v39 }
 0x8ff   :  { %v1025_v48 = vsel %vm67_vm0, %v1021_v47, 0.0 }
 0x900   :  { %1026 = vadd.xlane.f32.xlu2 %v1025_v48 }
 0x95c   :  { %v817_v49 = vpop.xlane.xlu0 %816 }
 0x95d   :  { %v819_v51 = vmul.f32 %v817_v49, %v2532_v10 }
 0x95f   :  { %v821_v53 = vadd.f32 1e-12, %v819_v51 }
 0x961   :  { %2298 = vrsqrt.f32 %v821_v53  ;;  %vm838_vm7 = vweird.f32 %v821_v53 }
 0x967   :  { %v2299_v54 = vpop.eup %2298 }
 0x968   :  { %v833_v55 = vmul.f32 %v2299_v54, %v821_v53  ;;  %vm839_vm6 = vweird.f32 %v2299_v54 }
 0x969   :  { %vm840_vm13 = vmor %vm838_vm7, %vm839_vm6 }
 0x96a   :  { %v834_v56 = vmul.f32 %v2299_v54, %v833_v55 }
 0x96c   :  { %v835_v57 = vmul.f32 0.5, %v834_v56 }
 0x96e   :  { %v836_v58 = vsub.f32 1.5, %v835_v57 }
 0x970   :  { %v837_v60 = vmul.f32 %v2299_v54, %v836_v58 }
 0x972   :  { %v841_v61 = vsel %vm840_vm13, %v2299_v54, %v837_v60 }
 0x973   :  { %v1027_v62 = vpop.xlane.xlu2 %1026  ;;  %v843_v39 = vmul.f32 %v841_v61, %v809_v40 }
 0x974   :  { %v1031_v63 = vmul.f32 %v1027_v62, %v2532_v10 }
 0x975   :  { %v848_v0 = vmul.f32 %v2723_v33, %v843_v39  ;;  %v2153_v33 = vld [vmem:[%s3104_s4 + $0x30] sm:$0xff] }
 0x976   :  { %v1033_v1 = vsub.f32 %v1021_v47, %v1031_v63  ;;  %1108 = vmatpush.msra.mxu1 %v2153_v33 }
 0x977   :  { %v2788_v2 = vadd.f32 %v2728_v37, %v848_v0  ;;  %v2152_v37 = vld [vmem:[%s3104_s4 + $0x28] sm:$0xff]  ;;  %s3149_s4 = smov 72  }
 0x978   :  { %v1035_v3 = vmul.f32 %v1033_v1, %v1033_v1  ;;  %1109 = vmatpush.msra.mxu1 %v2152_v37 }
 0x979   :  { %2146 = vmatmul.msk.f32.gmra.mxu0 %vm67_vm0, %v2788_v2 }
 0x97a   :  { %v1037_v34 = vsel %vm67_vm0, %v1035_v3, 0.0  ;;  %1110 = vmatpush.msra.mxu1 %v2151_v5 }
 0x97b   :  { %1038 = vadd.xlane.f32.xlu0 %v1037_v34  ;;  %v2827_v34 = vld [vmem:[%s3105_s5 + $0x1] ss:$0 sm:$0xff]  ;;  %s3150_s5 = smov 112  }
 0x9ee   :  { %v1039_v6 = vpop.xlane.xlu0 %1038 }
 0x9ef   :  { %v1043_v7 = vmul.f32 %v1039_v6, %v2532_v10 }
 0x9f1   :  { %v1045_v8 = vadd.f32 1e-12, %v1043_v7 }
 0x9f3   :  { %2300 = vrsqrt.f32 %v1045_v8  ;;  %vm1053_vm15 = vweird.f32 %v1045_v8 }
 0x9f6   :  { %v888_v50 = vpop.f32.mrf.mxu0 }
 0x9f7   :  { %v889_v9 = vadd.f32 %v2743_v44, %v888_v50 }
 0x9f9   :  { %v2301_v11 = vpop.eup %2300  ;;  %v894_v12 = vmul.f32 0.70710677, %v889_v9  ;;  %v892_v0 = vmul.f32 0.5, %v889_v9 }
 0x9fa   :  { %v1048_v13 = vmul.f32 %v2301_v11, %v1045_v8  ;;  %vm1054_vm14 = vweird.f32 %v2301_v11 }
 0x9fb   :  { %v935_v14 = vmul.f32 %v894_v12, %v894_v12  ;;  %vm1055_vm1 = vmor %vm1053_vm15, %vm1054_vm14 }
 0x9fc   :  { %v1049_v15 = vmul.f32 %v2301_v11, %v1048_v13 }
 0x9fd   :  { %v936_v16 = vmin.f32 %v935_v14, 16.0 }
 0x9fe   :  { %v1050_v17 = vmul.f32 0.5, %v1049_v15 }
 0x9ff   :  { %v937_v18 = vmul.f32 2.1237322e-06, %v936_v16  ;;  %v948_v19 = vmul.f32 3.8918573e-05, %v936_v16 }
 0xa00   :  { %v1051_v20 = vsub.f32 1.5, %v1050_v17 }
 0xa01   :  { %v938_v21 = vadd.f32 0.00028619796, %v937_v18  ;;  %v949_v22 = vadd.f32 0.001143296, %v948_v19 }
 0xa02   :  { %v1052_v23 = vmul.f32 %v2301_v11, %v1051_v20 }
 0xa03   :  { %v939_v44 = vmul.f32 %v938_v21, %v936_v16  ;;  %v950_v25 = vmul.f32 %v949_v22, %v936_v16 }
 0xa04   :  { %v1056_v26 = vsel %vm1055_vm1, %v2301_v11, %v1052_v23 }
 0xa05   :  { %v1067_v27 = vmul.f32 %v1056_v26, %v1033_v1  ;;  %v951_v28 = vadd.f32 0.014752088, %v950_v25  ;;  %v940_v30 = vadd.f32 0.0036580483, %v939_v44 }
 0xa07   :  { %v1072_v31 = vmul.f32 %v2810_v24, %v1067_v27  ;;  %v952_v32 = vmul.f32 %v951_v28, %v936_v16  ;;  %v941_v38 = vmul.f32 %v940_v30, %v936_v16 }
 0xa09   :  { %v953_v35 = vadd.f32 0.112945676, %v952_v32  ;;  %v2819_v36 = vadd.f32 %v2815_v29, %v1072_v31  ;;  %v942_v40 = vadd.f32 0.05243302, %v941_v38 }
 0xa0b   :  { %v954_v59 = vmul.f32 %v953_v35, %v936_v16  ;;  %2156 = vmatmul.msk.f32.vlgmr.msra.gmra.mxu1 %vm67_vm0, %v2819_v36  ;;  %v943_v45 = vmul.f32 %v942_v40, %v936_v16 }
 0xa0d   :  { %v955_v52 = vadd.f32 0.4994258, %v954_v59  ;;  %v944_v46 = vadd.f32 0.18741608, %v943_v45 }
 0xa0f   :  { %v956_v41 = vmul.f32 %v955_v52, %v936_v16  ;;  %v945_v48 = vmul.f32 %v944_v46, %v936_v16  ;;  %v2860_v16 = vld [vmem:[%s3145_s0] ss:$0 sm:$0xff] }
 0xa11   :  { %v957_v42 = vadd.f32 1.0, %v956_v41  ;;  %v946_v54 = vadd.f32 1.1283791, %v945_v48 }
 0xa13   :  { %2302 = vrcp.f32 %v957_v42  ;;  %v969_v53 = vand.u32 2147483648, %v957_v42  ;;  %v967_v56 = vand.u32 2147483647, %v957_v42  ;;  %vm963_vm3 = vweird.f32 %v957_v42 }
 0xa14   :  { %v947_v60 = vmul.f32 %v946_v54, %v894_v12 }
 0xa15   :  { %v970_v58 = vor.u32 1.1754944e-38, %v969_v53  ;;  %vm968_vm6 = vcmp.eq.f32.partialorder %v967_v56, 8.507059e+37 }
 0xa19   :  { %v2303_v47 = vpop.eup %2302 }
 0xa1a   :  { %v959_v49 = vmul.f32 %v2303_v47, %v957_v42  ;;  %vm964_vm2 = vweird.f32 %v2303_v47 }
 0xa1b   :  { %vm965_vm4 = vmor %vm963_vm3, %vm964_vm2 }
 0xa1c   :  { %v960_v51 = vsub.f32 1.0, %v959_v49 }
 0xa1e   :  { %v961_v55 = vmul.f32 %v2303_v47, %v960_v51 }
 0xa20   :  { %v962_v57 = vadd.f32 %v2303_v47, %v961_v55 }
 0xa22   :  { %v966_v61 = vsel %vm965_vm4, %v2303_v47, %v962_v57 }
 0xa23   :  { %v971_v62 = vsel %vm968_vm6, %v970_v58, %v966_v61 }
 0xa24   :  { %v972_v39 = vmul.f32 %v971_v62, %v947_v60 }
 0xa26   :  { %v2148_v63 = vclamps-f32 %v972_v39, 1.0 }
 0xa28   :  { %v976_v1 = vadd.f32 1.0, %v2148_v63 }
 0xa2a   :  { %v978_v3 = vmul.f32 %v976_v1, %v892_v0 }
 0xa2c   :  { %2150 = vmatmul.msk.f32.gmra.mxu2 %vm991_vm5, %v978_v3 }
 0xa88   :  { %v1112_v4 = vpop.f32.mrf.mxu1 }
 0xa89   :  { %v1113_v33 = vadd.f32 %v2827_v34, %v1112_v4 }
 0xa8b   :  { %1118 = vst.msk [vmem:[#allocation2] sm:$0xff] %vm166_vm8, %v1113_v33 }
 0xa92   :  { %v2831_v37 = vld [vmem:[#allocation2] sm:$0xff] }
 0xa93   :  { %1123 = vrot.lane.b32.xlu2 %v2831_v37, %s3146_s29 }
 0xa9b   :  { %1194 = vrot.lane.b32.xlu2 %v2831_v37, %s3147_s23 }
 0xaa3   :  { %1268 = vrot.lane.b32.xlu2 %v2831_v37, %s3148_s24 }
 0xaab   :  { %1342 = vrot.lane.b32.xlu2 %v2831_v37, %s3149_s4 }
 0xaaf   :  { %v1018_v5 = vpop.f32.mrf.mxu2 }
 0xab0   :  { %v1019_v6 = vadd.f32 %v2779_v43, %v1018_v5 }
 0xab2   :  { %v1022_v7 = vadd.f32 %v1019_v6, %v2788_v2 }
 0xab3   :  { %1266 = vrot.lane.b32.xlu2 %v2831_v37, %s3150_s5 }
 0xab4   :  { %v1028_v8 = vsel %vm67_vm0, %v1022_v7, 0.0 }
 0xab5   :  { %1029 = vadd.xlane.f32.xlu0 %v1028_v8 }
 0xaed   :  { %v1124_v50 = vpop.permute.xlu2 %1123 }
 0xaee   :  { %2158 = vmatpush.xpose.msk.msrb.mxu3 %vm174_vm9, %v1124_v50 }
 0xaf1   :  { %2159 = vmatmul.msk.f32.vlgmr.msrb.gmra.mxu3 %vm174_vm9, %v2831_v37 }
 0xaf5   :  { %v1195_v9 = vpop.permute.xlu2 %1194 }
 0xaf6   :  { %2161 = vmatpush.xpose.msk.msrb.mxu1 %vm174_vm9, %v1195_v9 }
 0xafd   :  { %v1269_v11 = vpop.permute.xlu2 %1268 }
 0xb05   :  { %v1343_v12 = vpop.permute.xlu2 %1342 }
 0xb06   :  { %2167 = vmatpush.xpose.msk.msra.mxu1 %vm174_vm9, %v1343_v12 }
 0xb0d   :  { %v1267_v60 = vpop.permute.xlu2 %1266 }
 0xb28   :  { %v1030_v43 = vpop.xlane.xlu0 %1029 }
 0xb29   :  { %v1032_v2 = vmul.f32 %v1030_v43, %v2532_v10 }
 0xb2b   :  { %v1034_v13 = vsub.f32 %v1022_v7, %v1032_v2  ;;  %v2247_v2 = vld [vmem:[%s3145_s0 + $0x1] ss:$0 sm:$0xff] }
 0xb2d   :  { %v1036_v14 = vmul.f32 %v1034_v13, %v1034_v13 }
 0xb2f   :  { %v1040_v15 = vsel %vm67_vm0, %v1036_v14, 0.0 }
 0xb30   :  { %1041 = vadd.xlane.f32.xlu0 %v1040_v15 }
 0xb44   :  { %1192 = vrot.lane.b32.xlu0 %v2831_v37, %s3151_s25 }
 0xb4c   :  { %1340 = vrot.lane.b32.xlu0 %v2831_v37, %s3152_s3 }
 0xb74   :  { %v1146_v17 = vpop.f32.mrf.mxu3 }
 0xb75   :  { %v1149_v18 = vmul.f32 0.35355338, %v1146_v17 }
 0xb77   :  { %v1151_v19 = vadd.f32 %v2860_v16, %v1149_v18 }
 0xb79   :  { %v1152_v20 = vsel %vm174_vm9, %v1151_v19, -inf }
 0xb7a   :  { %1153 = vmax.xlane.f32.xlu1 %v1152_v20 }
 0xb93   :  { %1163 = vrot.lane.b32.xlu1 %v2831_v37, %s3153_s27 }
 0xba3   :  { %v1042_v21 = vpop.xlane.xlu0 %1041 }
 0xba4   :  { %v1044_v22 = vmul.f32 %v1042_v21, %v2532_v10 }
 0xba6   :  { %v1046_v23 = vadd.f32 1e-12, %v1044_v22 }
 0xba8   :  { %2304 = vrsqrt.f32 %v1046_v23  ;;  %vm1063_vm13 = vweird.f32 %v1046_v23 }
 0xbae   :  { %v2305_v44 = vpop.eup %2304 }
 0xbaf   :  { %v1058_v25 = vmul.f32 %v2305_v44, %v1046_v23  ;;  %vm1064_vm7 = vweird.f32 %v2305_v44 }
 0xbb0   :  { %vm1065_vm14 = vmor %vm1063_vm13, %vm1064_vm7 }
 0xbb1   :  { %v1059_v26 = vmul.f32 %v2305_v44, %v1058_v25 }
 0xbb3   :  { %v1060_v27 = vmul.f32 0.5, %v1059_v26 }
 0xbb5   :  { %v1061_v28 = vsub.f32 1.5, %v1060_v27 }
 0xbb6   :  { %v1193_v59 = vpop.permute.xlu0 %1192 }
 0xbb7   :  { %v1062_v30 = vmul.f32 %v2305_v44, %v1061_v28 }
 0xbb9   :  { %v1066_v31 = vsel %vm1065_vm14, %v2305_v44, %v1062_v30 }
 0xbba   :  { %v1068_v32 = vmul.f32 %v1066_v31, %v1034_v13 }
 0xbbc   :  { %v1073_v35 = vmul.f32 %v2810_v24, %v1068_v32 }
 0xbbe   :  { %v2869_v38 = vadd.f32 %v2815_v29, %v1073_v35  ;;  %v1341_v52 = vpop.permute.xlu0 %1340 }
 0xbc0   :  { %2157 = vmatmul.msk.f32.gmra.mxu1 %vm67_vm0, %v2869_v38 }
 0xbc8   :  { %2162 = vmatmul.msk.f32.vlgmr.msrb.gmra.mxu1 %vm174_vm9, %v1193_v59 }
 0xbd0   :  { %2168 = vmatmul.msk.f32.vlgmr.msra.gmra.mxu1 %vm174_vm9, %v1341_v52 }
 0xbed   :  { %v1154_v40 = vpop.xlane.xlu1 %1153 }
 0xbee   :  { %v1155_v45 = vsub.f32 %v1151_v19, %v1154_v40 }
 0xbf0   :  { %v1156_v46 = vmul.f32 1.442695, %v1155_v45 }
 0xbf2   :  { %2306 = vpow2.f32 %v1156_v46 }
 0xbf8   :  { %v2307_v48 = vpop.eup %2306 }
 0xbf9   :  { %v1158_v51 = vsel %vm174_vm9, %v2307_v48, 0.0 }
 0xc05   :  { %v1164_v41 = vpop.permute.xlu1 %1163 }
 0xc06   :  { %1184 = vmatpush.msrb.mxu0 %v1164_v41 }
 0xc08   :  { %2164 = vmatpush.xpose.msk.msra.mxu0 %vm174_vm9, %v1269_v11 }
 0xc3d   :  { %v1115_v42 = vpop.f32.mrf.mxu1 }
 0xc3e   :  { %v1116_v24 = vadd.f32 %v2827_v34, %v1115_v42 }
 0xc40   :  { %1119 = vst.msk [vmem:[#allocation2 + $0x8] sm:$0xff] %vm166_vm8, %v1116_v24 }
 0xc45   :  { %v1217_v47 = vpop.f32.mrf.mxu1 }
 0xc46   :  { %v1220_v49 = vmul.f32 0.35355338, %v1217_v47 }
 0xc47   :  { %v2878_v29 = vld [vmem:[#allocation2 + $0x8] sm:$0xff] }
 0xc48   :  { %1484 = vrot.lane.b32.xlu0 %v2878_v29, %s3151_s25  ;;  %1486 = vrot.lane.b32.xlu2 %v2878_v29, %s3147_s23  ;;  %v1221_v53 = vadd.f32 %v2860_v16, %v1220_v49 }
 0xc49   :  { %1415 = vrot.lane.b32.xlu1 %v2878_v29, %s3146_s29 }
 0xc4a   :  { %v1222_v55 = vsel %vm174_vm9, %v1221_v53, -inf }
 0xc4d   :  { %v1365_v54 = vpop.f32.mrf.mxu1 }
 0xc4e   :  { %v1368_v56 = vmul.f32 0.35355338, %v1365_v54 }
 0xc50   :  { %1634 = vrot.lane.b32.xlu2 %v2878_v29, %s3149_s4  ;;  %v1369_v57 = vadd.f32 %v2860_v16, %v1368_v56 }
 0xc51   :  { %1560 = vrot.lane.b32.xlu1 %v2878_v29, %s3148_s24 }
 0xc52   :  { %v1370_v58 = vsel %vm174_vm9, %v1369_v57, -inf }
 0xc59   :  { %1632 = vrot.lane.b32.xlu1 %v2878_v29, %s3152_s3  ;;  %s2089_s3 = sshll.u32 %s3118_s18, 4  ;;  %s2090_s3 = int_to_ptr.hbm [resolvable:$true] %s2089_s3 }
 0xc72   :  { %1159 = vadd.xlane.f32.xlu0 %v1158_v51 }
 0xc79   :  { %1223 = vmax.xlane.f32.xlu2 %v1222_v55 }
 0xc83   :  { %1371 = vmax.xlane.f32.xlu1 %v1370_v58 }
 0xc86   :  { %1558 = vrot.lane.b32.xlu0 %v2878_v29, %s3150_s5 }
 0xca2   :  { %v1487_v61 = vpop.permute.xlu2 %1486 }
 0xca3   :  { %2173 = vmatpush.xpose.msk.msrb.mxu1 %vm174_vm9, %v1487_v61 }
 0xcaa   :  { %v1635_v62 = vpop.permute.xlu2 %1634 }
 0xcab   :  { %2179 = vmatpush.xpose.msk.msra.mxu1 %vm174_vm9, %v1635_v62 }
 0xcba   :  { %v1485_v39 = vpop.permute.xlu0 %1484 }
 0xcbb   :  { %v1416_v63 = vpop.permute.xlu1 %1415  ;;  %2174 = vmatmul.msk.f32.vlgmr.msrb.gmra.mxu1 %vm174_vm9, %v1485_v39 }
 0xcc3   :  { %v1561_v0 = vpop.permute.xlu1 %1560 }
 0xccb   :  { %v1633_v1 = vpop.permute.xlu1 %1632 }
 0xccc   :  { %2180 = vmatmul.msk.f32.vlgmr.msra.gmra.mxu1 %vm174_vm9, %v1633_v1 }
 0xce5   :  { %v1160_v3 = vpop.xlane.xlu0 %1159 }
 0xce6   :  { %2308 = vrcp.f32 %v1160_v3 }
 0xcec   :  { %v2309_v34 = vpop.eup %2308  ;;  %v1224_v7 = vpop.xlane.xlu2 %1223 }
 0xced   :  { %v1162_v4 = vmul.f32 %v2309_v34, %v2307_v48  ;;  %v1225_v11 = vsub.f32 %v1221_v53, %v1224_v7 }
 0xcef   :  { %2160 = vmatmul.msk.f32.vlgmr.msrb.gmra.mxu0 %vm174_vm9, %v1162_v4  ;;  %v1226_v13 = vmul.f32 1.442695, %v1225_v11 }
 0xcf0   :  { %2170 = vmatpush.xpose.msk.msrb.mxu0 %vm174_vm9, %v1416_v63 }
 0xcf1   :  { %2310 = vpow2.f32 %v1226_v13 }
 0xcf6   :  { %v1372_v15 = vpop.xlane.xlu1 %1371 }
 0xcf7   :  { %2165 = vmatmul.msk.f32.vlgmr.msra.gmra.mxu0 %vm174_vm9, %v1267_v60  ;;  %v1373_v21 = vsub.f32 %v1369_v57, %v1372_v15  ;;  %v2311_v26 = vpop.eup %2310 }
 0xcf8   :  { %2176 = vmatpush.xpose.msk.msra.mxu0 %vm174_vm9, %v1561_v0  ;;  %v1559_v33 = vpop.permute.xlu0 %1558  ;;  %v1228_v28 = vsel %vm174_vm9, %v2311_v26, 0.0 }
 0xcf9   :  { %v1374_v44 = vmul.f32 1.442695, %v1373_v21 }
 0xcfb   :  { %2312 = vpow2.f32 %v1374_v44 }
 0xcff   :  { %2171 = vmatmul.msk.f32.vlgmr.msrb.gmra.mxu0 %vm174_vm9, %v2878_v29 }
 0xd01   :  { %v2313_v30 = vpop.eup %2312 }
 0xd02   :  { %v1376_v31 = vsel %vm174_vm9, %v2313_v30, 0.0 }
 0xd07   :  { %2177 = vmatmul.msk.f32.vlgmr.msra.gmra.mxu0 %vm174_vm9, %v1559_v33 }
 0xd38   :  { %v1509_v50 = vpop.f32.mrf.mxu1 }
 0xd39   :  { %v1512_v12 = vmul.f32 0.35355338, %v1509_v50 }
 0xd3b   :  { %v1513_v18 = vadd.f32 %v2247_v2, %v1512_v12 }
 0xd3d   :  { %v1514_v23 = vsel %vm174_vm9, %v1513_v18, -inf }
 0xd49   :  { %v1657_v19 = vpop.f32.mrf.mxu1 }
 0xd4a   :  { %v1660_v22 = vmul.f32 0.35355338, %v1657_v19 }
 0xd4c   :  { %v1661_v25 = vadd.f32 %v2247_v2, %v1660_v22 }
 0xd4e   :  { %v1662_v27 = vsel %vm174_vm9, %v1661_v25, -inf }
 0xd6c   :  { %v1186_v5 = vpop.f32.mrf.mxu0 }
 0xd6d   :  { %1189 = vst.msk [vmem:[#allocation3] sm:$0xff] %vm174_vm9, %v1186_v5 }
 0xd74   :  { %v1291_v6 = vpop.f32.mrf.mxu0 }
 0xd75   :  { %v1294_v8 = vmul.f32 0.35355338, %v1291_v6 }
 0xd77   :  { %v1295_v9 = vadd.f32 %v2860_v16, %v1294_v8 }
 0xd79   :  { %v1296_v43 = vsel %vm174_vm9, %v1295_v9, -inf }
 0xd7a   :  { %1297 = vmax.xlane.f32.xlu0 %v1296_v43 }
 0xd7c   :  { %v1438_v14 = vpop.f32.mrf.mxu0 }
 0xd7d   :  { %v1441_v17 = vmul.f32 0.35355338, %v1438_v14 }
 0xd7f   :  { %v1443_v20 = vadd.f32 %v2247_v2, %v1441_v17 }
 0xd81   :  { %v1444_v16 = vsel %vm174_vm9, %v1443_v20, -inf }
 0xd82   :  { %1445 = vmax.xlane.f32.xlu2 %v1444_v16  ;;  %1515 = vmax.xlane.f32.xlu0 %v1514_v23 }
 0xd84   :  { %v1583_v48 = vpop.f32.mrf.mxu0 }
 0xd85   :  { %v1586_v54 = vmul.f32 0.35355338, %v1583_v48 }
 0xd87   :  { %v1587_v58 = vadd.f32 %v2247_v2, %v1586_v54 }
 0xd89   :  { %v1588_v39 = vsel %vm174_vm9, %v1587_v58, -inf }
 0xd8a   :  { %1663 = vmax.xlane.f32.xlu2 %v1662_v27  ;;  %1229 = vadd.xlane.f32.xlu0 %v1228_v28 }
 0xd92   :  { %1377 = vadd.xlane.f32.xlu2 %v1376_v31 }
 0xd9e   :  { %1233 = vrot.lane.b32.xlu0 %v2831_v37, %s2415_s20 }
 0xda6   :  { %1381 = vrot.lane.b32.xlu0 %v2831_v37, %s2416_s21 }
 0xdaa   :  { %1307 = vrot.lane.b32.xlu2 %v2831_v37, %s2417_s1 }
 0xdae   :  { %1455 = vrot.lane.b32.xlu0 %v2878_v29, %s3153_s27  ;;  %s2103_s27 = sshll.u32 %s3119_s19, 4  ;;  %s2104_s27 = int_to_ptr.hbm [resolvable:$true] %s2103_s27 }
 0xdb2   :  { %1525 = vrot.lane.b32.xlu2 %v2878_v29, %s2415_s20 }
 0xdb6   :  { %1599 = vrot.lane.b32.xlu0 %v2878_v29, %s2417_s1 }
 0xded   :  { %v1298_v32 = vpop.xlane.xlu0 %1297 }
 0xdee   :  { %v1299_v51 = vsub.f32 %v1295_v9, %v1298_v32 }
 0xdf0   :  { %v1300_v56 = vmul.f32 1.442695, %v1299_v51 }
 0xdf5   :  { %v1446_v35 = vpop.xlane.xlu2 %1445  ;;  %v1516_v59 = vpop.xlane.xlu0 %1515 }
 0xdf6   :  { %v1517_v52 = vsub.f32 %v1513_v18, %v1516_v59  ;;  %v1447_v62 = vsub.f32 %v1443_v20, %v1446_v35  ;;  %v2185_v59 = vld [vmem:[%s3106_s6 + $0x38] sm:$0xff] }
 0xdf7   :  { %1734 = vmatpush.msrb.mxu0 %v2185_v59 }
 0xdf8   :  { %v1518_v40 = vmul.f32 1.442695, %v1517_v52  ;;  %v1448_v0 = vmul.f32 1.442695, %v1447_v62  ;;  %v2184_v52 = vld [vmem:[%s3106_s6 + $0x30] sm:$0xff] }
 0xdf9   :  { %1735 = vmatpush.msrb.mxu0 %v2184_v52 }
 0xdfa   :  { %2314 = vpow2.f32 %v1518_v40  ;;  %v2183_v40 = vld [vmem:[%s3106_s6 + $0x28] sm:$0xff] }
 0xdfb   :  { %1736 = vmatpush.msrb.mxu0 %v2183_v40 }
 0xdfd   :  { %v1664_v41 = vpop.xlane.xlu2 %1663  ;;  %v1230_v46 = vpop.xlane.xlu0 %1229 }
 0xdfe   :  { %v1665_v42 = vsub.f32 %v1661_v25, %v1664_v41  ;;  %v2182_v41 = vld [vmem:[%s3106_s6 + $0x20] sm:$0xff] }
 0xdff   :  { %1737 = vmatpush.msrb.mxu0 %v2182_v41 }
 0xe00   :  { %v1666_v24 = vmul.f32 1.442695, %v1665_v42  ;;  %v2315_v45 = vpop.eup %2314 }
 0xe01   :  { %v1520_v37 = vsel %vm174_vm9, %v2315_v45, 0.0 }
 0xe02   :  { %2316 = vpow2.f32 %v1666_v24  ;;  %1521 = vadd.xlane.f32.xlu1 %v1520_v37 }
 0xe03   :  { %2318 = vrcp.f32 %v1230_v46 }
 0xe05   :  { %v1378_v47 = vpop.xlane.xlu2 %1377 }
 0xe06   :  { %2320 = vrcp.f32 %v1378_v47 }
 0xe07   :  { %2322 = vpow2.f32 %v1300_v56 }
 0xe08   :  { %v2934_v49 = vpop.eup %2316  ;;  %2324 = vpow2.f32 %v1448_v0 }
 0xe09   :  { %v1668_v53 = vsel %vm174_vm9, %v2934_v49, 0.0  ;;  %v2319_v55 = vpop.eup %2318 }
 0xe0a   :  { %1669 = vadd.xlane.f32.xlu1 %v1668_v53  ;;  %v1232_v60 = vmul.f32 %v2319_v55, %v2311_v26 }
 0xe0c   :  { %v2321_v63 = vpop.eup %2320 }
 0xe0d   :  { %v1308_v57 = vpop.permute.xlu2 %1307  ;;  %v2323_v1 = vpop.eup %2322  ;;  %v1380_v3 = vmul.f32 %v2321_v63, %v2313_v30 }
 0xe0e   :  { %1328 = vmatpush.msra.mxu2 %v1308_v57  ;;  %v1302_v33 = vsel %vm174_vm9, %v2323_v1, 0.0  ;;  %v2325_v5 = vpop.eup %2324 }
 0xe0f   :  { %v1450_v7 = vsel %vm174_vm9, %v2325_v5, 0.0 }
 0xe10   :  { %v1234_v61 = vpop.permute.xlu0 %1233 }
 0xe11   :  { %1254 = vmatpush.msra.mxu3 %v1234_v61 }
 0xe12   :  { %2163 = vmatmul.msk.f32.vlgmr.msra.gmra.mxu3 %vm174_vm9, %v1232_v60  ;;  %1589 = vmax.xlane.f32.xlu1 %v1588_v39 }
 0xe15   :  { %v1526_v4 = vpop.permute.xlu2 %1525 }
 0xe18   :  { %v1382_v34 = vpop.permute.xlu0 %1381 }
 0xe19   :  { %1402 = vmatpush.msrb.mxu3 %v1382_v34  ;;  %v2193_v34 = vld [vmem:[%s3110_s10 + $0x30] sm:$0xff] }
 0xe1a   :  { %2169 = vmatmul.msk.f32.vlgmr.msrb.gmra.mxu3 %vm174_vm9, %v1380_v3  ;;  %1303 = vadd.xlane.f32.xlu1 %v1302_v33  ;;  %v2194_v3 = vld [vmem:[%s3110_s10 + $0x38] sm:$0xff] }
 0xe1b   :  { %1546 = vmatpush.msra.mxu3 %v1526_v4  ;;  %v2192_v4 = vld [vmem:[%s3110_s10 + $0x28] sm:$0xff] }
 0xe20   :  { %v1456_v6 = vpop.permute.xlu0 %1455 }
 0xe21   :  { %1476 = vmatpush.msrb.mxu2 %v1456_v6 }
 0xe22   :  { %1451 = vadd.xlane.f32.xlu1 %v1450_v7 }
 0xe28   :  { %v1600_v21 = vpop.permute.xlu0 %1599 }
 0xe75   :  { %v1522_v8 = vpop.xlane.xlu1 %1521 }
 0xe76   :  { %2326 = vrcp.f32 %v1522_v8 }
 0xe7c   :  { %v2327_v50 = vpop.eup %2326 }
 0xe7d   :  { %v1524_v9 = vmul.f32 %v2327_v50, %v2315_v45  ;;  %v1670_v11 = vpop.xlane.xlu1 %1669 }
 0xe7f   :  { %2175 = vmatmul.msk.f32.vlgmr.msra.gmra.mxu3 %vm174_vm9, %v1524_v9 }
 0xe85   :  { %v1590_v12 = vpop.xlane.xlu1 %1589 }
 0xe86   :  { %v1591_v43 = vsub.f32 %v1587_v58, %v1590_v12 }
 0xe88   :  { %v1592_v2 = vmul.f32 1.442695, %v1591_v43 }
 0xe8a   :  { %2328 = vpow2.f32 %v1592_v2 }
 0xe8d   :  { %v1304_v13 = vpop.xlane.xlu1 %1303 }
 0xe8e   :  { %2330 = vrcp.f32 %v1304_v13 }
 0xe90   :  { %v2329_v14 = vpop.eup %2328 }
 0xe91   :  { %v1594_v15 = vsel %vm174_vm9, %v2329_v14, 0.0 }
 0xe92   :  { %1595 = vadd.xlane.f32.xlu1 %v1594_v15 }
 0xe94   :  { %v2331_v17 = vpop.eup %2330 }
 0xe95   :  { %v1256_v18 = vpop.f32.mrf.mxu3  ;;  %v1306_v19 = vmul.f32 %v2331_v17, %v2323_v1  ;;  %v1452_v20 = vpop.xlane.xlu1 %1451  ;;  %v2249_v17 = vld [vmem:[%s3108_s8 + $0x1] ss:$0 sm:$0xff] }
 0xe96   :  { %1260 = vrot.lane.b32.xlu2 %v1256_v18, %s2418_s22  ;;  %2332 = vrcp.f32 %v1452_v20  ;;  %v2250_v20 = vld [vmem:[%s3109_s9 + $0x1] ss:$0 sm:$0xff] }
 0xe97   :  { %2166 = vmatmul.msk.f32.vlgmr.msra.gmra.mxu2 %vm174_vm9, %v1306_v19 }
 0xe98   :  { %1620 = vmatpush.msra.mxu2 %v1600_v21 }
 0xe9c   :  { %v2333_v22 = vpop.eup %2332 }
 0xe9d   :  { %v1404_v16 = vpop.f32.mrf.mxu3  ;;  %v1454_v23 = vmul.f32 %v2333_v22, %v2325_v5 }
 0xe9e   :  { %1408 = vrot.lane.b32.xlu2 %v1404_v16, %s2420_s2 }
 0xe9f   :  { %2172 = vmatmul.msk.f32.vlgmr.msrb.gmra.mxu2 %vm174_vm9, %v1454_v23 }
 0xea0   :  { %1833 = vmatpush.msrb.mxu2 %v2194_v3 }
 0xea2   :  { %1834 = vmatpush.msrb.mxu2 %v2193_v34 }
 0xea4   :  { %1835 = vmatpush.msrb.mxu2 %v2192_v4 }
 0xeab   :  { %1673 = vrot.lane.b32.xlu1 %v2878_v29, %s2416_s21 }
 0xef0   :  { %v1261_v44 = vpop.permute.xlu2 %1260 }
 0xef1   :  { %1263 = vst.msk [vmem:[#allocation3] sm:$0xff] %vm313_vm10, %v1261_v44 }
 0xef8   :  { %v1409_v24 = vpop.permute.xlu2 %1408 }
 0xf02   :  { %v1548_v29 = vpop.f32.mrf.mxu3 }
 0xf05   :  { %v1596_v25 = vpop.xlane.xlu1 %1595 }
 0xf06   :  { %2334 = vrcp.f32 %v1596_v25 }
 0xf07   :  { %2336 = vrcp.f32 %v1670_v11 }
 0xf0c   :  { %v2335_v26 = vpop.eup %2334 }
 0xf0d   :  { %v1598_v27 = vmul.f32 %v2335_v26, %v2329_v14  ;;  %v2337_v28 = vpop.eup %2336 }
 0xf0e   :  { %v1672_v31 = vmul.f32 %v2337_v28, %v2934_v49  ;;  %v2248_v49 = vld [vmem:[%s3107_s7 + $0x1] ss:$0 sm:$0xff] }
 0xf0f   :  { %2178 = vmatmul.msk.f32.vlgmr.msra.gmra.mxu2 %vm174_vm9, %v1598_v27 }
 0xf1a   :  { %v1330_v30 = vpop.f32.mrf.mxu2 }
 0xf1b   :  { %1334 = vrot.lane.b32.xlu0 %v1330_v30, %s2419_s28 }
 0xf1d   :  { %v1674_v32 = vpop.permute.xlu1 %1673 }
 0xf1e   :  { %1694 = vmatpush.msrb.mxu3 %v1674_v32 }
 0xf1f   :  { %2181 = vmatmul.msk.f32.vlgmr.msrb.gmra.mxu3 %vm174_vm9, %v1672_v31 }
 0xf22   :  { %v1478_v35 = vpop.f32.mrf.mxu2 }
 0xf23   :  { %1481 = vst.msk [vmem:[#allocation3 + $0x8] sm:$0xff] %vm174_vm9, %v1478_v35  ;;  %1552 = vrot.lane.b32.xlu0 %v1548_v29, %s2418_s22  ;;  %v3017_v29 = vld [vmem:[%s3111_s11 + $0x1] ss:$0 sm:$0xff] }
 0xf8d   :  { %v1335_v42 = vpop.permute.xlu0 %1334 }
 0xf8e   :  { %1337 = vst.msk [vmem:[#allocation3] sm:$0xff] %vm388_vm11, %v1335_v42 }
 0xf8f   :  { %1411 = vst.msk [vmem:[#allocation3] sm:$0xff] %vm463_vm12, %v1409_v24 }
 0xf92   :  { %v1622_v45 = vpop.f32.mrf.mxu2 }
 0xf93   :  { %1626 = vrot.lane.b32.xlu2 %v1622_v45, %s2419_s28  ;;  %s2423_s28 = smov [#allocation6]  }
 0xf94   :  { %s2101_s26 = sshll.u32 %s2423_s28, 4  ;;  %s2102_s26 = int_to_ptr.vmem [resolvable:$true] %s2101_s26 }
 0xf95   :  { %v1553_v37 = vpop.permute.xlu0 %1552 }
 0xf96   :  { %1555 = vst.msk [vmem:[#allocation3 + $0x8] sm:$0xff] %vm313_vm10, %v1553_v37  ;;  %v1704_v46 = vld [vmem:[#allocation3] sm:$0xff]  ;;  %v2207_v37 = vld [vmem:[%s3112_s12 + $0x78] sm:$0xff] }
 0xf97   :  { %2187 = vmatmul.msk.f32.vlgmr.msrb.gmra.mxu0 %vm67_vm0, %v1704_v46  ;;  %1960 = vmatpush.msrb.mxu1 %v2207_v37 }
 0xfa2   :  { %v1696_v47 = vpop.f32.mrf.mxu3 }
 0xfa3   :  { %1700 = vrot.lane.b32.xlu0 %v1696_v47, %s2420_s2  ;;  %s2422_s2 = smov 128  }
 0xfed   :  { %v1627_v48 = vpop.permute.xlu2 %1626 }
 0xfee   :  { %1629 = vst.msk [vmem:[#allocation3 + $0x8] sm:$0xff] %vm388_vm11, %v1627_v48  ;;  %v2206_v48 = vld [vmem:[%s3112_s12 + $0x70] sm:$0xff] }
 0xfef   :  { %1961 = vmatpush.msrb.mxu1 %v2206_v48 }
0x1014   :  { %v1739_v51 = vpop.f32.mrf.mxu0 }
0x1015   :  { %v1740_v53 = vadd.f32 %v2248_v49, %v1739_v51  ;;  %v1701_v54 = vpop.permute.xlu0 %1700 }
0x1016   :  { %1703 = vst.msk [vmem:[#allocation3 + $0x8] sm:$0xff] %vm463_vm12, %v1701_v54 }
0x1017   :  { %v1745_v55 = vadd.f32 %v1740_v53, %v2819_v36  ;;  %v2205_v53 = vld [vmem:[%s3112_s12 + $0x68] sm:$0xff] }
0x1018   :  { %1962 = vmatpush.msrb.mxu1 %v2205_v53 }
0x1019   :  { %v1751_v56 = vsel %vm67_vm0, %v1745_v55, 0.0 }
0x101a   :  { %1752 = vadd.xlane.f32.xlu1 %v1751_v56  ;;  %v2204_v56 = vld [vmem:[%s3112_s12 + $0x60] sm:$0xff] }
0x101b   :  { %1963 = vmatpush.msrb.mxu1 %v2204_v56 }
0x101d   :  { %v1705_v57 = vld [vmem:[#allocation3 + $0x8] sm:$0xff] }
0x101e   :  { %2188 = vmatmul.msk.f32.gmra.mxu0 %vm67_vm0, %v1705_v57 }
0x108d   :  { %v1753_v58 = vpop.xlane.xlu1 %1752 }
0x108e   :  { %v1757_v60 = vmul.f32 %v1753_v58, %v2532_v10  ;;  %v2203_v58 = vld [vmem:[%s3112_s12 + $0x58] sm:$0xff] }
0x108f   :  { %1964 = vmatpush.msrb.mxu1 %v2203_v58 }
0x1090   :  { %v1759_v61 = vsub.f32 %v1745_v55, %v1757_v60 }
0x1092   :  { %v1761_v62 = vmul.f32 %v1759_v61, %v1759_v61 }
0x1094   :  { %v1763_v39 = vsel %vm67_vm0, %v1761_v62, 0.0  ;;  %v2202_v62 = vld [vmem:[%s3112_s12 + $0x50] sm:$0xff] }
0x1095   :  { %1764 = vadd.xlane.f32.xlu0 %v1763_v39  ;;  %1965 = vmatpush.msrb.mxu1 %v2202_v62  ;;  %v2252_v62 = vld [vmem:[%s3113_s13 + $0x1] ss:$0 sm:$0xff] }
0x109b   :  { %v1742_v63 = vpop.f32.mrf.mxu0 }
0x109c   :  { %v1743_v0 = vadd.f32 %v2248_v49, %v1742_v63  ;;  %v2201_v63 = vld [vmem:[%s3112_s12 + $0x48] sm:$0xff] }
0x109d   :  { %1966 = vmatpush.msrb.mxu1 %v2201_v63 }
0x109e   :  { %v1746_v1 = vadd.f32 %v1743_v0, %v2869_v38  ;;  %v2191_v38 = vld [vmem:[%s3110_s10 + $0x20] sm:$0xff] }
0x109f   :  { %1836 = vmatpush.msrb.mxu2 %v2191_v38 }
0x10a0   :  { %v1754_v36 = vsel %vm67_vm0, %v1746_v1, 0.0 }
0x10a1   :  { %1755 = vadd.xlane.f32.xlu2 %v1754_v36 }
0x1108   :  { %v1765_v33 = vpop.xlane.xlu0 %1764 }
0x1109   :  { %v1769_v5 = vmul.f32 %v1765_v33, %v2532_v10 }
0x110b   :  { %v1771_v6 = vadd.f32 1e-12, %v1769_v5 }
0x110d   :  { %2338 = vrsqrt.f32 %v1771_v6  ;;  %vm1779_vm9 = vweird.f32 %v1771_v6 }
0x1113   :  { %v2339_v7 = vpop.eup %2338 }
0x1114   :  { %v1774_v8 = vmul.f32 %v2339_v7, %v1771_v6  ;;  %v1756_v50 = vpop.xlane.xlu2 %1755  ;;  %vm1780_vm8 = vweird.f32 %v2339_v7 }
0x1115   :  { %v1758_v9 = vmul.f32 %v1756_v50, %v2532_v10  ;;  %vm1781_vm10 = vmor %vm1779_vm9, %vm1780_vm8 }
0x1116   :  { %v1775_v11 = vmul.f32 %v2339_v7, %v1774_v8 }
0x1117   :  { %v1760_v12 = vsub.f32 %v1746_v1, %v1758_v9  ;;  %v2200_v1 = vld [vmem:[%s3112_s12 + $0x40] sm:$0xff] }
0x1118   :  { %v1776_v43 = vmul.f32 0.5, %v1775_v11  ;;  %1967 = vmatpush.msrb.mxu1 %v2200_v1 }
0x1119   :  { %v1762_v2 = vmul.f32 %v1760_v12, %v1760_v12 }
0x111a   :  { %v1777_v13 = vsub.f32 1.5, %v1776_v43 }
0x111b   :  { %v1766_v14 = vsel %vm67_vm0, %v1762_v2, 0.0 }
0x111c   :  { %v1778_v15 = vmul.f32 %v2339_v7, %v1777_v13  ;;  %1767 = vadd.xlane.f32.xlu2 %v1766_v14 }
0x111e   :  { %v1782_v18 = vsel %vm1781_vm10, %v2339_v7, %v1778_v15 }
0x111f   :  { %v1793_v19 = vmul.f32 %v1782_v18, %v1759_v61 }
0x1121   :  { %v1798_v21 = vmul.f32 %v2249_v17, %v1793_v19 }
0x1123   :  { %v3009_v22 = vadd.f32 %v2250_v20, %v1798_v21 }
0x1125   :  { %2196 = vmatmul.msk.f32.vlgmr.msrb.gmra.mxu2 %vm67_vm0, %v3009_v22 }
0x118f   :  { %v1768_v16 = vpop.xlane.xlu2 %1767 }
0x1190   :  { %v1770_v23 = vmul.f32 %v1768_v16, %v2532_v10 }
0x1192   :  { %v1772_v44 = vadd.f32 1e-12, %v1770_v23 }
0x1194   :  { %2340 = vrsqrt.f32 %v1772_v44  ;;  %vm1789_vm12 = vweird.f32 %v1772_v44 }
0x119a   :  { %v2341_v25 = vpop.eup %2340 }
0x119b   :  { %v1784_v26 = vmul.f32 %v2341_v25, %v1772_v44  ;;  %vm1790_vm11 = vweird.f32 %v2341_v25 }
0x119c   :  { %vm1791_vm15 = vmor %vm1789_vm12, %vm1790_vm11 }
0x119d   :  { %v1785_v27 = vmul.f32 %v2341_v25, %v1784_v26 }
0x119f   :  { %v1786_v28 = vmul.f32 0.5, %v1785_v27 }
0x11a1   :  { %v1787_v30 = vsub.f32 1.5, %v1786_v28 }
0x11a3   :  { %v1788_v31 = vmul.f32 %v2341_v25, %v1787_v30 }
0x11a5   :  { %v1792_v32 = vsel %vm1791_vm15, %v2341_v25, %v1788_v31  ;;  %vm2079_vm15 = vcmask 253952  }
0x11a6   :  { %v1794_v35 = vmul.f32 %v1792_v32, %v1760_v12 }
0x11a8   :  { %v1838_v59 = vpop.f32.mrf.mxu2  ;;  %v1799_v52 = vmul.f32 %v2249_v17, %v1794_v35 }
0x11a9   :  { %v1839_v40 = vadd.f32 %v3017_v29, %v1838_v59 }
0x11aa   :  { %v3020_v41 = vadd.f32 %v2250_v20, %v1799_v52 }
0x11ab   :  { %v1846_v42 = vmul.f32 0.70710677, %v1839_v40  ;;  %v1844_v20 = vmul.f32 0.5, %v1839_v40 }
0x11ac   :  { %2197 = vmatmul.msk.f32.gmra.mxu2 %vm67_vm0, %v3020_v41 }
0x11ad   :  { %v1848_v24 = vmul.f32 %v1846_v42, %v1846_v42 }
0x11af   :  { %v1849_v45 = vmin.f32 %v1848_v24, 16.0 }
0x11b1   :  { %v1850_v46 = vmul.f32 2.1237322e-06, %v1849_v45  ;;  %v1861_v47 = vmul.f32 3.8918573e-05, %v1849_v45 }
0x11b3   :  { %v1851_v49 = vadd.f32 0.00028619796, %v1850_v46  ;;  %v1862_v51 = vadd.f32 0.001143296, %v1861_v47 }
0x11b5   :  { %v1852_v54 = vmul.f32 %v1851_v49, %v1849_v45  ;;  %v1863_v55 = vmul.f32 %v1862_v51, %v1849_v45 }
0x11b7   :  { %v1864_v57 = vadd.f32 0.014752088, %v1863_v55  ;;  %v1853_v60 = vadd.f32 0.0036580483, %v1852_v54 }
0x11b9   :  { %v1865_v61 = vmul.f32 %v1864_v57, %v1849_v45  ;;  %v1854_v0 = vmul.f32 %v1853_v60, %v1849_v45 }
0x11bb   :  { %v1866_v39 = vadd.f32 0.112945676, %v1865_v61  ;;  %v1855_v34 = vadd.f32 0.05243302, %v1854_v0 }
0x11bd   :  { %v1867_v36 = vmul.f32 %v1866_v39, %v1849_v45  ;;  %v1856_v33 = vmul.f32 %v1855_v34, %v1849_v45 }
0x11bf   :  { %v1868_v3 = vadd.f32 0.4994258, %v1867_v36  ;;  %v1857_v5 = vadd.f32 0.18741608, %v1856_v33 }
0x11c1   :  { %v1869_v4 = vmul.f32 %v1868_v3, %v1849_v45  ;;  %v1858_v7 = vmul.f32 %v1857_v5, %v1849_v45 }
0x11c3   :  { %v1870_v38 = vadd.f32 1.0, %v1869_v4  ;;  %v1859_v11 = vadd.f32 1.1283791, %v1858_v7 }
0x11c5   :  { %2342 = vrcp.f32 %v1870_v38  ;;  %v1882_v9 = vand.u32 2147483648, %v1870_v38  ;;  %v1880_v43 = vand.u32 2147483647, %v1870_v38  ;;  %vm1876_vm2 = vweird.f32 %v1870_v38 }
0x11c6   :  { %v1860_v14 = vmul.f32 %v1859_v11, %v1846_v42 }
0x11c7   :  { %v1883_v13 = vor.u32 1.1754944e-38, %v1882_v9  ;;  %vm1881_vm4 = vcmp.eq.f32.partialorder %v1880_v43, 8.507059e+37 }
0x11cb   :  { %v2343_v6 = vpop.eup %2342 }
0x11cc   :  { %v1872_v8 = vmul.f32 %v2343_v6, %v1870_v38  ;;  %vm1877_vm1 = vweird.f32 %v2343_v6 }
0x11cd   :  { %vm1878_vm3 = vmor %vm1876_vm2, %vm1877_vm1 }
0x11ce   :  { %v1873_v50 = vsub.f32 1.0, %v1872_v8 }
0x11d0   :  { %v1874_v12 = vmul.f32 %v2343_v6, %v1873_v50 }
0x11d2   :  { %v1875_v2 = vadd.f32 %v2343_v6, %v1874_v12 }
0x11d4   :  { %v1879_v15 = vsel %vm1878_vm3, %v2343_v6, %v1875_v2 }
0x11d5   :  { %v1884_v17 = vsel %vm1881_vm4, %v1883_v13, %v1879_v15  ;;  %v2040_v15 = vld [vmem:[%s3116_s16 + $0x18] sm:$0xff] }
0x11d6   :  { %v1885_v18 = vmul.f32 %v1884_v17, %v1860_v14  ;;  %2063 = vmatpush.msra.mxu3 %v2040_v15  ;;  %v2039_v17 = vld [vmem:[%s3116_s16 + $0x10] sm:$0xff] }
0x11d8   :  { %v2198_v19 = vclamps-f32 %v1885_v18, 1.0  ;;  %2064 = vmatpush.msra.mxu3 %v2039_v17  ;;  %v2038_v18 = vld [vmem:[%s3116_s16 + $0x8] sm:$0xff] }
0x11da   :  { %v1928_v21 = vadd.f32 1.0, %v2198_v19  ;;  %2065 = vmatpush.msra.mxu3 %v2038_v18 }
0x11dc   :  { %v1930_v16 = vmul.f32 %v1928_v21, %v1844_v20 }
0x11de   :  { %2209 = vmatmul.msk.f32.vlgmr.msrb.gmra.mxu1 %vm991_vm5, %v1930_v16 }
0x122f   :  { %v1841_v23 = vpop.f32.mrf.mxu2 }
0x1230   :  { %v1842_v44 = vadd.f32 %v3017_v29, %v1841_v23 }
0x1232   :  { %v1847_v25 = vmul.f32 0.70710677, %v1842_v44  ;;  %v1845_v6 = vmul.f32 0.5, %v1842_v44 }
0x1234   :  { %v1888_v26 = vmul.f32 %v1847_v25, %v1847_v25 }
0x1236   :  { %v1889_v27 = vmin.f32 %v1888_v26, 16.0 }
0x1238   :  { %v1890_v28 = vmul.f32 2.1237322e-06, %v1889_v27  ;;  %v1901_v30 = vmul.f32 3.8918573e-05, %v1889_v27 }
0x123a   :  { %v1891_v31 = vadd.f32 0.00028619796, %v1890_v28  ;;  %v1902_v32 = vadd.f32 0.001143296, %v1901_v30 }
0x123c   :  { %v1892_v35 = vmul.f32 %v1891_v31, %v1889_v27  ;;  %v1903_v59 = vmul.f32 %v1902_v32, %v1889_v27 }
0x123e   :  { %v1904_v52 = vadd.f32 0.014752088, %v1903_v59  ;;  %v1893_v42 = vadd.f32 0.0036580483, %v1892_v35  ;;  %v2253_v59 = vld [vmem:[%s3114_s14 + $0x1] ss:$0 sm:$0xff] }
0x1240   :  { %v1905_v24 = vmul.f32 %v1904_v52, %v1889_v27  ;;  %v1894_v45 = vmul.f32 %v1893_v42, %v1889_v27 }
0x1242   :  { %v1906_v40 = vadd.f32 0.112945676, %v1905_v24  ;;  %v1895_v47 = vadd.f32 0.05243302, %v1894_v45  ;;  %v2254_v24 = vld [vmem:[%s3115_s15 + $0x1] ss:$0 sm:$0xff] }
0x1244   :  { %v1907_v37 = vmul.f32 %v1906_v40, %v1889_v27  ;;  %v1896_v29 = vmul.f32 %v1895_v47, %v1889_v27 }
0x1246   :  { %v1908_v46 = vadd.f32 0.4994258, %v1907_v37  ;;  %v1897_v51 = vadd.f32 0.18741608, %v1896_v29 }
0x1248   :  { %v1909_v48 = vmul.f32 %v1908_v46, %v1889_v27  ;;  %v1898_v54 = vmul.f32 %v1897_v51, %v1889_v27 }
0x124a   :  { %v1910_v49 = vadd.f32 1.0, %v1909_v48  ;;  %v1899_v58 = vadd.f32 1.1283791, %v1898_v54 }
0x124c   :  { %2344 = vrcp.f32 %v1910_v49  ;;  %v1922_v57 = vand.u32 2147483648, %v1910_v49  ;;  %v1920_v61 = vand.u32 2147483647, %v1910_v49  ;;  %vm1916_vm7 = vweird.f32 %v1910_v49 }
0x124d   :  { %v1900_v0 = vmul.f32 %v1899_v58, %v1847_v25 }
0x124e   :  { %v1923_v63 = vor.u32 1.1754944e-38, %v1922_v57  ;;  %vm1921_vm14 = vcmp.eq.f32.partialorder %v1920_v61, 8.507059e+37 }
0x1252   :  { %v2345_v53 = vpop.eup %2344 }
0x1253   :  { %v1912_v55 = vmul.f32 %v2345_v53, %v1910_v49  ;;  %vm1917_vm6 = vweird.f32 %v2345_v53 }
0x1254   :  { %vm1918_vm13 = vmor %vm1916_vm7, %vm1917_vm6 }
0x1255   :  { %v1913_v56 = vsub.f32 1.0, %v1912_v55 }
0x1257   :  { %v1914_v60 = vmul.f32 %v2345_v53, %v1913_v56  ;;  %v2255_v56 = vld [vmem:[%s3117_s17] ss:$0 sm:$0xff]  ;;  %s2421_s17 = smov [#allocation4]  }
0x1258   :  { %s2087_s7 = sshll.u32 %s2421_s17, 4  ;;  %s2088_s7 = int_to_ptr.vmem [resolvable:$true] %s2087_s7 }
0x1259   :  { %v1915_v39 = vadd.f32 %v2345_v53, %v1914_v60 }
0x125b   :  { %v1919_v1 = vsel %vm1918_vm13, %v2345_v53, %v1915_v39  ;;  %v1969_v36 = vpop.f32.mrf.mxu1 }
0x125c   :  { %v1924_v3 = vsel %vm1921_vm14, %v1923_v63, %v1919_v1  ;;  %v1970_v34 = vadd.f32 %v2252_v62, %v1969_v36 }
0x125d   :  { %v1925_v4 = vmul.f32 %v1924_v3, %v1900_v0 }
0x125e   :  { %v1975_v38 = vadd.f32 %v1970_v34, %v3009_v22 }
0x125f   :  { %v2199_v33 = vclamps-f32 %v1925_v4, 1.0 }
0x1260   :  { %v1981_v5 = vsel %vm67_vm0, %v1975_v38, 0.0 }
0x1261   :  { %1982 = vadd.xlane.f32.xlu1 %v1981_v5  ;;  %v1929_v7 = vadd.f32 1.0, %v2199_v33 }
0x1263   :  { %v1931_v8 = vmul.f32 %v1929_v7, %v1845_v6 }
0x1265   :  { %2210 = vmatmul.msk.f32.gmra.mxu1 %vm991_vm5, %v1931_v8 }
0x12d4   :  { %v1983_v50 = vpop.xlane.xlu1 %1982 }
0x12d5   :  { %v1987_v9 = vmul.f32 %v1983_v50, %v2532_v10 }
0x12d7   :  { %v1989_v11 = vsub.f32 %v1975_v38, %v1987_v9 }
0x12d9   :  { %v1991_v12 = vmul.f32 %v1989_v11, %v1989_v11 }
0x12db   :  { %v1993_v43 = vsel %vm67_vm0, %v1991_v12, 0.0 }
0x12dc   :  { %1994 = vadd.xlane.f32.xlu2 %v1993_v43 }
0x12e2   :  { %v1972_v2 = vpop.f32.mrf.mxu1 }
0x12e3   :  { %v1973_v13 = vadd.f32 %v2252_v62, %v1972_v2 }
0x12e5   :  { %v1976_v22 = vadd.f32 %v1973_v13, %v3020_v41  ;;  %v2037_v41 = vld [vmem:[%s3116_s16] sm:$0xff] }
0x12e6   :  { %2066 = vmatpush.msra.mxu3 %v2037_v41 }
0x12e7   :  { %v1984_v14 = vsel %vm67_vm0, %v1976_v22, 0.0 }
0x12e8   :  { %1985 = vadd.xlane.f32.xlu0 %v1984_v14 }
0x134f   :  { %v1995_v19 = vpop.xlane.xlu2 %1994 }
0x1350   :  { %v1999_v20 = vmul.f32 %v1995_v19, %v2532_v10 }
0x1352   :  { %v2001_v21 = vadd.f32 1e-12, %v1999_v20 }
0x1354   :  { %2346 = vrsqrt.f32 %v2001_v21  ;;  %vm2009_vm8 = vweird.f32 %v2001_v21 }
0x135a   :  { %v2347_v16 = vpop.eup %2346 }
0x135b   :  { %v2004_v23 = vmul.f32 %v2347_v16, %v2001_v21  ;;  %v1986_v44 = vpop.xlane.xlu0 %1985  ;;  %vm2010_vm5 = vweird.f32 %v2347_v16 }
0x135c   :  { %v1988_v25 = vmul.f32 %v1986_v44, %v2532_v10  ;;  %vm2011_vm9 = vmor %vm2009_vm8, %vm2010_vm5 }
0x135d   :  { %v2005_v26 = vmul.f32 %v2347_v16, %v2004_v23 }
0x135e   :  { %v1990_v27 = vsub.f32 %v1976_v22, %v1988_v25 }
0x135f   :  { %v2006_v28 = vmul.f32 0.5, %v2005_v26 }
0x1360   :  { %v1992_v30 = vmul.f32 %v1990_v27, %v1990_v27 }
0x1361   :  { %v2007_v31 = vsub.f32 1.5, %v2006_v28 }
0x1362   :  { %v1996_v32 = vsel %vm67_vm0, %v1992_v30, 0.0 }
0x1363   :  { %v2008_v35 = vmul.f32 %v2347_v16, %v2007_v31  ;;  %1997 = vadd.xlane.f32.xlu1 %v1996_v32 }
0x1365   :  { %v2012_v52 = vsel %vm2011_vm9, %v2347_v16, %v2008_v35 }
0x1366   :  { %v2023_v42 = vmul.f32 %v2012_v52, %v1989_v11 }
0x1368   :  { %v2028_v40 = vmul.f32 %v2253_v59, %v2023_v42 }
0x136a   :  { %v2033_v45 = vadd.f32 %v2254_v24, %v2028_v40 }
0x136c   :  { %2213 = vmatmul.msk.f32.vlgmr.msra.gmra.mxu3 %vm67_vm0, %v2033_v45  ;;  %2035 = vst.msk [vmem:[#allocation4] sm:$0xff] %vm67_vm0, %v2033_v45 }
0x13d6   :  { %v1998_v37 = vpop.xlane.xlu1 %1997 }
0x13d7   :  { %v2000_v46 = vmul.f32 %v1998_v37, %v2532_v10 }
0x13d9   :  { %v2002_v47 = vadd.f32 1e-12, %v2000_v46 }
0x13db   :  { %2348 = vrsqrt.f32 %v2002_v47  ;;  %vm2019_vm11 = vweird.f32 %v2002_v47 }
0x13e1   :  { %v2349_v48 = vpop.eup %2348 }
0x13e2   :  { %v2014_v49 = vmul.f32 %v2349_v48, %v2002_v47  ;;  %vm2020_vm10 = vweird.f32 %v2349_v48 }
0x13e3   :  { %vm2021_vm12 = vmor %vm2019_vm11, %vm2020_vm10 }
0x13e4   :  { %v2015_v29 = vmul.f32 %v2349_v48, %v2014_v49 }
0x13e6   :  { %v2016_v51 = vmul.f32 0.5, %v2015_v29 }
0x13e8   :  { %v2017_v53 = vsub.f32 1.5, %v2016_v51 }
0x13ea   :  { %v2018_v54 = vmul.f32 %v2349_v48, %v2017_v53 }
0x13ec   :  { %v2022_v55 = vsel %vm2021_vm12, %v2349_v48, %v2018_v54 }
0x13ed   :  { %v2024_v57 = vmul.f32 %v2022_v55, %v1990_v27 }
0x13ef   :  { %v2068_v58 = vpop.f32.mrf.mxu3  ;;  %v2029_v60 = vmul.f32 %v2253_v59, %v2024_v57 }
0x13f0   :  { %v2069_v10 = vadd.f32 %v2255_v56, %v2068_v58 }
0x13f1   :  { %v2034_v61 = vadd.f32 %v2254_v24, %v2029_v60 }
0x13f2   :  { %2350 = vtanh.f32 %v2069_v10 }
0x13f3   :  { %2036 = vst.msk [vmem:[#allocation4 + $0x8] sm:$0xff] %vm67_vm0, %v2034_v61  ;;  %2214 = vmatmul.msk.f32.gmra.mxu3 %vm67_vm0, %v2034_v61 }
0x13f4   :  { %2095 = dma.vmem_to_hbm [thread:$0]  %s2088_s7, 256, %s2090_s3, [#allocation5], %s2422_s2, %s2422_s2, %s2418_s22  }
0x13f8   :  { %v2351_v62 = vpop.eup %2350 }
0x13f9   :  { %2076 = vst.msk [vmem:[#allocation3] sm:$0xff] %vm67_vm0, %v2351_v62 }
0x1400   :  { %v2078_v39 = vld [vmem:[#allocation3] sm:$0x1] }
0x1401   :  { %2080 = vst.msk [vmem:[#allocation6] sm:$0x1] %vm2079_vm15, %v2078_v39 }
0x1476   :  { %v2071_v63 = vpop.f32.mrf.mxu3 }
0x1477   :  { %v2072_v0 = vadd.f32 %v2255_v56, %v2071_v63 }
0x1479   :  { %2352 = vtanh.f32 %v2072_v0 }
0x147f   :  { %v2353_v1 = vpop.eup %2352 }
0x1480   :  { %2077 = vst.msk [vmem:[#allocation3 + $0x8] sm:$0xff] %vm67_vm0, %v2353_v1 }
0x1487   :  { %v2081_v36 = vld [vmem:[#allocation3 + $0x8] sm:$0x1] }
0x1488   :  { %2082 = vst.msk [vmem:[#allocation6 + $0x1] sm:$0x1] %vm2079_vm15, %v2081_v36 }
0x1489   :  { %2106 = dma.vmem_to_hbm [thread:$0]  %s2102_s26, 32, %s2104_s27, [#allocation7]  }
0x148a   :  { %2402 = dma.done.wait [#allocation5], 256  }
0x148b   :  { %2403 = vsyncadd [#allocation5], 4294967040 }
0x148c   :  { %2404 = dma.done.wait [#allocation7], 32  }
0x148d   :  { %2405 = vsyncadd [#allocation7], 4294967264 }
0x148e   :  { %2115 = vsyncpa [#allocation5], 1 }
0x148f   :  { %2116 = vsyncpa [#allocation7], 1 }

</bundles_post_ra>
